<compile_context>
chip_gen: v5e
topology: v5e:2x2
jax: 0.10.0
libtpu: 0.0.40
codegen_flags: <defaults>
</compile_context>

<pallas_src>
import functools

import jax
import jax.numpy as jnp
from jax import lax
from jax.experimental import pallas as pl
from jax.experimental.pallas import tpu as pltpu


def _mha_lka_kernel(xp_ref, w0_ref, b0_ref, ws_ref, bs_ref,
                    w1_ref, b1_ref, se1_ref, se2_ref, wo_ref, bo_ref,
                    out_ref, c0_ref, lka_ref, *, H, W, C):
    """Fused forward for one group of images.

    Layout: the (grouped) channel axis C (== G * d_model, lane-dense) is last,
    W maps to sublanes.  Depthwise taps accumulate in vregs per output row.
    """
    HW = H * W

    # ---- LKA conv0: depthwise 5x5, padding 2 (input pre-padded on host) -----
    w0 = w0_ref[...]                       # (25, C) tap weights, hoisted
    b0 = b0_ref[...]                       # (1, C)

    # conv_spatial's zero padding in W: 9-wide zero bands around conv0's output.
    # Rewritten every grid step (no cross-step / cross-core invariant).
    c0_ref[:, 0:9, :] = jnp.zeros((H, 9, C), jnp.float32)
    c0_ref[:, 9 + W:9 + W + 9, :] = jnp.zeros((H, 9, C), jnp.float32)

    def conv0_row(h, carry):
        acc = jnp.broadcast_to(b0, (W, C))                 # vreg accumulator
        for kh in range(5):
            row = xp_ref[h + kh]                           # (W + 4, C)
            for kw in range(5):
                acc = acc + row[kw:kw + W, :] * w0[kh * 5 + kw:kh * 5 + kw + 1, :]
        c0_ref[h, 9:9 + W, :] = acc                        # one store per row
        return carry

    lax.fori_loop(0, H, conv0_row, 0)

    # ---- LKA conv_spatial: depthwise 7x7, dilation 3, padding 9 --------------
    ws = ws_ref[...]                       # (49, C)
    bs = bs_ref[...]                       # (1, C)

    def convsp_row(h, carry):
        acc = jnp.broadcast_to(bs, (W, C))
        for kh in range(7):
            r = h + 3 * kh - 9                             # conv0-output row
            valid = jnp.logical_and(r >= 0, r < H).astype(jnp.float32)
            row = c0_ref[jnp.clip(r, 0, H - 1)]            # (W + 18, C)
            part = jnp.zeros((W, C), jnp.float32)
            for kw in range(7):
                part = part + (row[3 * kw:3 * kw + W, :]
                               * ws[kh * 7 + kw:kh * 7 + kw + 1, :])
            acc = acc + part * valid                       # H-direction zero pad
        lka_ref[h] = acc
        return carry

    lax.fori_loop(0, H, convsp_row, 0)

    # ---- conv1 (per-head 1x1 == block-diag matmul) + gating by u -------------
    u = xp_ref[2:2 + H, 2:2 + W, :].reshape(HW, C)         # head inputs (interior)
    attn = jnp.dot(lka_ref[...].reshape(HW, C).astype(jnp.bfloat16), w1_ref[...],
                   preferred_element_type=jnp.float32) + b1_ref[...]
    attn = u * attn

    # ---- SE block: global average pool -> FC -> ReLU -> FC -> sigmoid --------
    s = jnp.mean(attn, axis=0, keepdims=True)              # (1, C), per-image pool
    z = jnp.maximum(jnp.dot(s.astype(jnp.bfloat16), se1_ref[...],
                            preferred_element_type=jnp.float32), 0.0)
    g = jax.nn.sigmoid(jnp.dot(z.astype(jnp.bfloat16), se2_ref[...],
                               preferred_element_type=jnp.float32))
    attn = attn * g

    # ---- output projection (1x1 conv with bias), lane-dense store ------------
    out_ref[...] = (jnp.dot(attn.astype(jnp.bfloat16), wo_ref[...],
                            preferred_element_type=jnp.float32)
                    + bo_ref[...]).astype(out_ref.dtype)


def _const_spec(arr):
    nd = arr.ndim
    return pl.BlockSpec(arr.shape, lambda b, _nd=nd: (0,) * _nd)


def multi_head_attention(x_nchw, params):
    """Pallas implementation of MultiHeadAttention.forward (NCHW in / NCHW out)."""
    B, C, H, W = x_nchw.shape
    G = params['group']                    # images packed into the lane axis
    GC = G * C
    HW = H * W
    Hp, Wp = H + 4, W + 4
    p = params

    # Pack G images per grid step so the channel (lane) axis is ~128 wide.
    Bp = ((B + G - 1) // G) * G
    x = x_nchw.astype(jnp.float32)
    if Bp != B:
        x = jnp.pad(x, ((0, Bp - B), (0, 0), (0, 0), (0, 0)))
    NG = Bp // G
    xg = (x.transpose(0, 2, 3, 1)                          # NHWC
           .reshape(NG, G, H, W, C)
           .transpose(0, 2, 3, 1, 4)                       # (NG, H, W, G, C)
           .reshape(NG, H, W, GC))
    xp = jnp.pad(xg, ((0, 0), (2, 2), (2, 2), (0, 0)))     # halo for conv0 only

    out = pl.pallas_call(
        functools.partial(_mha_lka_kernel, H=H, W=W, C=GC),
        out_shape=jax.ShapeDtypeStruct((NG, HW, GC), jnp.float32),
        grid=(NG,),
        in_specs=[
            pl.BlockSpec((None, Hp, Wp, GC), lambda b: (b, 0, 0, 0)),
            _const_spec(p['dw0_w']), _const_spec(p['dw0_b']),
            _const_spec(p['dws_w']), _const_spec(p['dws_b']),
            _const_spec(p['pw1_w']), _const_spec(p['pw1_b']),
            _const_spec(p['se1_w']), _const_spec(p['se2_w']),
            _const_spec(p['out_w']), _const_spec(p['out_b']),
        ],
        out_specs=pl.BlockSpec((None, HW, GC), lambda b: (b, 0, 0)),
        scratch_shapes=[
            pltpu.VMEM((H, W + 18, GC), jnp.float32),      # conv0 out, W-halo = 0
            pltpu.VMEM((H, W, GC), jnp.float32),           # conv_spatial out
        ],
        compiler_params=pltpu.CompilerParams(
            dimension_semantics=("parallel",)),            # shard groups on v7x cores
    )(xp, p['dw0_w'], p['dw0_b'], p['dws_w'], p['dws_b'],
      p['pw1_w'], p['pw1_b'], p['se1_w'], p['se2_w'], p['out_w'], p['out_b'])

    out = (out.reshape(NG, H, W, G, C)
              .transpose(0, 3, 1, 2, 4)                    # (NG, G, H, W, C)
              .reshape(Bp, H, W, C)
              .transpose(0, 3, 1, 2))                      # NCHW
    return out[:B]


def make_params(key, d_model, num_heads=8, reduction=16, group=None):
    """Synthetic parameters: raw PyTorch-layout weights + kernel-ready layouts."""
    hd = d_model // num_heads
    C = d_model
    Cr = max(C // reduction, 1)
    G = group if group is not None else max(1, 128 // C)
    ks = jax.random.split(key, 10)
    n = lambda k, shape, s=0.1: s * jax.random.normal(k, shape, jnp.float32)
    raw = {
        'w0': n(ks[0], (C, 1, 5, 5)), 'b0': n(ks[1], (C,)),        # heads stacked
        'ws': n(ks[2], (C, 1, 7, 7)), 'bs': n(ks[3], (C,)),
        'w1': n(ks[4], (num_heads, hd, hd)), 'b1': n(ks[5], (num_heads, hd)),
        'se1': n(ks[6], (Cr, C)), 'se2': n(ks[7], (C, Cr)),
        'wo': n(ks[8], (C, C)), 'bo': n(ks[9], (C,)),
        'num_heads': num_heads, 'head_dim': hd,
    }
    # per-head conv1 as one block-diagonal (C_in, C_out) weight
    w1bd = jnp.zeros((C, C), jnp.float32)
    for h in range(num_heads):
        w1bd = w1bd.at[h * hd:(h + 1) * hd, h * hd:(h + 1) * hd].set(raw['w1'][h].T)
    eye_g = jnp.eye(G, dtype=jnp.float32)
    blkdiag_g = lambda m: jnp.kron(eye_g, m)               # G independent image blocks
    params = {
        'group': G,
        'dw0_w': jnp.tile(raw['w0'].reshape(C, 25).T, (1, G)),      # (25, G*C)
        'dw0_b': jnp.tile(raw['b0'].reshape(1, C), (1, G)),
        'dws_w': jnp.tile(raw['ws'].reshape(C, 49).T, (1, G)),      # (49, G*C)
        'dws_b': jnp.tile(raw['bs'].reshape(1, C), (1, G)),
        'pw1_w': blkdiag_g(w1bd).astype(jnp.bfloat16),              # (GC, GC)
        'pw1_b': jnp.tile(raw['b1'].reshape(1, C), (1, G)),
        'se1_w': blkdiag_g(raw['se1'].T).astype(jnp.bfloat16),      # (GC, G*Cr)
        'se2_w': blkdiag_g(raw['se2'].T).astype(jnp.bfloat16),      # (G*Cr, GC)
        'out_w': blkdiag_g(raw['wo'].T).astype(jnp.bfloat16),       # (GC, GC)
        'out_b': jnp.tile(raw['bo'].reshape(1, C), (1, G)),
    }
    return params, raw


def reference_forward(x, raw):
    """Pure-JAX reference mirroring the PyTorch forward semantics (f32)."""
    B, C, H, W = x.shape
    nh, hd = raw['num_heads'], raw['head_dim']
    y = lax.conv_general_dilated(x, raw['w0'], (1, 1), ((2, 2), (2, 2)),
                                 feature_group_count=C,
                                 dimension_numbers=('NCHW', 'OIHW', 'NCHW'))
    y = y + raw['b0'][None, :, None, None]
    y = lax.conv_general_dilated(y, raw['ws'], (1, 1), ((9, 9), (9, 9)),
                                 rhs_dilation=(3, 3), feature_group_count=C,
                                 dimension_numbers=('NCHW', 'OIHW', 'NCHW'))
    y = y + raw['bs'][None, :, None, None]
    y = y.reshape(B, nh, hd, H, W)
    attn = jnp.einsum('bnihw,noi->bnohw', y, raw['w1'])
    attn = attn + raw['b1'][None, :, :, None, None]
    attn = attn.reshape(B, C, H, W)
    attn = x * attn
    s = attn.mean(axis=(2, 3))
    z = jnp.maximum(s @ raw['se1'].T, 0.0)
    g = jax.nn.sigmoid(z @ raw['se2'].T)
    attn = attn * g[:, :, None, None]
    return (jnp.einsum('bchw,oc->bohw', attn, raw['wo'])
            + raw['bo'][None, :, None, None])


if __name__ == "__main__":
    key = jax.random.PRNGKey(0)
    kx, kp = jax.random.split(key)
    d_model, num_heads = 32, 8                 # head_dim = 4, SE hidden = 2
    B, H, W = 8, 16, 16                        # group G = 128 // 32 = 4 -> 2 grid steps
    x = jax.random.normal(kx, (B, d_model, H, W), jnp.float32)   # NCHW, like PyTorch
    params, raw = make_params(kp, d_model, num_heads)

    out = jax.block_until_ready(multi_head_attention(x, params))
    ref = jax.block_until_ready(reference_forward(x, raw))

    assert out.shape == (B, d_model, H, W), out.shape
    # bf16 matmul operands (f32 accumulation) vs. the pure-f32 reference.
    if not jnp.allclose(out, ref, atol=2e-2, rtol=2e-2):
        max_err = float(jnp.max(jnp.abs(out - ref)))
        raise AssertionError(f"mismatch vs pure-JAX reference, max abs err {max_err}")
    print("KERNEL_OK")
</pallas_src>

<mosaic_0001>
module attributes {stable_mosaic.version = 11 : i64} {
  func.func @_mha_lka_kernel(%arg0: i32, %arg1: memref<1x20x20x128xf32, #tpu.memory_space<vmem>>, %arg2: memref<25x128xf32, #tpu.memory_space<vmem>>, %arg3: memref<1x128xf32, #tpu.memory_space<vmem>>, %arg4: memref<49x128xf32, #tpu.memory_space<vmem>>, %arg5: memref<1x128xf32, #tpu.memory_space<vmem>>, %arg6: memref<128x128xbf16, #tpu.memory_space<vmem>>, %arg7: memref<1x128xf32, #tpu.memory_space<vmem>>, %arg8: memref<128x8xbf16, #tpu.memory_space<vmem>>, %arg9: memref<8x128xbf16, #tpu.memory_space<vmem>>, %arg10: memref<128x128xbf16, #tpu.memory_space<vmem>>, %arg11: memref<1x128xf32, #tpu.memory_space<vmem>>, %arg12: memref<1x256x128xf32, #tpu.memory_space<vmem>>, %arg13: memref<16x34x128xf32, #tpu.memory_space<vmem>>, %arg14: memref<16x16x128xf32, #tpu.memory_space<vmem>>) attributes {dimension_semantics = [#tpu.dimension_semantics<parallel>], iteration_bounds = array<i64: 2>, scalar_prefetch = 0 : i64, scratch_operands = 2 : i64, tpu.core_type = #tpu.core_type<tc>, window_params = [{transform_indices = @transform_0, window_bounds = array<i64: 1, 20, 20, 128>}, {pipeline_mode = #tpu.pipeline_mode<synchronous>, transform_indices = @transform_1, window_bounds = array<i64: 25, 128>}, {pipeline_mode = #tpu.pipeline_mode<synchronous>, transform_indices = @transform_2, window_bounds = array<i64: 1, 128>}, {pipeline_mode = #tpu.pipeline_mode<synchronous>, transform_indices = @transform_3, window_bounds = array<i64: 49, 128>}, {pipeline_mode = #tpu.pipeline_mode<synchronous>, transform_indices = @transform_4, window_bounds = array<i64: 1, 128>}, {pipeline_mode = #tpu.pipeline_mode<synchronous>, transform_indices = @transform_5, window_bounds = array<i64: 128, 128>}, {pipeline_mode = #tpu.pipeline_mode<synchronous>, transform_indices = @transform_6, window_bounds = array<i64: 1, 128>}, {pipeline_mode = #tpu.pipeline_mode<synchronous>, transform_indices = @transform_7, window_bounds = array<i64: 128, 8>}, {pipeline_mode = #tpu.pipeline_mode<synchronous>, transform_indices = @transform_8, window_bounds = array<i64: 8, 128>}, {pipeline_mode = #tpu.pipeline_mode<synchronous>, transform_indices = @transform_9, window_bounds = array<i64: 128, 128>}, {pipeline_mode = #tpu.pipeline_mode<synchronous>, transform_indices = @transform_10, window_bounds = array<i64: 1, 128>}, {transform_indices = @transform_11, window_bounds = array<i64: 1, 256, 128>}]} {
    %c0 = arith.constant 0 : index
    %c0_0 = arith.constant 0 : index
    %0 = vector.load %arg2[%c0, %c0_0] : memref<25x128xf32, #tpu.memory_space<vmem>>, vector<25x128xf32>
    %c0_1 = arith.constant 0 : index
    %c0_2 = arith.constant 0 : index
    %1 = vector.load %arg3[%c0_1, %c0_2] : memref<1x128xf32, #tpu.memory_space<vmem>>, vector<1x128xf32>
    %cst = arith.constant 0.000000e+00 : f32
    %2 = vector.broadcast %cst : f32 to vector<16x9x128xf32>
    %c0_3 = arith.constant 0 : index
    %c0_4 = arith.constant 0 : index
    %c0_5 = arith.constant 0 : index
    %3 = vector.load %arg13[%c0_3, %c0_4, %c0_5] : memref<16x34x128xf32, #tpu.memory_space<vmem>>, vector<16x9x128xf32>
    tpu.vector_store %arg13[%c0_3, %c0_4, %c0_5], %2 {strides = array<i32>} : memref<16x34x128xf32, #tpu.memory_space<vmem>>, vector<16x9x128xf32>,
    %cst_6 = arith.constant 0.000000e+00 : f32
    %4 = vector.broadcast %cst_6 : f32 to vector<16x9x128xf32>
    %c0_7 = arith.constant 0 : index
    %c25 = arith.constant 25 : index
    %c0_8 = arith.constant 0 : index
    %5 = vector.load %arg13[%c0_7, %c25, %c0_8] : memref<16x34x128xf32, #tpu.memory_space<vmem>>, vector<16x9x128xf32>
    tpu.vector_store %arg13[%c0_7, %c25, %c0_8], %4 {strides = array<i32>} : memref<16x34x128xf32, #tpu.memory_space<vmem>>, vector<16x9x128xf32>,
    %c0_i32 = arith.constant 0 : i32
    %c16_i32 = arith.constant 16 : i32
    %6 = arith.addi %c0_i32, %c16_i32 : i32
    %c1_i32 = arith.constant 1 : i32
    scf.for %arg15 = %c0_i32 to %6 step %c1_i32  : i32 {
      %50 = vector.shape_cast %1 : vector<1x128xf32> to vector<1x128xf32>
      %51 = vector.broadcast %50 : vector<1x128xf32> to vector<16x128xf32>
      %c0_i32_47 = arith.constant 0 : i32
      %52 = arith.addi %arg15, %c0_i32_47 : i32
      %c0_48 = arith.constant 0 : index
      %53 = arith.index_cast %52 : i32 to index
      %c0_49 = arith.constant 0 : index
      %c0_50 = arith.constant 0 : index
      %54 = vector.load %arg1[%c0_48, %53, %c0_49, %c0_50] : memref<1x20x20x128xf32, #tpu.memory_space<vmem>>, vector<1x1x20x128xf32>
      %55 = vector.shape_cast %54 : vector<1x1x20x128xf32> to vector<20x128xf32>
      %56 = vector.extract_strided_slice %55 {offsets = [0, 0], sizes = [16, 128], strides = [1, 1]} : vector<20x128xf32> to vector<16x128xf32>
      %57 = vector.extract_strided_slice %0 {offsets = [0, 0], sizes = [1, 128], strides = [1, 1]} : vector<25x128xf32> to vector<1x128xf32>
      %58 = vector.broadcast %57 : vector<1x128xf32> to vector<16x128xf32>
      %59 = arith.mulf %56, %58 : vector<16x128xf32>
      %60 = arith.addf %51, %59 : vector<16x128xf32>
      %61 = vector.extract_strided_slice %55 {offsets = [1, 0], sizes = [16, 128], strides = [1, 1]} : vector<20x128xf32> to vector<16x128xf32>
      %62 = vector.extract_strided_slice %0 {offsets = [1, 0], sizes = [1, 128], strides = [1, 1]} : vector<25x128xf32> to vector<1x128xf32>
      %63 = vector.broadcast %62 : vector<1x128xf32> to vector<16x128xf32>
      %64 = arith.mulf %61, %63 : vector<16x128xf32>
      %65 = arith.addf %60, %64 : vector<16x128xf32>
      %66 = vector.extract_strided_slice %55 {offsets = [2, 0], sizes = [16, 128], strides = [1, 1]} : vector<20x128xf32> to vector<16x128xf32>
      %67 = vector.extract_strided_slice %0 {offsets = [2, 0], sizes = [1, 128], strides = [1, 1]} : vector<25x128xf32> to vector<1x128xf32>
      %68 = vector.broadcast %67 : vector<1x128xf32> to vector<16x128xf32>
      %69 = arith.mulf %66, %68 : vector<16x128xf32>
      %70 = arith.addf %65, %69 : vector<16x128xf32>
      %71 = vector.extract_strided_slice %55 {offsets = [3, 0], sizes = [16, 128], strides = [1, 1]} : vector<20x128xf32> to vector<16x128xf32>
      %72 = vector.extract_strided_slice %0 {offsets = [3, 0], sizes = [1, 128], strides = [1, 1]} : vector<25x128xf32> to vector<1x128xf32>
      %73 = vector.broadcast %72 : vector<1x128xf32> to vector<16x128xf32>
      %74 = arith.mulf %71, %73 : vector<16x128xf32>
      %75 = arith.addf %70, %74 : vector<16x128xf32>
      %76 = vector.extract_strided_slice %55 {offsets = [4, 0], sizes = [16, 128], strides = [1, 1]} : vector<20x128xf32> to vector<16x128xf32>
      %77 = vector.extract_strided_slice %0 {offsets = [4, 0], sizes = [1, 128], strides = [1, 1]} : vector<25x128xf32> to vector<1x128xf32>
      %78 = vector.broadcast %77 : vector<1x128xf32> to vector<16x128xf32>
      %79 = arith.mulf %76, %78 : vector<16x128xf32>
      %80 = arith.addf %75, %79 : vector<16x128xf32>
      %c1_i32_51 = arith.constant 1 : i32
      %81 = arith.addi %arg15, %c1_i32_51 : i32
      %c0_52 = arith.constant 0 : index
      %82 = arith.index_cast %81 : i32 to index
      %c0_53 = arith.constant 0 : index
      %c0_54 = arith.constant 0 : index
      %83 = vector.load %arg1[%c0_52, %82, %c0_53, %c0_54] : memref<1x20x20x128xf32, #tpu.memory_space<vmem>>, vector<1x1x20x128xf32>
      %84 = vector.shape_cast %83 : vector<1x1x20x128xf32> to vector<20x128xf32>
      %85 = vector.extract_strided_slice %84 {offsets = [0, 0], sizes = [16, 128], strides = [1, 1]} : vector<20x128xf32> to vector<16x128xf32>
      %86 = vector.extract_strided_slice %0 {offsets = [5, 0], sizes = [1, 128], strides = [1, 1]} : vector<25x128xf32> to vector<1x128xf32>
      %87 = vector.broadcast %86 : vector<1x128xf32> to vector<16x128xf32>
      %88 = arith.mulf %85, %87 : vector<16x128xf32>
      %89 = arith.addf %80, %88 : vector<16x128xf32>
      %90 = vector.extract_strided_slice %84 {offsets = [1, 0], sizes = [16, 128], strides = [1, 1]} : vector<20x128xf32> to vector<16x128xf32>
      %91 = vector.extract_strided_slice %0 {offsets = [6, 0], sizes = [1, 128], strides = [1, 1]} : vector<25x128xf32> to vector<1x128xf32>
      %92 = vector.broadcast %91 : vector<1x128xf32> to vector<16x128xf32>
      %93 = arith.mulf %90, %92 : vector<16x128xf32>
      %94 = arith.addf %89, %93 : vector<16x128xf32>
      %95 = vector.extract_strided_slice %84 {offsets = [2, 0], sizes = [16, 128], strides = [1, 1]} : vector<20x128xf32> to vector<16x128xf32>
      %96 = vector.extract_strided_slice %0 {offsets = [7, 0], sizes = [1, 128], strides = [1, 1]} : vector<25x128xf32> to vector<1x128xf32>
      %97 = vector.broadcast %96 : vector<1x128xf32> to vector<16x128xf32>
      %98 = arith.mulf %95, %97 : vector<16x128xf32>
      %99 = arith.addf %94, %98 : vector<16x128xf32>
      %100 = vector.extract_strided_slice %84 {offsets = [3, 0], sizes = [16, 128], strides = [1, 1]} : vector<20x128xf32> to vector<16x128xf32>
      %101 = vector.extract_strided_slice %0 {offsets = [8, 0], sizes = [1, 128], strides = [1, 1]} : vector<25x128xf32> to vector<1x128xf32>
      %102 = vector.broadcast %101 : vector<1x128xf32> to vector<16x128xf32>
      %103 = arith.mulf %100, %102 : vector<16x128xf32>
      %104 = arith.addf %99, %103 : vector<16x128xf32>
      %105 = vector.extract_strided_slice %84 {offsets = [4, 0], sizes = [16, 128], strides = [1, 1]} : vector<20x128xf32> to vector<16x128xf32>
      %106 = vector.extract_strided_slice %0 {offsets = [9, 0], sizes = [1, 128], strides = [1, 1]} : vector<25x128xf32> to vector<1x128xf32>
      %107 = vector.broadcast %106 : vector<1x128xf32> to vector<16x128xf32>
      %108 = arith.mulf %105, %107 : vector<16x128xf32>
      %109 = arith.addf %104, %108 : vector<16x128xf32>
      %c2_i32 = arith.constant 2 : i32
      %110 = arith.addi %arg15, %c2_i32 : i32
      %c0_55 = arith.constant 0 : index
      %111 = arith.index_cast %110 : i32 to index
      %c0_56 = arith.constant 0 : index
      %c0_57 = arith.constant 0 : index
      %112 = vector.load %arg1[%c0_55, %111, %c0_56, %c0_57] : memref<1x20x20x128xf32, #tpu.memory_space<vmem>>, vector<1x1x20x128xf32>
      %113 = vector.shape_cast %112 : vector<1x1x20x128xf32> to vector<20x128xf32>
      %114 = vector.extract_strided_slice %113 {offsets = [0, 0], sizes = [16, 128], strides = [1, 1]} : vector<20x128xf32> to vector<16x128xf32>
      %115 = vector.extract_strided_slice %0 {offsets = [10, 0], sizes = [1, 128], strides = [1, 1]} : vector<25x128xf32> to vector<1x128xf32>
      %116 = vector.broadcast %115 : vector<1x128xf32> to vector<16x128xf32>
      %117 = arith.mulf %114, %116 : vector<16x128xf32>
      %118 = arith.addf %109, %117 : vector<16x128xf32>
      %119 = vector.extract_strided_slice %113 {offsets = [1, 0], sizes = [16, 128], strides = [1, 1]} : vector<20x128xf32> to vector<16x128xf32>
      %120 = vector.extract_strided_slice %0 {offsets = [11, 0], sizes = [1, 128], strides = [1, 1]} : vector<25x128xf32> to vector<1x128xf32>
      %121 = vector.broadcast %120 : vector<1x128xf32> to vector<16x128xf32>
      %122 = arith.mulf %119, %121 : vector<16x128xf32>
      %123 = arith.addf %118, %122 : vector<16x128xf32>
      %124 = vector.extract_strided_slice %113 {offsets = [2, 0], sizes = [16, 128], strides = [1, 1]} : vector<20x128xf32> to vector<16x128xf32>
      %125 = vector.extract_strided_slice %0 {offsets = [12, 0], sizes = [1, 128], strides = [1, 1]} : vector<25x128xf32> to vector<1x128xf32>
      %126 = vector.broadcast %125 : vector<1x128xf32> to vector<16x128xf32>
      %127 = arith.mulf %124, %126 : vector<16x128xf32>
      %128 = arith.addf %123, %127 : vector<16x128xf32>
      %129 = vector.extract_strided_slice %113 {offsets = [3, 0], sizes = [16, 128], strides = [1, 1]} : vector<20x128xf32> to vector<16x128xf32>
      %130 = vector.extract_strided_slice %0 {offsets = [13, 0], sizes = [1, 128], strides = [1, 1]} : vector<25x128xf32> to vector<1x128xf32>
      %131 = vector.broadcast %130 : vector<1x128xf32> to vector<16x128xf32>
      %132 = arith.mulf %129, %131 : vector<16x128xf32>
      %133 = arith.addf %128, %132 : vector<16x128xf32>
      %134 = vector.extract_strided_slice %113 {offsets = [4, 0], sizes = [16, 128], strides = [1, 1]} : vector<20x128xf32> to vector<16x128xf32>
      %135 = vector.extract_strided_slice %0 {offsets = [14, 0], sizes = [1, 128], strides = [1, 1]} : vector<25x128xf32> to vector<1x128xf32>
      %136 = vector.broadcast %135 : vector<1x128xf32> to vector<16x128xf32>
      %137 = arith.mulf %134, %136 : vector<16x128xf32>
      %138 = arith.addf %133, %137 : vector<16x128xf32>
      %c3_i32 = arith.constant 3 : i32
      %139 = arith.addi %arg15, %c3_i32 : i32
      %c0_58 = arith.constant 0 : index
      %140 = arith.index_cast %139 : i32 to index
      %c0_59 = arith.constant 0 : index
      %c0_60 = arith.constant 0 : index
      %141 = vector.load %arg1[%c0_58, %140, %c0_59, %c0_60] : memref<1x20x20x128xf32, #tpu.memory_space<vmem>>, vector<1x1x20x128xf32>
      %142 = vector.shape_cast %141 : vector<1x1x20x128xf32> to vector<20x128xf32>
      %143 = vector.extract_strided_slice %142 {offsets = [0, 0], sizes = [16, 128], strides = [1, 1]} : vector<20x128xf32> to vector<16x128xf32>
      %144 = vector.extract_strided_slice %0 {offsets = [15, 0], sizes = [1, 128], strides = [1, 1]} : vector<25x128xf32> to vector<1x128xf32>
      %145 = vector.broadcast %144 : vector<1x128xf32> to vector<16x128xf32>
      %146 = arith.mulf %143, %145 : vector<16x128xf32>
      %147 = arith.addf %138, %146 : vector<16x128xf32>
      %148 = vector.extract_strided_slice %142 {offsets = [1, 0], sizes = [16, 128], strides = [1, 1]} : vector<20x128xf32> to vector<16x128xf32>
      %149 = vector.extract_strided_slice %0 {offsets = [16, 0], sizes = [1, 128], strides = [1, 1]} : vector<25x128xf32> to vector<1x128xf32>
      %150 = vector.broadcast %149 : vector<1x128xf32> to vector<16x128xf32>
      %151 = arith.mulf %148, %150 : vector<16x128xf32>
      %152 = arith.addf %147, %151 : vector<16x128xf32>
      %153 = vector.extract_strided_slice %142 {offsets = [2, 0], sizes = [16, 128], strides = [1, 1]} : vector<20x128xf32> to vector<16x128xf32>
      %154 = vector.extract_strided_slice %0 {offsets = [17, 0], sizes = [1, 128], strides = [1, 1]} : vector<25x128xf32> to vector<1x128xf32>
      %155 = vector.broadcast %154 : vector<1x128xf32> to vector<16x128xf32>
      %156 = arith.mulf %153, %155 : vector<16x128xf32>
      %157 = arith.addf %152, %156 : vector<16x128xf32>
      %158 = vector.extract_strided_slice %142 {offsets = [3, 0], sizes = [16, 128], strides = [1, 1]} : vector<20x128xf32> to vector<16x128xf32>
      %159 = vector.extract_strided_slice %0 {offsets = [18, 0], sizes = [1, 128], strides = [1, 1]} : vector<25x128xf32> to vector<1x128xf32>
      %160 = vector.broadcast %159 : vector<1x128xf32> to vector<16x128xf32>
      %161 = arith.mulf %158, %160 : vector<16x128xf32>
      %162 = arith.addf %157, %161 : vector<16x128xf32>
      %163 = vector.extract_strided_slice %142 {offsets = [4, 0], sizes = [16, 128], strides = [1, 1]} : vector<20x128xf32> to vector<16x128xf32>
      %164 = vector.extract_strided_slice %0 {offsets = [19, 0], sizes = [1, 128], strides = [1, 1]} : vector<25x128xf32> to vector<1x128xf32>
      %165 = vector.broadcast %164 : vector<1x128xf32> to vector<16x128xf32>
      %166 = arith.mulf %163, %165 : vector<16x128xf32>
      %167 = arith.addf %162, %166 : vector<16x128xf32>
      %c4_i32 = arith.constant 4 : i32
      %168 = arith.addi %arg15, %c4_i32 : i32
      %c0_61 = arith.constant 0 : index
      %169 = arith.index_cast %168 : i32 to index
      %c0_62 = arith.constant 0 : index
      %c0_63 = arith.constant 0 : index
      %170 = vector.load %arg1[%c0_61, %169, %c0_62, %c0_63] : memref<1x20x20x128xf32, #tpu.memory_space<vmem>>, vector<1x1x20x128xf32>
      %171 = vector.shape_cast %170 : vector<1x1x20x128xf32> to vector<20x128xf32>
      %172 = vector.extract_strided_slice %171 {offsets = [0, 0], sizes = [16, 128], strides = [1, 1]} : vector<20x128xf32> to vector<16x128xf32>
      %173 = vector.extract_strided_slice %0 {offsets = [20, 0], sizes = [1, 128], strides = [1, 1]} : vector<25x128xf32> to vector<1x128xf32>
      %174 = vector.broadcast %173 : vector<1x128xf32> to vector<16x128xf32>
      %175 = arith.mulf %172, %174 : vector<16x128xf32>
      %176 = arith.addf %167, %175 : vector<16x128xf32>
      %177 = vector.extract_strided_slice %171 {offsets = [1, 0], sizes = [16, 128], strides = [1, 1]} : vector<20x128xf32> to vector<16x128xf32>
      %178 = vector.extract_strided_slice %0 {offsets = [21, 0], sizes = [1, 128], strides = [1, 1]} : vector<25x128xf32> to vector<1x128xf32>
      %179 = vector.broadcast %178 : vector<1x128xf32> to vector<16x128xf32>
      %180 = arith.mulf %177, %179 : vector<16x128xf32>
      %181 = arith.addf %176, %180 : vector<16x128xf32>
      %182 = vector.extract_strided_slice %171 {offsets = [2, 0], sizes = [16, 128], strides = [1, 1]} : vector<20x128xf32> to vector<16x128xf32>
      %183 = vector.extract_strided_slice %0 {offsets = [22, 0], sizes = [1, 128], strides = [1, 1]} : vector<25x128xf32> to vector<1x128xf32>
      %184 = vector.broadcast %183 : vector<1x128xf32> to vector<16x128xf32>
      %185 = arith.mulf %182, %184 : vector<16x128xf32>
      %186 = arith.addf %181, %185 : vector<16x128xf32>
      %187 = vector.extract_strided_slice %171 {offsets = [3, 0], sizes = [16, 128], strides = [1, 1]} : vector<20x128xf32> to vector<16x128xf32>
      %188 = vector.extract_strided_slice %0 {offsets = [23, 0], sizes = [1, 128], strides = [1, 1]} : vector<25x128xf32> to vector<1x128xf32>
      %189 = vector.broadcast %188 : vector<1x128xf32> to vector<16x128xf32>
      %190 = arith.mulf %187, %189 : vector<16x128xf32>
      %191 = arith.addf %186, %190 : vector<16x128xf32>
      %192 = vector.extract_strided_slice %171 {offsets = [4, 0], sizes = [16, 128], strides = [1, 1]} : vector<20x128xf32> to vector<16x128xf32>
      %193 = vector.extract_strided_slice %0 {offsets = [24, 0], sizes = [1, 128], strides = [1, 1]} : vector<25x128xf32> to vector<1x128xf32>
      %194 = vector.broadcast %193 : vector<1x128xf32> to vector<16x128xf32>
      %195 = arith.mulf %192, %194 : vector<16x128xf32>
      %196 = arith.addf %191, %195 : vector<16x128xf32>
      %197 = arith.index_cast %arg15 : i32 to index
      %c9 = arith.constant 9 : index
      %c0_64 = arith.constant 0 : index
      %198 = vector.load %arg13[%197, %c9, %c0_64] : memref<16x34x128xf32, #tpu.memory_space<vmem>>, vector<1x16x128xf32>
      %199 = vector.shape_cast %198 : vector<1x16x128xf32> to vector<16x128xf32>
      %200 = vector.shape_cast %196 : vector<16x128xf32> to vector<1x16x128xf32>
      tpu.vector_store %arg13[%197, %c9, %c0_64], %200 {strides = array<i32>} : memref<16x34x128xf32, #tpu.memory_space<vmem>>, vector<1x16x128xf32>,
    }
    %c16_i32_9 = arith.constant 16 : i32
    %c0_10 = arith.constant 0 : index
    %c0_11 = arith.constant 0 : index
    %7 = vector.load %arg4[%c0_10, %c0_11] : memref<49x128xf32, #tpu.memory_space<vmem>>, vector<49x128xf32>
    %c0_12 = arith.constant 0 : index
    %c0_13 = arith.constant 0 : index
    %8 = vector.load %arg5[%c0_12, %c0_13] : memref<1x128xf32, #tpu.memory_space<vmem>>, vector<1x128xf32>
    %c0_i32_14 = arith.constant 0 : i32
    %c16_i32_15 = arith.constant 16 : i32
    %9 = arith.addi %c0_i32_14, %c16_i32_15 : i32
    %c1_i32_16 = arith.constant 1 : i32
    scf.for %arg15 = %c0_i32_14 to %9 step %c1_i32_16  : i32 {
      %50 = vector.shape_cast %8 : vector<1x128xf32> to vector<1x128xf32>
      %51 = vector.broadcast %50 : vector<1x128xf32> to vector<16x128xf32>
      %c0_i32_47 = arith.constant 0 : i32
      %52 = arith.addi %arg15, %c0_i32_47 : i32
      %c9_i32 = arith.constant 9 : i32
      %53 = arith.subi %52, %c9_i32 : i32
      %c0_i32_48 = arith.constant 0 : i32
      %54 = arith.cmpi sge, %53, %c0_i32_48 : i32
      %c16_i32_49 = arith.constant 16 : i32
      %55 = arith.cmpi slt, %53, %c16_i32_49 : i32
      %56 = arith.andi %54, %55 : i1
      %57 = arith.extui %56 : i1 to i32
      %58 = arith.sitofp %57 : i32 to f32
      %c0_i32_50 = arith.constant 0 : i32
      %c15_i32 = arith.constant 15 : i32
      %59 = arith.maxsi %c0_i32_50, %53 : i32
      %60 = arith.minsi %c15_i32, %59 : i32
      %61 = arith.index_cast %60 : i32 to index
      %c0_51 = arith.constant 0 : index
      %c0_52 = arith.constant 0 : index
      %62 = vector.load %arg13[%61, %c0_51, %c0_52] : memref<16x34x128xf32, #tpu.memory_space<vmem>>, vector<1x34x128xf32>
      %63 = vector.shape_cast %62 : vector<1x34x128xf32> to vector<34x128xf32>
      %cst_53 = arith.constant 0.000000e+00 : f32
      %64 = vector.broadcast %cst_53 : f32 to vector<16x128xf32>
      %65 = vector.extract_strided_slice %63 {offsets = [0, 0], sizes = [16, 128], strides = [1, 1]} : vector<34x128xf32> to vector<16x128xf32>
      %66 = vector.extract_strided_slice %7 {offsets = [0, 0], sizes = [1, 128], strides = [1, 1]} : vector<49x128xf32> to vector<1x128xf32>
      %67 = vector.broadcast %66 : vector<1x128xf32> to vector<16x128xf32>
      %68 = arith.mulf %65, %67 : vector<16x128xf32>
      %69 = arith.addf %64, %68 : vector<16x128xf32>
      %70 = vector.extract_strided_slice %63 {offsets = [3, 0], sizes = [16, 128], strides = [1, 1]} : vector<34x128xf32> to vector<16x128xf32>
      %71 = vector.extract_strided_slice %7 {offsets = [1, 0], sizes = [1, 128], strides = [1, 1]} : vector<49x128xf32> to vector<1x128xf32>
      %72 = vector.broadcast %71 : vector<1x128xf32> to vector<16x128xf32>
      %73 = arith.mulf %70, %72 : vector<16x128xf32>
      %74 = arith.addf %69, %73 : vector<16x128xf32>
      %75 = vector.extract_strided_slice %63 {offsets = [6, 0], sizes = [16, 128], strides = [1, 1]} : vector<34x128xf32> to vector<16x128xf32>
      %76 = vector.extract_strided_slice %7 {offsets = [2, 0], sizes = [1, 128], strides = [1, 1]} : vector<49x128xf32> to vector<1x128xf32>
      %77 = vector.broadcast %76 : vector<1x128xf32> to vector<16x128xf32>
      %78 = arith.mulf %75, %77 : vector<16x128xf32>
      %79 = arith.addf %74, %78 : vector<16x128xf32>
      %80 = vector.extract_strided_slice %63 {offsets = [9, 0], sizes = [16, 128], strides = [1, 1]} : vector<34x128xf32> to vector<16x128xf32>
      %81 = vector.extract_strided_slice %7 {offsets = [3, 0], sizes = [1, 128], strides = [1, 1]} : vector<49x128xf32> to vector<1x128xf32>
      %82 = vector.broadcast %81 : vector<1x128xf32> to vector<16x128xf32>
      %83 = arith.mulf %80, %82 : vector<16x128xf32>
      %84 = arith.addf %79, %83 : vector<16x128xf32>
      %85 = vector.extract_strided_slice %63 {offsets = [12, 0], sizes = [16, 128], strides = [1, 1]} : vector<34x128xf32> to vector<16x128xf32>
      %86 = vector.extract_strided_slice %7 {offsets = [4, 0], sizes = [1, 128], strides = [1, 1]} : vector<49x128xf32> to vector<1x128xf32>
      %87 = vector.broadcast %86 : vector<1x128xf32> to vector<16x128xf32>
      %88 = arith.mulf %85, %87 : vector<16x128xf32>
      %89 = arith.addf %84, %88 : vector<16x128xf32>
      %90 = vector.extract_strided_slice %63 {offsets = [15, 0], sizes = [16, 128], strides = [1, 1]} : vector<34x128xf32> to vector<16x128xf32>
      %91 = vector.extract_strided_slice %7 {offsets = [5, 0], sizes = [1, 128], strides = [1, 1]} : vector<49x128xf32> to vector<1x128xf32>
      %92 = vector.broadcast %91 : vector<1x128xf32> to vector<16x128xf32>
      %93 = arith.mulf %90, %92 : vector<16x128xf32>
      %94 = arith.addf %89, %93 : vector<16x128xf32>
      %95 = vector.extract_strided_slice %63 {offsets = [18, 0], sizes = [16, 128], strides = [1, 1]} : vector<34x128xf32> to vector<16x128xf32>
      %96 = vector.extract_strided_slice %7 {offsets = [6, 0], sizes = [1, 128], strides = [1, 1]} : vector<49x128xf32> to vector<1x128xf32>
      %97 = vector.broadcast %96 : vector<1x128xf32> to vector<16x128xf32>
      %98 = arith.mulf %95, %97 : vector<16x128xf32>
      %99 = arith.addf %94, %98 : vector<16x128xf32>
      %100 = vector.broadcast %58 : f32 to vector<16x128xf32>
      %101 = arith.mulf %99, %100 : vector<16x128xf32>
      %102 = arith.addf %51, %101 : vector<16x128xf32>
      %c3_i32 = arith.constant 3 : i32
      %103 = arith.addi %arg15, %c3_i32 : i32
      %c9_i32_54 = arith.constant 9 : i32
      %104 = arith.subi %103, %c9_i32_54 : i32
      %c0_i32_55 = arith.constant 0 : i32
      %105 = arith.cmpi sge, %104, %c0_i32_55 : i32
      %c16_i32_56 = arith.constant 16 : i32
      %106 = arith.cmpi slt, %104, %c16_i32_56 : i32
      %107 = arith.andi %105, %106 : i1
      %108 = arith.extui %107 : i1 to i32
      %109 = arith.sitofp %108 : i32 to f32
      %c0_i32_57 = arith.constant 0 : i32
      %c15_i32_58 = arith.constant 15 : i32
      %110 = arith.maxsi %c0_i32_57, %104 : i32
      %111 = arith.minsi %c15_i32_58, %110 : i32
      %112 = arith.index_cast %111 : i32 to index
      %c0_59 = arith.constant 0 : index
      %c0_60 = arith.constant 0 : index
      %113 = vector.load %arg13[%112, %c0_59, %c0_60] : memref<16x34x128xf32, #tpu.memory_space<vmem>>, vector<1x34x128xf32>
      %114 = vector.shape_cast %113 : vector<1x34x128xf32> to vector<34x128xf32>
      %cst_61 = arith.constant 0.000000e+00 : f32
      %115 = vector.broadcast %cst_61 : f32 to vector<16x128xf32>
      %116 = vector.extract_strided_slice %114 {offsets = [0, 0], sizes = [16, 128], strides = [1, 1]} : vector<34x128xf32> to vector<16x128xf32>
      %117 = vector.extract_strided_slice %7 {offsets = [7, 0], sizes = [1, 128], strides = [1, 1]} : vector<49x128xf32> to vector<1x128xf32>
      %118 = vector.broadcast %117 : vector<1x128xf32> to vector<16x128xf32>
      %119 = arith.mulf %116, %118 : vector<16x128xf32>
      %120 = arith.addf %115, %119 : vector<16x128xf32>
      %121 = vector.extract_strided_slice %114 {offsets = [3, 0], sizes = [16, 128], strides = [1, 1]} : vector<34x128xf32> to vector<16x128xf32>
      %122 = vector.extract_strided_slice %7 {offsets = [8, 0], sizes = [1, 128], strides = [1, 1]} : vector<49x128xf32> to vector<1x128xf32>
      %123 = vector.broadcast %122 : vector<1x128xf32> to vector<16x128xf32>
      %124 = arith.mulf %121, %123 : vector<16x128xf32>
      %125 = arith.addf %120, %124 : vector<16x128xf32>
      %126 = vector.extract_strided_slice %114 {offsets = [6, 0], sizes = [16, 128], strides = [1, 1]} : vector<34x128xf32> to vector<16x128xf32>
      %127 = vector.extract_strided_slice %7 {offsets = [9, 0], sizes = [1, 128], strides = [1, 1]} : vector<49x128xf32> to vector<1x128xf32>
      %128 = vector.broadcast %127 : vector<1x128xf32> to vector<16x128xf32>
      %129 = arith.mulf %126, %128 : vector<16x128xf32>
      %130 = arith.addf %125, %129 : vector<16x128xf32>
      %131 = vector.extract_strided_slice %114 {offsets = [9, 0], sizes = [16, 128], strides = [1, 1]} : vector<34x128xf32> to vector<16x128xf32>
      %132 = vector.extract_strided_slice %7 {offsets = [10, 0], sizes = [1, 128], strides = [1, 1]} : vector<49x128xf32> to vector<1x128xf32>
      %133 = vector.broadcast %132 : vector<1x128xf32> to vector<16x128xf32>
      %134 = arith.mulf %131, %133 : vector<16x128xf32>
      %135 = arith.addf %130, %134 : vector<16x128xf32>
      %136 = vector.extract_strided_slice %114 {offsets = [12, 0], sizes = [16, 128], strides = [1, 1]} : vector<34x128xf32> to vector<16x128xf32>
      %137 = vector.extract_strided_slice %7 {offsets = [11, 0], sizes = [1, 128], strides = [1, 1]} : vector<49x128xf32> to vector<1x128xf32>
      %138 = vector.broadcast %137 : vector<1x128xf32> to vector<16x128xf32>
      %139 = arith.mulf %136, %138 : vector<16x128xf32>
      %140 = arith.addf %135, %139 : vector<16x128xf32>
      %141 = vector.extract_strided_slice %114 {offsets = [15, 0], sizes = [16, 128], strides = [1, 1]} : vector<34x128xf32> to vector<16x128xf32>
      %142 = vector.extract_strided_slice %7 {offsets = [12, 0], sizes = [1, 128], strides = [1, 1]} : vector<49x128xf32> to vector<1x128xf32>
      %143 = vector.broadcast %142 : vector<1x128xf32> to vector<16x128xf32>
      %144 = arith.mulf %141, %143 : vector<16x128xf32>
      %145 = arith.addf %140, %144 : vector<16x128xf32>
      %146 = vector.extract_strided_slice %114 {offsets = [18, 0], sizes = [16, 128], strides = [1, 1]} : vector<34x128xf32> to vector<16x128xf32>
      %147 = vector.extract_strided_slice %7 {offsets = [13, 0], sizes = [1, 128], strides = [1, 1]} : vector<49x128xf32> to vector<1x128xf32>
      %148 = vector.broadcast %147 : vector<1x128xf32> to vector<16x128xf32>
      %149 = arith.mulf %146, %148 : vector<16x128xf32>
      %150 = arith.addf %145, %149 : vector<16x128xf32>
      %151 = vector.broadcast %109 : f32 to vector<16x128xf32>
      %152 = arith.mulf %150, %151 : vector<16x128xf32>
      %153 = arith.addf %102, %152 : vector<16x128xf32>
      %c6_i32 = arith.constant 6 : i32
      %154 = arith.addi %arg15, %c6_i32 : i32
      %c9_i32_62 = arith.constant 9 : i32
      %155 = arith.subi %154, %c9_i32_62 : i32
      %c0_i32_63 = arith.constant 0 : i32
      %156 = arith.cmpi sge, %155, %c0_i32_63 : i32
      %c16_i32_64 = arith.constant 16 : i32
      %157 = arith.cmpi slt, %155, %c16_i32_64 : i32
      %158 = arith.andi %156, %157 : i1
      %159 = arith.extui %158 : i1 to i32
      %160 = arith.sitofp %159 : i32 to f32
      %c0_i32_65 = arith.constant 0 : i32
      %c15_i32_66 = arith.constant 15 : i32
      %161 = arith.maxsi %c0_i32_65, %155 : i32
      %162 = arith.minsi %c15_i32_66, %161 : i32
      %163 = arith.index_cast %162 : i32 to index
      %c0_67 = arith.constant 0 : index
      %c0_68 = arith.constant 0 : index
      %164 = vector.load %arg13[%163, %c0_67, %c0_68] : memref<16x34x128xf32, #tpu.memory_space<vmem>>, vector<1x34x128xf32>
      %165 = vector.shape_cast %164 : vector<1x34x128xf32> to vector<34x128xf32>
      %cst_69 = arith.constant 0.000000e+00 : f32
      %166 = vector.broadcast %cst_69 : f32 to vector<16x128xf32>
      %167 = vector.extract_strided_slice %165 {offsets = [0, 0], sizes = [16, 128], strides = [1, 1]} : vector<34x128xf32> to vector<16x128xf32>
      %168 = vector.extract_strided_slice %7 {offsets = [14, 0], sizes = [1, 128], strides = [1, 1]} : vector<49x128xf32> to vector<1x128xf32>
      %169 = vector.broadcast %168 : vector<1x128xf32> to vector<16x128xf32>
      %170 = arith.mulf %167, %169 : vector<16x128xf32>
      %171 = arith.addf %166, %170 : vector<16x128xf32>
      %172 = vector.extract_strided_slice %165 {offsets = [3, 0], sizes = [16, 128], strides = [1, 1]} : vector<34x128xf32> to vector<16x128xf32>
      %173 = vector.extract_strided_slice %7 {offsets = [15, 0], sizes = [1, 128], strides = [1, 1]} : vector<49x128xf32> to vector<1x128xf32>
      %174 = vector.broadcast %173 : vector<1x128xf32> to vector<16x128xf32>
      %175 = arith.mulf %172, %174 : vector<16x128xf32>
      %176 = arith.addf %171, %175 : vector<16x128xf32>
      %177 = vector.extract_strided_slice %165 {offsets = [6, 0], sizes = [16, 128], strides = [1, 1]} : vector<34x128xf32> to vector<16x128xf32>
      %178 = vector.extract_strided_slice %7 {offsets = [16, 0], sizes = [1, 128], strides = [1, 1]} : vector<49x128xf32> to vector<1x128xf32>
      %179 = vector.broadcast %178 : vector<1x128xf32> to vector<16x128xf32>
      %180 = arith.mulf %177, %179 : vector<16x128xf32>
      %181 = arith.addf %176, %180 : vector<16x128xf32>
      %182 = vector.extract_strided_slice %165 {offsets = [9, 0], sizes = [16, 128], strides = [1, 1]} : vector<34x128xf32> to vector<16x128xf32>
      %183 = vector.extract_strided_slice %7 {offsets = [17, 0], sizes = [1, 128], strides = [1, 1]} : vector<49x128xf32> to vector<1x128xf32>
      %184 = vector.broadcast %183 : vector<1x128xf32> to vector<16x128xf32>
      %185 = arith.mulf %182, %184 : vector<16x128xf32>
      %186 = arith.addf %181, %185 : vector<16x128xf32>
      %187 = vector.extract_strided_slice %165 {offsets = [12, 0], sizes = [16, 128], strides = [1, 1]} : vector<34x128xf32> to vector<16x128xf32>
      %188 = vector.extract_strided_slice %7 {offsets = [18, 0], sizes = [1, 128], strides = [1, 1]} : vector<49x128xf32> to vector<1x128xf32>
      %189 = vector.broadcast %188 : vector<1x128xf32> to vector<16x128xf32>
      %190 = arith.mulf %187, %189 : vector<16x128xf32>
      %191 = arith.addf %186, %190 : vector<16x128xf32>
      %192 = vector.extract_strided_slice %165 {offsets = [15, 0], sizes = [16, 128], strides = [1, 1]} : vector<34x128xf32> to vector<16x128xf32>
      %193 = vector.extract_strided_slice %7 {offsets = [19, 0], sizes = [1, 128], strides = [1, 1]} : vector<49x128xf32> to vector<1x128xf32>
      %194 = vector.broadcast %193 : vector<1x128xf32> to vector<16x128xf32>
      %195 = arith.mulf %192, %194 : vector<16x128xf32>
      %196 = arith.addf %191, %195 : vector<16x128xf32>
      %197 = vector.extract_strided_slice %165 {offsets = [18, 0], sizes = [16, 128], strides = [1, 1]} : vector<34x128xf32> to vector<16x128xf32>
      %198 = vector.extract_strided_slice %7 {offsets = [20, 0], sizes = [1, 128], strides = [1, 1]} : vector<49x128xf32> to vector<1x128xf32>
      %199 = vector.broadcast %198 : vector<1x128xf32> to vector<16x128xf32>
      %200 = arith.mulf %197, %199 : vector<16x128xf32>
      %201 = arith.addf %196, %200 : vector<16x128xf32>
      %202 = vector.broadcast %160 : f32 to vector<16x128xf32>
      %203 = arith.mulf %201, %202 : vector<16x128xf32>
      %204 = arith.addf %153, %203 : vector<16x128xf32>
      %c9_i32_70 = arith.constant 9 : i32
      %205 = arith.addi %arg15, %c9_i32_70 : i32
      %c9_i32_71 = arith.constant 9 : i32
      %206 = arith.subi %205, %c9_i32_71 : i32
      %c0_i32_72 = arith.constant 0 : i32
      %207 = arith.cmpi sge, %206, %c0_i32_72 : i32
      %c16_i32_73 = arith.constant 16 : i32
      %208 = arith.cmpi slt, %206, %c16_i32_73 : i32
      %209 = arith.andi %207, %208 : i1
      %210 = arith.extui %209 : i1 to i32
      %211 = arith.sitofp %210 : i32 to f32
      %c0_i32_74 = arith.constant 0 : i32
      %c15_i32_75 = arith.constant 15 : i32
      %212 = arith.maxsi %c0_i32_74, %206 : i32
      %213 = arith.minsi %c15_i32_75, %212 : i32
      %214 = arith.index_cast %213 : i32 to index
      %c0_76 = arith.constant 0 : index
      %c0_77 = arith.constant 0 : index
      %215 = vector.load %arg13[%214, %c0_76, %c0_77] : memref<16x34x128xf32, #tpu.memory_space<vmem>>, vector<1x34x128xf32>
      %216 = vector.shape_cast %215 : vector<1x34x128xf32> to vector<34x128xf32>
      %cst_78 = arith.constant 0.000000e+00 : f32
      %217 = vector.broadcast %cst_78 : f32 to vector<16x128xf32>
      %218 = vector.extract_strided_slice %216 {offsets = [0, 0], sizes = [16, 128], strides = [1, 1]} : vector<34x128xf32> to vector<16x128xf32>
      %219 = vector.extract_strided_slice %7 {offsets = [21, 0], sizes = [1, 128], strides = [1, 1]} : vector<49x128xf32> to vector<1x128xf32>
      %220 = vector.broadcast %219 : vector<1x128xf32> to vector<16x128xf32>
      %221 = arith.mulf %218, %220 : vector<16x128xf32>
      %222 = arith.addf %217, %221 : vector<16x128xf32>
      %223 = vector.extract_strided_slice %216 {offsets = [3, 0], sizes = [16, 128], strides = [1, 1]} : vector<34x128xf32> to vector<16x128xf32>
      %224 = vector.extract_strided_slice %7 {offsets = [22, 0], sizes = [1, 128], strides = [1, 1]} : vector<49x128xf32> to vector<1x128xf32>
      %225 = vector.broadcast %224 : vector<1x128xf32> to vector<16x128xf32>
      %226 = arith.mulf %223, %225 : vector<16x128xf32>
      %227 = arith.addf %222, %226 : vector<16x128xf32>
      %228 = vector.extract_strided_slice %216 {offsets = [6, 0], sizes = [16, 128], strides = [1, 1]} : vector<34x128xf32> to vector<16x128xf32>
      %229 = vector.extract_strided_slice %7 {offsets = [23, 0], sizes = [1, 128], strides = [1, 1]} : vector<49x128xf32> to vector<1x128xf32>
      %230 = vector.broadcast %229 : vector<1x128xf32> to vector<16x128xf32>
      %231 = arith.mulf %228, %230 : vector<16x128xf32>
      %232 = arith.addf %227, %231 : vector<16x128xf32>
      %233 = vector.extract_strided_slice %216 {offsets = [9, 0], sizes = [16, 128], strides = [1, 1]} : vector<34x128xf32> to vector<16x128xf32>
      %234 = vector.extract_strided_slice %7 {offsets = [24, 0], sizes = [1, 128], strides = [1, 1]} : vector<49x128xf32> to vector<1x128xf32>
      %235 = vector.broadcast %234 : vector<1x128xf32> to vector<16x128xf32>
      %236 = arith.mulf %233, %235 : vector<16x128xf32>
      %237 = arith.addf %232, %236 : vector<16x128xf32>
      %238 = vector.extract_strided_slice %216 {offsets = [12, 0], sizes = [16, 128], strides = [1, 1]} : vector<34x128xf32> to vector<16x128xf32>
      %239 = vector.extract_strided_slice %7 {offsets = [25, 0], sizes = [1, 128], strides = [1, 1]} : vector<49x128xf32> to vector<1x128xf32>
      %240 = vector.broadcast %239 : vector<1x128xf32> to vector<16x128xf32>
      %241 = arith.mulf %238, %240 : vector<16x128xf32>
      %242 = arith.addf %237, %241 : vector<16x128xf32>
      %243 = vector.extract_strided_slice %216 {offsets = [15, 0], sizes = [16, 128], strides = [1, 1]} : vector<34x128xf32> to vector<16x128xf32>
      %244 = vector.extract_strided_slice %7 {offsets = [26, 0], sizes = [1, 128], strides = [1, 1]} : vector<49x128xf32> to vector<1x128xf32>
      %245 = vector.broadcast %244 : vector<1x128xf32> to vector<16x128xf32>
      %246 = arith.mulf %243, %245 : vector<16x128xf32>
      %247 = arith.addf %242, %246 : vector<16x128xf32>
      %248 = vector.extract_strided_slice %216 {offsets = [18, 0], sizes = [16, 128], strides = [1, 1]} : vector<34x128xf32> to vector<16x128xf32>
      %249 = vector.extract_strided_slice %7 {offsets = [27, 0], sizes = [1, 128], strides = [1, 1]} : vector<49x128xf32> to vector<1x128xf32>
      %250 = vector.broadcast %249 : vector<1x128xf32> to vector<16x128xf32>
      %251 = arith.mulf %248, %250 : vector<16x128xf32>
      %252 = arith.addf %247, %251 : vector<16x128xf32>
      %253 = vector.broadcast %211 : f32 to vector<16x128xf32>
      %254 = arith.mulf %252, %253 : vector<16x128xf32>
      %255 = arith.addf %204, %254 : vector<16x128xf32>
      %c12_i32 = arith.constant 12 : i32
      %256 = arith.addi %arg15, %c12_i32 : i32
      %c9_i32_79 = arith.constant 9 : i32
      %257 = arith.subi %256, %c9_i32_79 : i32
      %c0_i32_80 = arith.constant 0 : i32
      %258 = arith.cmpi sge, %257, %c0_i32_80 : i32
      %c16_i32_81 = arith.constant 16 : i32
      %259 = arith.cmpi slt, %257, %c16_i32_81 : i32
      %260 = arith.andi %258, %259 : i1
      %261 = arith.extui %260 : i1 to i32
      %262 = arith.sitofp %261 : i32 to f32
      %c0_i32_82 = arith.constant 0 : i32
      %c15_i32_83 = arith.constant 15 : i32
      %263 = arith.maxsi %c0_i32_82, %257 : i32
      %264 = arith.minsi %c15_i32_83, %263 : i32
      %265 = arith.index_cast %264 : i32 to index
      %c0_84 = arith.constant 0 : index
      %c0_85 = arith.constant 0 : index
      %266 = vector.load %arg13[%265, %c0_84, %c0_85] : memref<16x34x128xf32, #tpu.memory_space<vmem>>, vector<1x34x128xf32>
      %267 = vector.shape_cast %266 : vector<1x34x128xf32> to vector<34x128xf32>
      %cst_86 = arith.constant 0.000000e+00 : f32
      %268 = vector.broadcast %cst_86 : f32 to vector<16x128xf32>
      %269 = vector.extract_strided_slice %267 {offsets = [0, 0], sizes = [16, 128], strides = [1, 1]} : vector<34x128xf32> to vector<16x128xf32>
      %270 = vector.extract_strided_slice %7 {offsets = [28, 0], sizes = [1, 128], strides = [1, 1]} : vector<49x128xf32> to vector<1x128xf32>
      %271 = vector.broadcast %270 : vector<1x128xf32> to vector<16x128xf32>
      %272 = arith.mulf %269, %271 : vector<16x128xf32>
      %273 = arith.addf %268, %272 : vector<16x128xf32>
      %274 = vector.extract_strided_slice %267 {offsets = [3, 0], sizes = [16, 128], strides = [1, 1]} : vector<34x128xf32> to vector<16x128xf32>
      %275 = vector.extract_strided_slice %7 {offsets = [29, 0], sizes = [1, 128], strides = [1, 1]} : vector<49x128xf32> to vector<1x128xf32>
      %276 = vector.broadcast %275 : vector<1x128xf32> to vector<16x128xf32>
      %277 = arith.mulf %274, %276 : vector<16x128xf32>
      %278 = arith.addf %273, %277 : vector<16x128xf32>
      %279 = vector.extract_strided_slice %267 {offsets = [6, 0], sizes = [16, 128], strides = [1, 1]} : vector<34x128xf32> to vector<16x128xf32>
      %280 = vector.extract_strided_slice %7 {offsets = [30, 0], sizes = [1, 128], strides = [1, 1]} : vector<49x128xf32> to vector<1x128xf32>
      %281 = vector.broadcast %280 : vector<1x128xf32> to vector<16x128xf32>
      %282 = arith.mulf %279, %281 : vector<16x128xf32>
      %283 = arith.addf %278, %282 : vector<16x128xf32>
      %284 = vector.extract_strided_slice %267 {offsets = [9, 0], sizes = [16, 128], strides = [1, 1]} : vector<34x128xf32> to vector<16x128xf32>
      %285 = vector.extract_strided_slice %7 {offsets = [31, 0], sizes = [1, 128], strides = [1, 1]} : vector<49x128xf32> to vector<1x128xf32>
      %286 = vector.broadcast %285 : vector<1x128xf32> to vector<16x128xf32>
      %287 = arith.mulf %284, %286 : vector<16x128xf32>
      %288 = arith.addf %283, %287 : vector<16x128xf32>
      %289 = vector.extract_strided_slice %267 {offsets = [12, 0], sizes = [16, 128], strides = [1, 1]} : vector<34x128xf32> to vector<16x128xf32>
      %290 = vector.extract_strided_slice %7 {offsets = [32, 0], sizes = [1, 128], strides = [1, 1]} : vector<49x128xf32> to vector<1x128xf32>
      %291 = vector.broadcast %290 : vector<1x128xf32> to vector<16x128xf32>
      %292 = arith.mulf %289, %291 : vector<16x128xf32>
      %293 = arith.addf %288, %292 : vector<16x128xf32>
      %294 = vector.extract_strided_slice %267 {offsets = [15, 0], sizes = [16, 128], strides = [1, 1]} : vector<34x128xf32> to vector<16x128xf32>
      %295 = vector.extract_strided_slice %7 {offsets = [33, 0], sizes = [1, 128], strides = [1, 1]} : vector<49x128xf32> to vector<1x128xf32>
      %296 = vector.broadcast %295 : vector<1x128xf32> to vector<16x128xf32>
      %297 = arith.mulf %294, %296 : vector<16x128xf32>
      %298 = arith.addf %293, %297 : vector<16x128xf32>
      %299 = vector.extract_strided_slice %267 {offsets = [18, 0], sizes = [16, 128], strides = [1, 1]} : vector<34x128xf32> to vector<16x128xf32>
      %300 = vector.extract_strided_slice %7 {offsets = [34, 0], sizes = [1, 128], strides = [1, 1]} : vector<49x128xf32> to vector<1x128xf32>
      %301 = vector.broadcast %300 : vector<1x128xf32> to vector<16x128xf32>
      %302 = arith.mulf %299, %301 : vector<16x128xf32>
      %303 = arith.addf %298, %302 : vector<16x128xf32>
      %304 = vector.broadcast %262 : f32 to vector<16x128xf32>
      %305 = arith.mulf %303, %304 : vector<16x128xf32>
      %306 = arith.addf %255, %305 : vector<16x128xf32>
      %c15_i32_87 = arith.constant 15 : i32
      %307 = arith.addi %arg15, %c15_i32_87 : i32
      %c9_i32_88 = arith.constant 9 : i32
      %308 = arith.subi %307, %c9_i32_88 : i32
      %c0_i32_89 = arith.constant 0 : i32
      %309 = arith.cmpi sge, %308, %c0_i32_89 : i32
      %c16_i32_90 = arith.constant 16 : i32
      %310 = arith.cmpi slt, %308, %c16_i32_90 : i32
      %311 = arith.andi %309, %310 : i1
      %312 = arith.extui %311 : i1 to i32
      %313 = arith.sitofp %312 : i32 to f32
      %c0_i32_91 = arith.constant 0 : i32
      %c15_i32_92 = arith.constant 15 : i32
      %314 = arith.maxsi %c0_i32_91, %308 : i32
      %315 = arith.minsi %c15_i32_92, %314 : i32
      %316 = arith.index_cast %315 : i32 to index
      %c0_93 = arith.constant 0 : index
      %c0_94 = arith.constant 0 : index
      %317 = vector.load %arg13[%316, %c0_93, %c0_94] : memref<16x34x128xf32, #tpu.memory_space<vmem>>, vector<1x34x128xf32>
      %318 = vector.shape_cast %317 : vector<1x34x128xf32> to vector<34x128xf32>
      %cst_95 = arith.constant 0.000000e+00 : f32
      %319 = vector.broadcast %cst_95 : f32 to vector<16x128xf32>
      %320 = vector.extract_strided_slice %318 {offsets = [0, 0], sizes = [16, 128], strides = [1, 1]} : vector<34x128xf32> to vector<16x128xf32>
      %321 = vector.extract_strided_slice %7 {offsets = [35, 0], sizes = [1, 128], strides = [1, 1]} : vector<49x128xf32> to vector<1x128xf32>
      %322 = vector.broadcast %321 : vector<1x128xf32> to vector<16x128xf32>
      %323 = arith.mulf %320, %322 : vector<16x128xf32>
      %324 = arith.addf %319, %323 : vector<16x128xf32>
      %325 = vector.extract_strided_slice %318 {offsets = [3, 0], sizes = [16, 128], strides = [1, 1]} : vector<34x128xf32> to vector<16x128xf32>
      %326 = vector.extract_strided_slice %7 {offsets = [36, 0], sizes = [1, 128], strides = [1, 1]} : vector<49x128xf32> to vector<1x128xf32>
      %327 = vector.broadcast %326 : vector<1x128xf32> to vector<16x128xf32>
      %328 = arith.mulf %325, %327 : vector<16x128xf32>
      %329 = arith.addf %324, %328 : vector<16x128xf32>
      %330 = vector.extract_strided_slice %318 {offsets = [6, 0], sizes = [16, 128], strides = [1, 1]} : vector<34x128xf32> to vector<16x128xf32>
      %331 = vector.extract_strided_slice %7 {offsets = [37, 0], sizes = [1, 128], strides = [1, 1]} : vector<49x128xf32> to vector<1x128xf32>
      %332 = vector.broadcast %331 : vector<1x128xf32> to vector<16x128xf32>
      %333 = arith.mulf %330, %332 : vector<16x128xf32>
      %334 = arith.addf %329, %333 : vector<16x128xf32>
      %335 = vector.extract_strided_slice %318 {offsets = [9, 0], sizes = [16, 128], strides = [1, 1]} : vector<34x128xf32> to vector<16x128xf32>
      %336 = vector.extract_strided_slice %7 {offsets = [38, 0], sizes = [1, 128], strides = [1, 1]} : vector<49x128xf32> to vector<1x128xf32>
      %337 = vector.broadcast %336 : vector<1x128xf32> to vector<16x128xf32>
      %338 = arith.mulf %335, %337 : vector<16x128xf32>
      %339 = arith.addf %334, %338 : vector<16x128xf32>
      %340 = vector.extract_strided_slice %318 {offsets = [12, 0], sizes = [16, 128], strides = [1, 1]} : vector<34x128xf32> to vector<16x128xf32>
      %341 = vector.extract_strided_slice %7 {offsets = [39, 0], sizes = [1, 128], strides = [1, 1]} : vector<49x128xf32> to vector<1x128xf32>
      %342 = vector.broadcast %341 : vector<1x128xf32> to vector<16x128xf32>
      %343 = arith.mulf %340, %342 : vector<16x128xf32>
      %344 = arith.addf %339, %343 : vector<16x128xf32>
      %345 = vector.extract_strided_slice %318 {offsets = [15, 0], sizes = [16, 128], strides = [1, 1]} : vector<34x128xf32> to vector<16x128xf32>
      %346 = vector.extract_strided_slice %7 {offsets = [40, 0], sizes = [1, 128], strides = [1, 1]} : vector<49x128xf32> to vector<1x128xf32>
      %347 = vector.broadcast %346 : vector<1x128xf32> to vector<16x128xf32>
      %348 = arith.mulf %345, %347 : vector<16x128xf32>
      %349 = arith.addf %344, %348 : vector<16x128xf32>
      %350 = vector.extract_strided_slice %318 {offsets = [18, 0], sizes = [16, 128], strides = [1, 1]} : vector<34x128xf32> to vector<16x128xf32>
      %351 = vector.extract_strided_slice %7 {offsets = [41, 0], sizes = [1, 128], strides = [1, 1]} : vector<49x128xf32> to vector<1x128xf32>
      %352 = vector.broadcast %351 : vector<1x128xf32> to vector<16x128xf32>
      %353 = arith.mulf %350, %352 : vector<16x128xf32>
      %354 = arith.addf %349, %353 : vector<16x128xf32>
      %355 = vector.broadcast %313 : f32 to vector<16x128xf32>
      %356 = arith.mulf %354, %355 : vector<16x128xf32>
      %357 = arith.addf %306, %356 : vector<16x128xf32>
      %c18_i32 = arith.constant 18 : i32
      %358 = arith.addi %arg15, %c18_i32 : i32
      %c9_i32_96 = arith.constant 9 : i32
      %359 = arith.subi %358, %c9_i32_96 : i32
      %c0_i32_97 = arith.constant 0 : i32
      %360 = arith.cmpi sge, %359, %c0_i32_97 : i32
      %c16_i32_98 = arith.constant 16 : i32
      %361 = arith.cmpi slt, %359, %c16_i32_98 : i32
      %362 = arith.andi %360, %361 : i1
      %363 = arith.extui %362 : i1 to i32
      %364 = arith.sitofp %363 : i32 to f32
      %c0_i32_99 = arith.constant 0 : i32
      %c15_i32_100 = arith.constant 15 : i32
      %365 = arith.maxsi %c0_i32_99, %359 : i32
      %366 = arith.minsi %c15_i32_100, %365 : i32
      %367 = arith.index_cast %366 : i32 to index
      %c0_101 = arith.constant 0 : index
      %c0_102 = arith.constant 0 : index
      %368 = vector.load %arg13[%367, %c0_101, %c0_102] : memref<16x34x128xf32, #tpu.memory_space<vmem>>, vector<1x34x128xf32>
      %369 = vector.shape_cast %368 : vector<1x34x128xf32> to vector<34x128xf32>
      %cst_103 = arith.constant 0.000000e+00 : f32
      %370 = vector.broadcast %cst_103 : f32 to vector<16x128xf32>
      %371 = vector.extract_strided_slice %369 {offsets = [0, 0], sizes = [16, 128], strides = [1, 1]} : vector<34x128xf32> to vector<16x128xf32>
      %372 = vector.extract_strided_slice %7 {offsets = [42, 0], sizes = [1, 128], strides = [1, 1]} : vector<49x128xf32> to vector<1x128xf32>
      %373 = vector.broadcast %372 : vector<1x128xf32> to vector<16x128xf32>
      %374 = arith.mulf %371, %373 : vector<16x128xf32>
      %375 = arith.addf %370, %374 : vector<16x128xf32>
      %376 = vector.extract_strided_slice %369 {offsets = [3, 0], sizes = [16, 128], strides = [1, 1]} : vector<34x128xf32> to vector<16x128xf32>
      %377 = vector.extract_strided_slice %7 {offsets = [43, 0], sizes = [1, 128], strides = [1, 1]} : vector<49x128xf32> to vector<1x128xf32>
      %378 = vector.broadcast %377 : vector<1x128xf32> to vector<16x128xf32>
      %379 = arith.mulf %376, %378 : vector<16x128xf32>
      %380 = arith.addf %375, %379 : vector<16x128xf32>
      %381 = vector.extract_strided_slice %369 {offsets = [6, 0], sizes = [16, 128], strides = [1, 1]} : vector<34x128xf32> to vector<16x128xf32>
      %382 = vector.extract_strided_slice %7 {offsets = [44, 0], sizes = [1, 128], strides = [1, 1]} : vector<49x128xf32> to vector<1x128xf32>
      %383 = vector.broadcast %382 : vector<1x128xf32> to vector<16x128xf32>
      %384 = arith.mulf %381, %383 : vector<16x128xf32>
      %385 = arith.addf %380, %384 : vector<16x128xf32>
      %386 = vector.extract_strided_slice %369 {offsets = [9, 0], sizes = [16, 128], strides = [1, 1]} : vector<34x128xf32> to vector<16x128xf32>
      %387 = vector.extract_strided_slice %7 {offsets = [45, 0], sizes = [1, 128], strides = [1, 1]} : vector<49x128xf32> to vector<1x128xf32>
      %388 = vector.broadcast %387 : vector<1x128xf32> to vector<16x128xf32>
      %389 = arith.mulf %386, %388 : vector<16x128xf32>
      %390 = arith.addf %385, %389 : vector<16x128xf32>
      %391 = vector.extract_strided_slice %369 {offsets = [12, 0], sizes = [16, 128], strides = [1, 1]} : vector<34x128xf32> to vector<16x128xf32>
      %392 = vector.extract_strided_slice %7 {offsets = [46, 0], sizes = [1, 128], strides = [1, 1]} : vector<49x128xf32> to vector<1x128xf32>
      %393 = vector.broadcast %392 : vector<1x128xf32> to vector<16x128xf32>
      %394 = arith.mulf %391, %393 : vector<16x128xf32>
      %395 = arith.addf %390, %394 : vector<16x128xf32>
      %396 = vector.extract_strided_slice %369 {offsets = [15, 0], sizes = [16, 128], strides = [1, 1]} : vector<34x128xf32> to vector<16x128xf32>
      %397 = vector.extract_strided_slice %7 {offsets = [47, 0], sizes = [1, 128], strides = [1, 1]} : vector<49x128xf32> to vector<1x128xf32>
      %398 = vector.broadcast %397 : vector<1x128xf32> to vector<16x128xf32>
      %399 = arith.mulf %396, %398 : vector<16x128xf32>
      %400 = arith.addf %395, %399 : vector<16x128xf32>
      %401 = vector.extract_strided_slice %369 {offsets = [18, 0], sizes = [16, 128], strides = [1, 1]} : vector<34x128xf32> to vector<16x128xf32>
      %402 = vector.extract_strided_slice %7 {offsets = [48, 0], sizes = [1, 128], strides = [1, 1]} : vector<49x128xf32> to vector<1x128xf32>
      %403 = vector.broadcast %402 : vector<1x128xf32> to vector<16x128xf32>
      %404 = arith.mulf %401, %403 : vector<16x128xf32>
      %405 = arith.addf %400, %404 : vector<16x128xf32>
      %406 = vector.broadcast %364 : f32 to vector<16x128xf32>
      %407 = arith.mulf %405, %406 : vector<16x128xf32>
      %408 = arith.addf %357, %407 : vector<16x128xf32>
      %409 = arith.index_cast %arg15 : i32 to index
      %c0_104 = arith.constant 0 : index
      %c0_105 = arith.constant 0 : index
      %410 = vector.load %arg14[%409, %c0_104, %c0_105] : memref<16x16x128xf32, #tpu.memory_space<vmem>>, vector<1x16x128xf32>
      %411 = vector.shape_cast %410 : vector<1x16x128xf32> to vector<16x128xf32>
      %412 = vector.shape_cast %408 : vector<16x128xf32> to vector<1x16x128xf32>
      tpu.vector_store %arg14[%409, %c0_104, %c0_105], %412 {strides = array<i32>} : memref<16x16x128xf32, #tpu.memory_space<vmem>>, vector<1x16x128xf32>,
    }
    %c16_i32_17 = arith.constant 16 : i32
    %c0_18 = arith.constant 0 : index
    %c2 = arith.constant 2 : index
    %c2_19 = arith.constant 2 : index
    %c0_20 = arith.constant 0 : index
    %10 = vector.load %arg1[%c0_18, %c2, %c2_19, %c0_20] : memref<1x20x20x128xf32, #tpu.memory_space<vmem>>, vector<1x16x16x128xf32>
    %11 = vector.shape_cast %10 : vector<1x16x16x128xf32> to vector<16x16x128xf32>
    %12 = vector.shape_cast %11 : vector<16x16x128xf32> to vector<256x128xf32>
    %c0_21 = arith.constant 0 : index
    %c0_22 = arith.constant 0 : index
    %c0_23 = arith.constant 0 : index
    %13 = vector.load %arg14[%c0_21, %c0_22, %c0_23] : memref<16x16x128xf32, #tpu.memory_space<vmem>>, vector<16x16x128xf32>
    %14 = vector.shape_cast %13 : vector<16x16x128xf32> to vector<256x128xf32>
    %15 = arith.truncf %14 : vector<256x128xf32> to vector<256x128xbf16>
    %c0_24 = arith.constant 0 : index
    %c0_25 = arith.constant 0 : index
    %16 = vector.load %arg6[%c0_24, %c0_25] : memref<128x128xbf16, #tpu.memory_space<vmem>>, vector<128x128xbf16>
    %cst_26 = arith.constant dense<0.000000e+00> : vector<256x128xf32>
    %17 = tpu.matmul %15, %16, %cst_26 {dimension_numbers = #tpu.dot_dimension_numbers<[1], [0], [0], [1], [0, 0, 1, 1], [], []>} : vector<256x128xbf16>, vector<128x128xbf16>, vector<256x128xf32> -> vector<256x128xf32>
    %c0_27 = arith.constant 0 : index
    %c0_28 = arith.constant 0 : index
    %18 = vector.load %arg7[%c0_27, %c0_28] : memref<1x128xf32, #tpu.memory_space<vmem>>, vector<1x128xf32>
    %19 = vector.broadcast %18 : vector<1x128xf32> to vector<256x128xf32>
    %20 = arith.addf %17, %19 : vector<256x128xf32>
    %21 = arith.mulf %12, %20 : vector<256x128xf32>
    %cst_29 = arith.constant dense<0.000000e+00> : vector<128xf32>
    %22 = vector.multi_reduction <add>, %21, %cst_29 [0] : vector<256x128xf32> to vector<128xf32>
    %23 = vector.shape_cast %22 : vector<128xf32> to vector<1x128xf32>
    %cst_30 = arith.constant 2.560000e+02 : f32
    %24 = vector.broadcast %cst_30 : f32 to vector<1x128xf32>
    %25 = arith.divf %23, %24 : vector<1x128xf32>
    %26 = arith.truncf %25 : vector<1x128xf32> to vector<1x128xbf16>
    %c0_31 = arith.constant 0 : index
    %c0_32 = arith.constant 0 : index
    %27 = vector.load %arg8[%c0_31, %c0_32] : memref<128x8xbf16, #tpu.memory_space<vmem>>, vector<128x8xbf16>
    %cst_33 = arith.constant dense<0.000000e+00> : vector<1x8xf32>
    %28 = tpu.matmul %26, %27, %cst_33 {dimension_numbers = #tpu.dot_dimension_numbers<[1], [0], [0], [1], [0, 0, 1, 1], [], []>} : vector<1x128xbf16>, vector<128x8xbf16>, vector<1x8xf32> -> vector<1x8xf32>
    %cst_34 = arith.constant 0.000000e+00 : f32
    %29 = vector.broadcast %cst_34 : f32 to vector<1x8xf32>
    %30 = arith.maximumf %28, %29 : vector<1x8xf32>
    %31 = arith.truncf %30 : vector<1x8xf32> to vector<1x8xbf16>
    %c0_35 = arith.constant 0 : index
    %c0_36 = arith.constant 0 : index
    %32 = vector.load %arg9[%c0_35, %c0_36] : memref<8x128xbf16, #tpu.memory_space<vmem>>, vector<8x128xbf16>
    %cst_37 = arith.constant dense<0.000000e+00> : vector<1x128xf32>
    %33 = tpu.matmul %31, %32, %cst_37 {dimension_numbers = #tpu.dot_dimension_numbers<[1], [0], [0], [1], [0, 0, 1, 1], [], []>} : vector<1x8xbf16>, vector<8x128xbf16>, vector<1x128xf32> -> vector<1x128xf32>
    %34 = arith.negf %33 : vector<1x128xf32>
    %35 = math.exp %34 : vector<1x128xf32>
    %cst_38 = arith.constant 1.000000e+00 : f32
    %36 = vector.broadcast %cst_38 : f32 to vector<1x128xf32>
    %37 = arith.addf %36, %35 : vector<1x128xf32>
    %38 = arith.divf %36, %37 : vector<1x128xf32>
    %39 = vector.broadcast %38 : vector<1x128xf32> to vector<256x128xf32>
    %40 = arith.mulf %21, %39 : vector<256x128xf32>
    %41 = arith.truncf %40 : vector<256x128xf32> to vector<256x128xbf16>
    %c0_39 = arith.constant 0 : index
    %c0_40 = arith.constant 0 : index
    %42 = vector.load %arg10[%c0_39, %c0_40] : memref<128x128xbf16, #tpu.memory_space<vmem>>, vector<128x128xbf16>
    %cst_41 = arith.constant dense<0.000000e+00> : vector<256x128xf32>
    %43 = tpu.matmul %41, %42, %cst_41 {dimension_numbers = #tpu.dot_dimension_numbers<[1], [0], [0], [1], [0, 0, 1, 1], [], []>} : vector<256x128xbf16>, vector<128x128xbf16>, vector<256x128xf32> -> vector<256x128xf32>
    %c0_42 = arith.constant 0 : index
    %c0_43 = arith.constant 0 : index
    %44 = vector.load %arg11[%c0_42, %c0_43] : memref<1x128xf32, #tpu.memory_space<vmem>>, vector<1x128xf32>
    %45 = vector.broadcast %44 : vector<1x128xf32> to vector<256x128xf32>
    %46 = arith.addf %43, %45 : vector<256x128xf32>
    %c0_44 = arith.constant 0 : index
    %c0_45 = arith.constant 0 : index
    %c0_46 = arith.constant 0 : index
    %47 = vector.load %arg12[%c0_44, %c0_45, %c0_46] : memref<1x256x128xf32, #tpu.memory_space<vmem>>, vector<1x256x128xf32>
    %48 = vector.shape_cast %47 : vector<1x256x128xf32> to vector<256x128xf32>
    %49 = vector.shape_cast %46 : vector<256x128xf32> to vector<1x256x128xf32>
    tpu.vector_store %arg12[%c0_44, %c0_45, %c0_46], %49 {strides = array<i32>} : memref<1x256x128xf32, #tpu.memory_space<vmem>>, vector<1x256x128xf32>,
    return
  }
  func.func @transform_0(%arg0: i32) -> (i32, i32, i32, i32) {
    %c0_i32 = arith.constant 0 : i32
    %c0_i32_0 = arith.constant 0 : i32
    %c0_i32_1 = arith.constant 0 : i32
    %c0_i32_2 = arith.constant 0 : i32
    return %arg0, %c0_i32, %c0_i32_0, %c0_i32_1 : i32, i32, i32, i32
  }
  func.func @transform_1(%arg0: i32) -> (i32, i32) {
    %c0_i32 = arith.constant 0 : i32
    %c0_i32_0 = arith.constant 0 : i32
    %c0_i32_1 = arith.constant 0 : i32
    return %c0_i32, %c0_i32_0 : i32, i32
  }
  func.func @transform_2(%arg0: i32) -> (i32, i32) {
    %c0_i32 = arith.constant 0 : i32
    %c0_i32_0 = arith.constant 0 : i32
    %c0_i32_1 = arith.constant 0 : i32
    return %c0_i32, %c0_i32_0 : i32, i32
  }
  func.func @transform_3(%arg0: i32) -> (i32, i32) {
    %c0_i32 = arith.constant 0 : i32
    %c0_i32_0 = arith.constant 0 : i32
    %c0_i32_1 = arith.constant 0 : i32
    return %c0_i32, %c0_i32_0 : i32, i32
  }
  func.func @transform_4(%arg0: i32) -> (i32, i32) {
    %c0_i32 = arith.constant 0 : i32
    %c0_i32_0 = arith.constant 0 : i32
    %c0_i32_1 = arith.constant 0 : i32
    return %c0_i32, %c0_i32_0 : i32, i32
  }
  func.func @transform_5(%arg0: i32) -> (i32, i32) {
    %c0_i32 = arith.constant 0 : i32
    %c0_i32_0 = arith.constant 0 : i32
    %c0_i32_1 = arith.constant 0 : i32
    return %c0_i32, %c0_i32_0 : i32, i32
  }
  func.func @transform_6(%arg0: i32) -> (i32, i32) {
    %c0_i32 = arith.constant 0 : i32
    %c0_i32_0 = arith.constant 0 : i32
    %c0_i32_1 = arith.constant 0 : i32
    return %c0_i32, %c0_i32_0 : i32, i32
  }
  func.func @transform_7(%arg0: i32) -> (i32, i32) {
    %c0_i32 = arith.constant 0 : i32
    %c0_i32_0 = arith.constant 0 : i32
    %c0_i32_1 = arith.constant 0 : i32
    return %c0_i32, %c0_i32_0 : i32, i32
  }
  func.func @transform_8(%arg0: i32) -> (i32, i32) {
    %c0_i32 = arith.constant 0 : i32
    %c0_i32_0 = arith.constant 0 : i32
    %c0_i32_1 = arith.constant 0 : i32
    return %c0_i32, %c0_i32_0 : i32, i32
  }
  func.func @transform_9(%arg0: i32) -> (i32, i32) {
    %c0_i32 = arith.constant 0 : i32
    %c0_i32_0 = arith.constant 0 : i32
    %c0_i32_1 = arith.constant 0 : i32
    return %c0_i32, %c0_i32_0 : i32, i32
  }
  func.func @transform_10(%arg0: i32) -> (i32, i32) {
    %c0_i32 = arith.constant 0 : i32
    %c0_i32_0 = arith.constant 0 : i32
    %c0_i32_1 = arith.constant 0 : i32
    return %c0_i32, %c0_i32_0 : i32, i32
  }
  func.func @transform_11(%arg0: i32) -> (i32, i32, i32) {
    %c0_i32 = arith.constant 0 : i32
    %c0_i32_0 = arith.constant 0 : i32
    %c0_i32_1 = arith.constant 0 : i32
    return %arg0, %c0_i32, %c0_i32_0 : i32, i32, i32
  }
}

</mosaic_0001>

<bundles_post_ra>
// kernel: tpu_custom_call.1
= control target key start
LH: loop header
LB: loop body
LE: loop exit
PB: predicated region body
PF: predicated region fallthrough
CT: control target
= control target key end

     0   :  { %s4283_s0 = inlined_call_operand.vmem [shape: f32[2,20,20,128], index: 0, kind: input, shape index: {}]   ;;  %s4284_s1 = inlined_call_operand.vmem [shape: f32[25,128], index: 1, kind: input, shape index: {}]   ;;  %s4285_s2 = inlined_call_operand.vmem [shape: f32[1,128], index: 2, kind: input, shape index: {}]   ;;  %s4286_s3 = inlined_call_operand.vmem [shape: f32[49,128], index: 3, kind: input, shape index: {}]   ;;  %s4287_s4 = inlined_call_operand.vmem [shape: f32[1,128], index: 4, kind: input, shape index: {}]   ;;  %s4288_s5 = inlined_call_operand.vmem [shape: bf16[128,128], index: 5, kind: input, shape index: {}]   ;;  %s4289_s6 = inlined_call_operand.vmem [shape: f32[1,128], index: 6, kind: input, shape index: {}]   ;;  %s4290_s7 = inlined_call_operand.vmem [shape: bf16[128,8], index: 7, kind: input, shape index: {}]   ;;  %s4291_s8 = inlined_call_operand.vmem [shape: bf16[8,128], index: 8, kind: input, shape index: {}]   ;;  %s4292_s9 = inlined_call_operand.vmem [shape: bf16[128,128], index: 9, kind: input, shape index: {}]   ;;  %s4293_s10 = inlined_call_operand.vmem [shape: f32[1,128], index: 10, kind: input, shape index: {}]   ;;  %s4294_s11 = inlined_call_operand.hbm [shape: f32[2,256,128], index: 11, kind: output, shape index: {}]  }
   0x1   :  { %4296 = sst [smem:[#allocation7_spill]] %s4283_s0 }
   0x2   :  { %4297 = sst [smem:[#allocation8_spill]] %s4284_s1 }
   0x3   :  { %16 = vsyncpa [#allocation5], 0 }
   0x4   :  { %18 = vsyncpa [#allocation5 + $0x1], 0  ;;  %s2997_s17 = smov 0   ;;  %s2999_s18 = smov 0  }
   0x5   :  { %s3001_s19 = smov 0   ;;  %s3003_s20 = smov 0  }
   0x6 LB: > { %s3018_s21 = sadd.s32 4294967295, %s2923_s20   ;;  %s2534_s22 = sadd.s32 4294967294, %s2923_s20   ;;  %s2923_s20 = sphi %s3003_s20, %s4312_s20   ;;  %s2919_s19 = sphi %s3001_s19, %s4311_s19   ;;  %s2915_s18 = sphi %s2999_s18, %s4310_s18   ;;  %s2911_s17 = sphi %s2997_s17, %s4309_s17  }
   0x7   : > { %s3022_s23 = sadd.s32 1, %s2923_s20   ;;  %s267_s24 = sadd.s32 1, %s2919_s19 }
   0x8   : > { %s264_s25 = ssub.s32 %s2923_s20, %s3022_s23  ;;  %p277_p0 = scmp.ne.s32.totalorder %s2919_s19, %s2915_s18 }
   0x9   : > { %p265_p1 = scmp.eq.s32.totalorder %s264_s25, 0  ;;  %p278_p2 = scmp.eq.s32.totalorder %s3018_s21, 1 }
   0xa   : > { %p283_p3 = scmp.ne.s32.totalorder %s2915_s18, %s2911_s17  ;;  %p284_p4 = scmp.eq.s32.totalorder %s2534_s22, 1 }
   0xb   : > { %s3033_s26 = scalar_select %p265_p1, %s2919_s19, %s267_s24  }
   0xc   : > { %p3035_p5 = por %p278_p2, %p277_p0  ;;  %p3039_p6 = por %p284_p4, %p283_p3 }
   0xd   : > { %p2537_p7 = scmp.ge.s32.totalorder %s2923_s20, 1  ;;  %p340_p8 = scmp.lt.s32.totalorder %s2923_s20, 3 }
   0xf   : > { %p341_p9 = pnand %p2537_p7, %p340_p8 }
  0x10   : > { %s4295_s29 = sand.u32 (!%p341_p9), 1, %s2915_s18   ;;  %p380_p10 = scmp.lt.s32.totalorder (!%p341_p9), %s3018_s21, 1 }
  0x11   : > { %344 = sbr.rel (%p341_p9) target bundleno = 1201 (0x4b1), region = 64  ;;  %s4300_s1 = sld [smem:[#allocation8_spill]] (!%p341_p9) }
  0x12   : > { %s3064_s22 = sshll.u32 (!%p341_p9), %s4295_s29, 8  ;;  %s4301_s0 = sld [smem:[#allocation7_spill]] (!%p341_p9) }
  0x13   : > { %s3147_s25 = scalar_lea.vmem (!%p341_p9), [#allocation4], %s3064_s22  ;;  %s3149_s30 = smov (!%p341_p9), 0  }
  0x16   : > { %v3074_v4 = vld [vmem:[%s4285_s2] sm:$0x1]  ;;  %v2933_v5 = vmov 0.0   ;;  %s381_s13 = scalar_select %p380_p10, %s3018_s21, 1 }
  0x17   : > { %v3050_v0 = vld [vmem:[%s4300_s1] sm:$0xff]  ;;  %v3055_v1 = vld [vmem:[%s4300_s1 + $0x8] sm:$0xff]  ;;  %v3060_v2 = vld [vmem:[%s4300_s1 + $0x10] sm:$0xff]  ;;  %391 = vst [vmem:[#allocation2] sm:$0xff] %v2933_v5 }
  0x18   : > { %v3069_v3 = vld [vmem:[%s4300_s1 + $0x18] sm:$0x1]  ;;  %392 = vst [vmem:[#allocation2 + $0x8] sm:$0x1] %v2933_v5  ;;  %s2785_s14 = smul.u32 480, %s381_s13 }
  0x19   : > { %393 = vst [vmem:[#allocation2 + $0x28] sm:$0xff] %v2933_v5 }
  0x1a   : > { %394 = vst [vmem:[#allocation2 + $0x30] sm:$0x1] %v2933_v5  ;;  %s3086_s24 = scalar_lea.vmem %s4301_s0, %s2785_s14 }
  0x1b   : > { %395 = vst [vmem:[#allocation2 + $0x50] sm:$0xff] %v2933_v5 }
  0x1c   : > { %396 = vst [vmem:[#allocation2 + $0x58] sm:$0x1] %v2933_v5 }
  0x1d   : > { %397 = vst [vmem:[#allocation2 + $0x78] sm:$0xff] %v2933_v5 }
  0x1e   : > { %398 = vst [vmem:[#allocation2 + $0x80] sm:$0x1] %v2933_v5 }
  0x1f   : > { %399 = vst [vmem:[#allocation2 + $0xa0] sm:$0xff] %v2933_v5 }
  0x20   : > { %400 = vst [vmem:[#allocation2 + $0xa8] sm:$0x1] %v2933_v5 }
  0x21   : > { %401 = vst [vmem:[#allocation2 + $0xc8] sm:$0xff] %v2933_v5 }
  0x22   : > { %402 = vst [vmem:[#allocation2 + $0xd0] sm:$0x1] %v2933_v5 }
  0x23   : > { %403 = vst [vmem:[#allocation2 + $0xf0] sm:$0xff] %v2933_v5 }
  0x24   : > { %404 = vst [vmem:[#allocation2 + $0xf8] sm:$0x1] %v2933_v5 }
  0x25   : > { %405 = vst [vmem:[#allocation2 + $0x118] sm:$0xff] %v2933_v5 }
  0x26   : > { %406 = vst [vmem:[#allocation2 + $0x120] sm:$0x1] %v2933_v5 }
  0x27   : > { %407 = vst [vmem:[#allocation2 + $0x140] sm:$0xff] %v2933_v5 }
  0x28   : > { %408 = vst [vmem:[#allocation2 + $0x148] sm:$0x1] %v2933_v5 }
  0x29   : > { %409 = vst [vmem:[#allocation2 + $0x168] sm:$0xff] %v2933_v5 }
  0x2a   : > { %410 = vst [vmem:[#allocation2 + $0x170] sm:$0x1] %v2933_v5 }
  0x2b   : > { %411 = vst [vmem:[#allocation2 + $0x190] sm:$0xff] %v2933_v5 }
  0x2c   : > { %412 = vst [vmem:[#allocation2 + $0x198] sm:$0x1] %v2933_v5 }
  0x2d   : > { %413 = vst [vmem:[#allocation2 + $0x1b8] sm:$0xff] %v2933_v5 }
  0x2e   : > { %414 = vst [vmem:[#allocation2 + $0x1c0] sm:$0x1] %v2933_v5 }
  0x2f   : > { %415 = vst [vmem:[#allocation2 + $0x1e0] sm:$0xff] %v2933_v5 }
  0x30   : > { %416 = vst [vmem:[#allocation2 + $0x1e8] sm:$0x1] %v2933_v5 }
  0x31   : > { %417 = vst [vmem:[#allocation2 + $0x208] sm:$0xff] %v2933_v5 }
  0x32   : > { %418 = vst [vmem:[#allocation2 + $0x210] sm:$0x1] %v2933_v5 }
  0x33   : > { %419 = vst [vmem:[#allocation2 + $0x230] sm:$0xff] %v2933_v5 }
  0x34   : > { %420 = vst [vmem:[#allocation2 + $0x238] sm:$0x1] %v2933_v5 }
  0x35   : > { %421 = vst [vmem:[#allocation2 + $0x258] sm:$0xff] %v2933_v5 }
  0x36   : > { %422 = vst [vmem:[#allocation2 + $0x260] sm:$0x1] %v2933_v5 }
  0x37   : > { %423 = vst [vmem:[#allocation2 + $0x19] sm:$0xff] %v2933_v5 }
  0x38   : > { %424 = vst [vmem:[#allocation2 + $0x21] sm:$0x1] %v2933_v5 }
  0x39   : > { %425 = vst [vmem:[#allocation2 + $0x41] sm:$0xff] %v2933_v5 }
  0x3a   : > { %426 = vst [vmem:[#allocation2 + $0x49] sm:$0x1] %v2933_v5 }
  0x3b   : > { %427 = vst [vmem:[#allocation2 + $0x69] sm:$0xff] %v2933_v5 }
  0x3c   : > { %428 = vst [vmem:[#allocation2 + $0x71] sm:$0x1] %v2933_v5 }
  0x3d   : > { %429 = vst [vmem:[#allocation2 + $0x91] sm:$0xff] %v2933_v5 }
  0x3e   : > { %430 = vst [vmem:[#allocation2 + $0x99] sm:$0x1] %v2933_v5 }
  0x3f   : > { %431 = vst [vmem:[#allocation2 + $0xb9] sm:$0xff] %v2933_v5 }
  0x40   : > { %432 = vst [vmem:[#allocation2 + $0xc1] sm:$0x1] %v2933_v5 }
  0x41   : > { %433 = vst [vmem:[#allocation2 + $0xe1] sm:$0xff] %v2933_v5 }
  0x42   : > { %434 = vst [vmem:[#allocation2 + $0xe9] sm:$0x1] %v2933_v5 }
  0x43   : > { %435 = vst [vmem:[#allocation2 + $0x109] sm:$0xff] %v2933_v5 }
  0x44   : > { %436 = vst [vmem:[#allocation2 + $0x111] sm:$0x1] %v2933_v5 }
  0x45   : > { %437 = vst [vmem:[#allocation2 + $0x131] sm:$0xff] %v2933_v5 }
  0x46   : > { %438 = vst [vmem:[#allocation2 + $0x139] sm:$0x1] %v2933_v5 }
  0x47   : > { %439 = vst [vmem:[#allocation2 + $0x159] sm:$0xff] %v2933_v5 }
  0x48   : > { %440 = vst [vmem:[#allocation2 + $0x161] sm:$0x1] %v2933_v5 }
  0x49   : > { %441 = vst [vmem:[#allocation2 + $0x181] sm:$0xff] %v2933_v5 }
  0x4a   : > { %442 = vst [vmem:[#allocation2 + $0x189] sm:$0x1] %v2933_v5 }
  0x4b   : > { %443 = vst [vmem:[#allocation2 + $0x1a9] sm:$0xff] %v2933_v5 }
  0x4c   : > { %444 = vst [vmem:[#allocation2 + $0x1b1] sm:$0x1] %v2933_v5 }
  0x4d   : > { %445 = vst [vmem:[#allocation2 + $0x1d1] sm:$0xff] %v2933_v5 }
  0x4e   : > { %446 = vst [vmem:[#allocation2 + $0x1d9] sm:$0x1] %v2933_v5 }
  0x4f   : > { %447 = vst [vmem:[#allocation2 + $0x1f9] sm:$0xff] %v2933_v5 }
  0x50   : > { %448 = vst [vmem:[#allocation2 + $0x201] sm:$0x1] %v2933_v5 }
  0x51   : > { %449 = vst [vmem:[#allocation2 + $0x221] sm:$0xff] %v2933_v5 }
  0x52   : > { %450 = vst [vmem:[#allocation2 + $0x229] sm:$0x1] %v2933_v5 }
  0x53   : > { %451 = vst [vmem:[#allocation2 + $0x249] sm:$0xff] %v2933_v5 }
  0x54   : > { %452 = vst [vmem:[#allocation2 + $0x251] sm:$0x1] %v2933_v5 }
  0x55   : > { %453 = vst [vmem:[#allocation2 + $0x271] sm:$0xff] %v2933_v5 }
  0x56   : > { %454 = vst [vmem:[#allocation2 + $0x279] sm:$0x1] %v2933_v5 }
  0x57 LB: >> { %v462_v6 = vperm.slane %v3074_v4, 0  ;;  %v469_v7 = vperm.slane %v3050_v0, 0  ;;  %v474_v8 = vperm.slane %v3050_v0, 1  ;;  %vm481_vm0 = vcmask 1046528   ;;  %s464_s22 = smul.u32 24, %s2927_s30  ;;  %s2927_s30 = sphi %s3149_s30, %s460_s30  }
  0x58   : >> { %v491_v9 = vperm.slane %v3050_v0, 2  ;;  %vm498_vm1 = vcmask 1045504   ;;  %v508_v10 = vperm.slane %v3050_v0, 3  ;;  %v525_v11 = vperm.slane %v3050_v0, 4  ;;  %s842_s13 = smul.u32 40, %s2927_s30  ;;  %s460_s30 = sadd.s32 1, %s2927_s30  }
  0x59   : >> { %v548_v12 = vperm.slane %v3050_v0, 5  ;;  %vm515_vm2 = vcmask 1044480   ;;  %v3163_v13 = vperm.slane %v3050_v0, 6  ;;  %v3166_v14 = vperm.slane %v3050_v0, 7  ;;  %s3175_s12 = scalar_lea.vmem %s3086_s24, %s464_s22  ;;  %p457_p11 = scmp.ge.s32.totalorder %s460_s30, 16  }
  0x5a   : >> { %v3169_v15 = vperm.slane %v3055_v1, 0  ;;  %v3172_v16 = vperm.slane %v3055_v1, 1  ;;  %v623_v17 = vperm.slane %v3055_v1, 2  ;;  %v3179_v18 = vperm.slane %v3055_v1, 3  ;;  %v466_v21 = vld [vmem:[%s3175_s12] sm:$0xff]  ;;  %v467_v22 = vld [vmem:[%s3175_s12 + $0x8] sm:$0xff] }
  0x5b   : >> { %v3182_v19 = vperm.slane %v3055_v1, 4  ;;  %v3185_v20 = vperm.slane %v3055_v1, 5  ;;  %v468_v23 = vld [vmem:[%s3175_s12 + $0x10] sm:$0xf]  ;;  %v3191_v24 = vperm.slane %v3055_v1, 6  ;;  %v3194_v25 = vperm.slane %v3060_v2, 0 }
  0x5c   : >> { %v470_v26 = vmul.f32 %v469_v7, %v466_v21  ;;  %v471_v27 = vmul.f32 %v469_v7, %v467_v22  ;;  %v475_v28 = vmul.f32 %v474_v8, %v466_v21  ;;  %v476_v29 = vmul.f32 %v474_v8, %v467_v22  ;;  %v2540_v50 = vld [vmem:[%s3175_s12 + $0x18] sm:$0xff]  ;;  %v2541_v59 = vld [vmem:[%s3175_s12 + $0x20] sm:$0xff]  ;;  %v2542_v63 = vld [vmem:[%s3175_s12 + $0x28] sm:$0xf]  ;;  %s843_s14 = scalar_lea.vmem [#allocation2], %s842_s13  ;;  %s3332_s0 = smov (%p457_p11), 0  }
  0x5d   : >> { %vm532_vm3 = vcmask 1043456   ;;  %v477_v30 = vmul.f32 %v474_v8, %v468_v23  ;;  %v492_v31 = vmul.f32 %v491_v9, %v466_v21  ;;  %v493_v32 = vmul.f32 %v491_v9, %v467_v22  ;;  %v3315_v0 = vld [vmem:[%s4286_s3 + $0x20] sm:$0xff] (%p457_p11) }
  0x5e   : >> { %v494_v33 = vmul.f32 %v491_v9, %v468_v23  ;;  %v472_v34 = vadd.f32 %v470_v26, %v462_v6  ;;  %v473_v35 = vadd.f32 %v471_v27, %v462_v6  ;;  %v482_v36 = vrot.slane %v475_v28, 1 }
  0x5f   : >> { %v483_v37 = vrot.slane %v476_v29, 1  ;;  %v485_v38 = vrot.slane %v477_v30, 1  ;;  %v499_v39 = vrot.slane %v492_v31, 2  ;;  %v500_v40 = vrot.slane %v493_v32, 2 }
  0x60   : >> { %v502_v41 = vrot.slane %v494_v33, 2  ;;  %v509_v43 = vmul.f32 %v508_v10, %v466_v21  ;;  %v510_v44 = vmul.f32 %v508_v10, %v467_v22  ;;  %v511_v45 = vmul.f32 %v508_v10, %v468_v23 }
  0x61   : >> { %v484_v42 = vsel %vm481_vm0, %v482_v36, %v483_v37  ;;  %v486_v46 = vsel %vm481_vm0, %v483_v37, %v485_v38  ;;  %v501_v48 = vsel %vm498_vm1, %v499_v39, %v500_v40  ;;  %v526_v56 = vmul.f32 %v525_v11, %v466_v21 }
  0x62   : >> { %v489_v47 = vadd.f32 %v484_v42, %v472_v34  ;;  %v503_v49 = vsel %vm498_vm1, %v500_v40, %v502_v41  ;;  %v490_v51 = vadd.f32 %v486_v46, %v473_v35  ;;  %v516_v52 = vrot.slane %v509_v43, 3  ;;  %v2543_v46 = vld [vmem:[%s3175_s12 + $0x30] sm:$0xff] }
  0x63   : >> { %v517_v53 = vrot.slane %v510_v44, 3  ;;  %v519_v54 = vrot.slane %v511_v45, 3  ;;  %v527_v57 = vmul.f32 %v525_v11, %v467_v22  ;;  %v528_v58 = vmul.f32 %v525_v11, %v468_v23 }
  0x64   : >> { %v506_v55 = vadd.f32 %v501_v48, %v489_v47  ;;  %v507_v60 = vadd.f32 %v503_v49, %v490_v51  ;;  %v549_v5 = vmul.f32 %v2540_v50, %v548_v12  ;;  %v533_v7 = vrot.slane %v526_v56, 4 }
  0x65   : >> { %v518_v61 = vsel %vm515_vm2, %v516_v52, %v517_v53  ;;  %v520_v62 = vsel %vm515_vm2, %v517_v53, %v519_v54  ;;  %v534_v8 = vrot.slane %v527_v57, 4  ;;  %v536_v9 = vrot.slane %v528_v58, 4  ;;  %v2544_v52 = vld [vmem:[%s3175_s12 + $0x38] sm:$0xff] }
  0x66   : >> { %v523_v6 = vadd.f32 %v518_v61, %v506_v55  ;;  %v524_v10 = vadd.f32 %v520_v62, %v507_v60  ;;  %v550_v26 = vmul.f32 %v2541_v59, %v548_v12  ;;  %v554_v27 = vmul.f32 %v2540_v50, %v3163_v13  ;;  %v2545_v60 = vld [vmem:[%s3175_s12 + $0x40] sm:$0xf] }
  0x67   : >> { %v555_v21 = vmul.f32 %v2541_v59, %v3163_v13  ;;  %v535_v11 = vsel %vm532_vm3, %v533_v7, %v534_v8  ;;  %v537_v22 = vsel %vm532_vm3, %v534_v8, %v536_v9  ;;  %v556_v23 = vmul.f32 %v2542_v63, %v3163_v13 }
  0x68   : >> { %v570_v28 = vmul.f32 %v2540_v50, %v3166_v14  ;;  %v540_v29 = vadd.f32 %v535_v11, %v523_v6  ;;  %v541_v30 = vadd.f32 %v537_v22, %v524_v10  ;;  %v560_v31 = vrot.slane %v554_v27, 1 }
  0x69   : >> { %v561_v32 = vrot.slane %v555_v21, 1  ;;  %v563_v33 = vrot.slane %v556_v23, 1  ;;  %v571_v12 = vmul.f32 %v2541_v59, %v3166_v14  ;;  %v572_v34 = vmul.f32 %v2542_v63, %v3166_v14 }
  0x6a   : >> { %v576_v35 = vrot.slane %v570_v28, 2  ;;  %v551_v36 = vadd.f32 %v549_v5, %v540_v29  ;;  %v552_v37 = vadd.f32 %v550_v26, %v541_v30  ;;  %v586_v13 = vmul.f32 %v2540_v50, %v3169_v15 }
  0x6b   : >> { %v562_v38 = vsel %vm481_vm0, %v560_v31, %v561_v32  ;;  %v564_v39 = vsel %vm481_vm0, %v561_v32, %v563_v33  ;;  %v577_v40 = vrot.slane %v571_v12, 2  ;;  %v579_v41 = vrot.slane %v572_v34, 2 }
  0x6c   : >> { %v587_v42 = vmul.f32 %v2541_v59, %v3169_v15  ;;  %v567_v43 = vadd.f32 %v562_v38, %v551_v36  ;;  %v568_v44 = vadd.f32 %v564_v39, %v552_v37  ;;  %v588_v45 = vmul.f32 %v2542_v63, %v3169_v15 }
  0x6d   : >> { %v592_v14 = vrot.slane %v586_v13, 3  ;;  %v578_v47 = vsel %vm498_vm1, %v576_v35, %v577_v40  ;;  %v580_v48 = vsel %vm498_vm1, %v577_v40, %v579_v41  ;;  %v602_v51 = vmul.f32 %v2540_v50, %v3172_v16 }
  0x6e   : >> { %v593_v49 = vrot.slane %v587_v42, 3  ;;  %v583_v53 = vadd.f32 %v578_v47, %v567_v43  ;;  %v584_v54 = vadd.f32 %v580_v48, %v568_v44  ;;  %v595_v55 = vrot.slane %v588_v45, 3  ;;  %v2547_v47 = vld [vmem:[%s3175_s12 + $0x50] sm:$0xff] }
  0x6f   : >> { %v603_v56 = vmul.f32 %v2541_v59, %v3172_v16  ;;  %v604_v58 = vmul.f32 %v2542_v63, %v3172_v16  ;;  %v608_v15 = vrot.slane %v602_v51, 4  ;;  %v624_v61 = vmul.f32 %v2543_v46, %v623_v17 }
  0x70   : >> { %v594_v57 = vsel %vm515_vm2, %v592_v14, %v593_v49  ;;  %v596_v62 = vsel %vm515_vm2, %v593_v49, %v595_v55  ;;  %v625_v50 = vmul.f32 %v2544_v52, %v623_v17  ;;  %v629_v59 = vmul.f32 %v2543_v46, %v3179_v18  ;;  %v2546_v14 = vld [vmem:[%s3175_s12 + $0x48] sm:$0xff] }
  0x71   : >> { %v599_v5 = vadd.f32 %v594_v57, %v583_v53  ;;  %v609_v6 = vrot.slane %v603_v56, 4  ;;  %v600_v7 = vadd.f32 %v596_v62, %v584_v54  ;;  %v611_v8 = vrot.slane %v604_v58, 4 }
  0x72   : >> { %v630_v9 = vmul.f32 %v2544_v52, %v3179_v18  ;;  %v631_v63 = vmul.f32 %v2545_v60, %v3179_v18  ;;  %v645_v10 = vmul.f32 %v2543_v46, %v3182_v19  ;;  %v646_v26 = vmul.f32 %v2544_v52, %v3182_v19 }
  0x73   : >> { %v610_v16 = vsel %vm532_vm3, %v608_v15, %v609_v6  ;;  %v612_v27 = vsel %vm532_vm3, %v609_v6, %v611_v8  ;;  %v635_v11 = vrot.slane %v629_v59, 1  ;;  %v647_v28 = vmul.f32 %v2545_v60, %v3182_v19 }
  0x74   : >> { %v615_v21 = vadd.f32 %v610_v16, %v599_v5  ;;  %v636_v22 = vrot.slane %v630_v9, 1  ;;  %v616_v17 = vadd.f32 %v612_v27, %v600_v7  ;;  %v638_v23 = vrot.slane %v631_v63, 1 }
  0x75   : >> { %v651_v29 = vrot.slane %v645_v10, 2  ;;  %v652_v32 = vrot.slane %v646_v26, 2  ;;  %v661_v18 = vmul.f32 %v2543_v46, %v3185_v20  ;;  %v654_v34 = vrot.slane %v647_v28, 2 }
  0x76   : >> { %v626_v30 = vadd.f32 %v624_v61, %v615_v21  ;;  %v637_v31 = vsel %vm481_vm0, %v635_v11, %v636_v22  ;;  %v627_v33 = vadd.f32 %v625_v50, %v616_v17  ;;  %v639_v12 = vsel %vm481_vm0, %v636_v22, %v638_v23 }
  0x77   : >> { %v662_v35 = vmul.f32 %v2544_v52, %v3185_v20  ;;  %v653_v37 = vsel %vm498_vm1, %v651_v29, %v652_v32  ;;  %v663_v19 = vmul.f32 %v2545_v60, %v3185_v20  ;;  %v667_v38 = vrot.slane %v661_v18, 3  ;;  %v2548_v20 = vld [vmem:[%s3175_s12 + $0x58] sm:$0xf] }
  0x78   : >> { %v642_v36 = vadd.f32 %v637_v31, %v626_v30  ;;  %v643_v13 = vadd.f32 %v639_v12, %v627_v33  ;;  %v655_v39 = vsel %vm498_vm1, %v652_v32, %v654_v34  ;;  %v677_v41 = vmul.f32 %v2543_v46, %v3191_v24 }
  0x79   : >> { %v668_v40 = vrot.slane %v662_v35, 3  ;;  %v670_v43 = vrot.slane %v663_v19, 3  ;;  %v678_v44 = vmul.f32 %v2544_v52, %v3191_v24  ;;  %v679_v45 = vmul.f32 %v2545_v60, %v3191_v24 }
  0x7a   : >> { %v658_v42 = vadd.f32 %v653_v37, %v642_v36  ;;  %v659_v48 = vadd.f32 %v655_v39, %v643_v13  ;;  %v683_v51 = vrot.slane %v677_v41, 4  ;;  %v698_v53 = vperm.slane %v3055_v1, 7  ;;  %v3320_v1 = vld [vmem:[%s4286_s3 + $0x28] sm:$0xff] (%p457_p11) }
  0x7b   : >> { %v669_v49 = vsel %vm515_vm2, %v667_v38, %v668_v40  ;;  %v671_v54 = vsel %vm515_vm2, %v668_v40, %v670_v43  ;;  %v684_v56 = vrot.slane %v678_v44, 4  ;;  %v686_v46 = vrot.slane %v679_v45, 4  ;;  %v2550_v43 = vld [vmem:[%s3175_s12 + $0x68] sm:$0xff] }
  0x7c   : >> { %v674_v55 = vadd.f32 %v669_v49, %v658_v42  ;;  %v675_v57 = vadd.f32 %v671_v54, %v659_v48  ;;  %v699_v58 = vmul.f32 %v2546_v14, %v698_v53  ;;  %v700_v15 = vmul.f32 %v2547_v47, %v698_v53  ;;  %v2549_v42 = vld [vmem:[%s3175_s12 + $0x60] sm:$0xff]  ;;  %v2551_v48 = vld [vmem:[%s3175_s12 + $0x70] sm:$0xf] }
  0x7d   : >> { %v704_v52 = vmul.f32 %v2546_v14, %v3194_v25  ;;  %v685_v24 = vsel %vm532_vm3, %v683_v51, %v684_v56  ;;  %v687_v60 = vsel %vm532_vm3, %v684_v56, %v686_v46  ;;  %v705_v61 = vmul.f32 %v2547_v47, %v3194_v25 }
  0x7e   : >> { %v706_v62 = vmul.f32 %v2548_v20, %v3194_v25  ;;  %v690_v5 = vadd.f32 %v685_v24, %v674_v55  ;;  %v691_v6 = vadd.f32 %v687_v60, %v675_v57  ;;  %v719_v7 = vperm.slane %v3060_v2, 1 }
  0x7f   : >> { %v710_v50 = vrot.slane %v704_v52, 1  ;;  %v711_v8 = vrot.slane %v705_v61, 1  ;;  %v735_v9 = vperm.slane %v3060_v2, 2  ;;  %v751_v16 = vperm.slane %v3060_v2, 3 }
  0x80   : >> { %v713_v59 = vrot.slane %v706_v62, 1  ;;  %v701_v63 = vadd.f32 %v699_v58, %v690_v5  ;;  %v702_v10 = vadd.f32 %v700_v15, %v691_v6  ;;  %v720_v26 = vmul.f32 %v2546_v14, %v719_v7 }
  0x81   : >> { %v721_v27 = vmul.f32 %v2547_v47, %v719_v7  ;;  %v712_v21 = vsel %vm481_vm0, %v710_v50, %v711_v8  ;;  %v722_v25 = vmul.f32 %v2548_v20, %v719_v7  ;;  %v736_v22 = vmul.f32 %v2546_v14, %v735_v9 }
  0x82   : >> { %v714_v11 = vsel %vm481_vm0, %v711_v8, %v713_v59  ;;  %v717_v17 = vadd.f32 %v712_v21, %v701_v63  ;;  %v726_v28 = vrot.slane %v720_v26, 2  ;;  %v737_v31 = vmul.f32 %v2547_v47, %v735_v9 }
  0x83   : >> { %v718_v23 = vadd.f32 %v714_v11, %v702_v10  ;;  %v727_v29 = vrot.slane %v721_v27, 2  ;;  %v729_v30 = vrot.slane %v722_v25, 2  ;;  %v738_v32 = vmul.f32 %v2548_v20, %v735_v9 }
  0x84   : >> { %v742_v18 = vrot.slane %v736_v22, 3  ;;  %v752_v12 = vmul.f32 %v2546_v14, %v751_v16  ;;  %v753_v34 = vmul.f32 %v2547_v47, %v751_v16  ;;  %v754_v35 = vmul.f32 %v2548_v20, %v751_v16 }
  0x85   : >> { %v728_v33 = vsel %vm498_vm1, %v726_v28, %v727_v29  ;;  %v730_v36 = vsel %vm498_vm1, %v727_v29, %v729_v30  ;;  %v743_v19 = vrot.slane %v737_v31, 3  ;;  %v745_v38 = vrot.slane %v738_v32, 3 }
  0x86   : >> { %v733_v37 = vadd.f32 %v728_v33, %v717_v17  ;;  %v734_v13 = vadd.f32 %v730_v36, %v718_v23  ;;  %v758_v39 = vrot.slane %v752_v12, 4  ;;  %v759_v40 = vrot.slane %v753_v34, 4 }
  0x87   : >> { %v761_v41 = vrot.slane %v754_v35, 4  ;;  %v744_v44 = vsel %vm515_vm2, %v742_v18, %v743_v19  ;;  %v746_v45 = vsel %vm515_vm2, %v743_v19, %v745_v38  ;;  %v773_v14 = vperm.slane %v3060_v2, 4 }
  0x88   : >> { %v778_v47 = vperm.slane %v3060_v2, 5  ;;  %v749_v49 = vadd.f32 %v744_v44, %v733_v37  ;;  %v750_v51 = vadd.f32 %v746_v45, %v734_v13  ;;  %v760_v20 = vsel %vm532_vm3, %v758_v39, %v759_v40  ;;  %v3300_v44 = vld [vmem:[%s4286_s3 + $0x8] sm:$0xff] (%p457_p11)  ;;  %v3305_v45 = vld [vmem:[%s4286_s3 + $0x10] sm:$0xff] (%p457_p11) }
  0x89   : >> { %v762_v53 = vsel %vm532_vm3, %v759_v40, %v761_v41  ;;  %v774_v54 = vmul.f32 %v2549_v42, %v773_v14  ;;  %v775_v55 = vmul.f32 %v2550_v43, %v773_v14  ;;  %v794_v52 = vperm.slane %v3060_v2, 6 }
  0x8a   : >> { %v779_v56 = vmul.f32 %v2549_v42, %v778_v47  ;;  %v780_v46 = vmul.f32 %v2550_v43, %v778_v47  ;;  %v765_v57 = vadd.f32 %v760_v20, %v749_v49  ;;  %v766_v58 = vadd.f32 %v762_v53, %v750_v51 }
  0x8b   : >> { %v781_v15 = vmul.f32 %v2551_v48, %v778_v47  ;;  %v810_v61 = vperm.slane %v3060_v2, 7  ;;  %v826_v62 = vperm.slane %v3069_v3, 0  ;;  %v795_v7 = vmul.f32 %v2549_v42, %v794_v52  ;;  %v3325_v2 = vld [vmem:[%s4286_s3 + $0x30] sm:$0x1] (%p457_p11)  ;;  %v3330_v3 = vld [vmem:[%s4287_s4] sm:$0x1] (%p457_p11) }
  0x8c   : >> { %v785_v24 = vrot.slane %v779_v56, 1  ;;  %v786_v60 = vrot.slane %v780_v46, 1  ;;  %v776_v5 = vadd.f32 %v774_v54, %v765_v57  ;;  %v777_v6 = vadd.f32 %v775_v55, %v766_v58 }
  0x8d   : >> { %v788_v50 = vrot.slane %v781_v15, 1  ;;  %v796_v59 = vmul.f32 %v2550_v43, %v794_v52  ;;  %v797_v9 = vmul.f32 %v2551_v48, %v794_v52  ;;  %v811_v16 = vmul.f32 %v2549_v42, %v810_v61 }
  0x8e   : >> { %v787_v8 = vsel %vm481_vm0, %v785_v24, %v786_v60  ;;  %v801_v26 = vrot.slane %v795_v7, 2  ;;  %v812_v27 = vmul.f32 %v2550_v43, %v810_v61  ;;  %v813_v22 = vmul.f32 %v2551_v48, %v810_v61 }
  0x8f   : >> { %v789_v63 = vsel %vm481_vm0, %v786_v60, %v788_v50  ;;  %v792_v10 = vadd.f32 %v787_v8, %v776_v5  ;;  %v802_v11 = vrot.slane %v796_v59, 2  ;;  %v804_v25 = vrot.slane %v797_v9, 2 }
  0x90   : >> { %v793_v21 = vadd.f32 %v789_v63, %v777_v6  ;;  %v817_v17 = vrot.slane %v811_v16, 3  ;;  %v818_v23 = vrot.slane %v812_v27, 3  ;;  %v827_v28 = vmul.f32 %v2549_v42, %v826_v62 }
  0x91   : >> { %v828_v29 = vmul.f32 %v2550_v43, %v826_v62  ;;  %v803_v30 = vsel %vm498_vm1, %v801_v26, %v802_v11  ;;  %v805_v31 = vsel %vm498_vm1, %v802_v11, %v804_v25  ;;  %v820_v32 = vrot.slane %v813_v22, 3  ;;  %v3295_v43 = vld [vmem:[%s4286_s3] sm:$0xff] (%p457_p11) }
  0x92   : >> { %v829_v18 = vmul.f32 %v2551_v48, %v826_v62  ;;  %v808_v33 = vadd.f32 %v803_v30, %v792_v10  ;;  %v809_v12 = vadd.f32 %v805_v31, %v793_v21  ;;  %v819_v34 = vsel %vm515_vm2, %v817_v17, %v818_v23  ;;  %v3310_v48 = vld [vmem:[%s4286_s3 + $0x18] sm:$0xff] (%p457_p11) }
  0x93   : >> { %v833_v35 = vrot.slane %v827_v28, 4  ;;  %v821_v36 = vsel %vm515_vm2, %v818_v23, %v820_v32  ;;  %v834_v37 = vrot.slane %v828_v29, 4 }
  0x94   : >> { %v836_v19 = vrot.slane %v829_v18, 4  ;;  %v824_v38 = vadd.f32 %v819_v34, %v808_v33  ;;  %v825_v13 = vadd.f32 %v821_v36, %v809_v12 }
  0x95   : >> { %v835_v39 = vsel %vm532_vm3, %v833_v35, %v834_v37  ;;  %459 = sbr.rel (!%p457_p11) target bundleno = 87 (0x57), region = 128 }
  0x96   : >> { %v837_v40 = vsel %vm532_vm3, %v834_v37, %v836_v19  ;;  %v840_v41 = vadd.f32 %v835_v39, %v824_v38 }
  0x97   : >> { %v841_v42 = vadd.f32 %v837_v40, %v825_v13 }
  0x98   : >> { %844 = vst [vmem:[%s843_s14 + $0x9] sm:$0xff] %v840_v41 }
  0x99   : >> { %845 = vst [vmem:[%s843_s14 + $0x11] sm:$0xff] %v841_v42 }
  0x9a LB: >> { %s863_s1 = sadd.s32 4294967287, %s2931_s0  ;;  %s3339_s14 = sadd.s32 4294967290, %s2931_s0  ;;  %v861_v4 = vperm.slane %v3330_v3, 0  ;;  %v881_v14 = vperm.slane %v3295_v43, 0  ;;  %v886_v47 = vperm.slane %v3295_v43, 1  ;;  %v903_v49 = vperm.slane %v3295_v43, 2  ;;  %s2931_s0 = sphi %s3332_s0, %s859_s0  }
  0x9b   : >> { %p864_p12 = scmp.ge.s32.totalorder %s863_s1, 0  ;;  %p865_p13 = scmp.lt.s32.totalorder %s863_s1, 16  ;;  %vm910_vm4 = vcmask 1041408   ;;  %v920_v51 = vperm.slane %v3295_v43, 3  ;;  %v937_v20 = vperm.slane %v3295_v43, 4  ;;  %v954_v53 = vperm.slane %v3295_v43, 5 }
  0x9c   : >> { %p870_p0 = scmp.gt.s32.totalorder %s863_s1, 0  ;;  %p2553_p1 = scmp.lt.s32.totalorder %s863_s1, 15  ;;  %v3352_v54 = vperm.slane %v3295_v43, 6  ;;  %v1011_v55 = vperm.slane %v3295_v43, 7  ;;  %v3357_v56 = vperm.slane %v3300_v44, 0  ;;  %v3360_v46 = vperm.slane %v3300_v44, 1 }
  0x9d   : >> { %p866_p2 = pnand %p865_p13, %p864_p12  ;;  %p1000_p3 = scmp.gt.s32.totalorder %s3339_s14, 0  ;;  %v3363_v57 = vperm.slane %v3300_v44, 2  ;;  %v3372_v60 = vperm.slane %v3300_v44, 3  ;;  %v3375_v61 = vperm.slane %v3300_v44, 4  ;;  %v1135_v62 = vperm.slane %v3300_v44, 6 }
  0x9e   : >> { %s4314_s1 = smov (!%p870_p0, %s863_s1), 0  ;;  %p2559_p4 = scmp.lt.s32.totalorder %s3339_s14, 15  ;;  %vm961_vm5 = vcmask 1040384  }
  0x9f   : >> { %s2552_s30 = scalar_select %p866_p2, 0, 1 }
  0xa0   : >> { %s4316_s1 = smov (!%p2553_p1, %s4314_s1), 15  ;;  %s3393_s13 = sadd.s32 4294967293, %s2931_s0 }
  0xa1   : >> { %s3342_s15 = scvt.s32.f32 %s2552_s30  ;;  %s874_s16 = smul.u32 40, %s4316_s1 }
  0xa2   : >> { %s1001_s12 = scalar_select %p1000_p3, %s3339_s14, 0 }
  0xa3   : >> { %s3365_s22 = scalar_lea.vmem [#allocation2], %s874_s16  ;;  %v988_v24 = vstv %s3342_s15  ;;  %p1124_p7 = scmp.gt.s32.totalorder %s3393_s13, 0 }
  0xa4   : >> { %v876_v58 = vld [vmem:[%s3365_s22] sm:$0xff]  ;;  %v877_v15 = vld [vmem:[%s3365_s22 + $0x8] sm:$0xff]  ;;  %v878_v52 = vld [vmem:[%s3365_s22 + $0x10] sm:$0xff]  ;;  %s4318_s12 = smov (!%p2559_p4, %s1001_s12), 15  ;;  %p994_p8 = scmp.ge.s32.totalorder %s3339_s14, 0 }
  0xa5   : >> { %v882_v5 = vmul.f32 %v881_v14, %v876_v58  ;;  %v883_v6 = vmul.f32 %v881_v14, %v877_v15  ;;  %v887_v50 = vmul.f32 %v886_v47, %v876_v58  ;;  %v888_v7 = vmul.f32 %v886_v47, %v877_v15  ;;  %v879_v8 = vld [vmem:[%s3365_s22 + $0x18] sm:$0xff]  ;;  %s1004_s29 = smul.u32 40, %s4318_s12  ;;  %v880_v14 = vld [vmem:[%s3365_s22 + $0x20] sm:$0x3]  ;;  %p995_p9 = scmp.lt.s32.totalorder %s3339_s14, 16 }
  0xa6   : >> { %v889_v59 = vmul.f32 %v886_v47, %v878_v52  ;;  %v904_v9 = vmul.f32 %v903_v49, %v876_v58  ;;  %v905_v16 = vmul.f32 %v903_v49, %v877_v15  ;;  %v906_v63 = vmul.f32 %v903_v49, %v878_v52  ;;  %p2565_p10 = scmp.lt.s32.totalorder %s3393_s13, 15  ;;  %p1247_p12 = scmp.gt.s32.totalorder %s2931_s0, 0 }
  0xa7   : >> { %v894_v10 = vrot.slane %v887_v50, 3  ;;  %v895_v26 = vrot.slane %v888_v7, 3  ;;  %v921_v27 = vmul.f32 %v920_v51, %v877_v15  ;;  %v922_v21 = vmul.f32 %v920_v51, %v878_v52  ;;  %s3408_s1 = scalar_lea.vmem [#allocation2], %s1004_s29  ;;  %p3434_p11 = pnand %p995_p9, %p994_p8 }
  0xa8   : >> { %v897_v11 = vrot.slane %v889_v59, 3  ;;  %v911_v25 = vrot.slane %v904_v9, 6  ;;  %v912_v22 = vrot.slane %v905_v16, 6  ;;  %v914_v17 = vrot.slane %v906_v63, 6  ;;  %s1125_s30 = scalar_select %p1124_p7, %s3393_s13, 0 }
  0xa9   : >> { %v896_v23 = vsel %vm515_vm2, %v894_v10, %v895_v26  ;;  %v923_v28 = vmul.f32 %v920_v51, %v879_v8  ;;  %v928_v29 = vrot.slane %v921_v27, 1  ;;  %v929_v30 = vrot.slane %v922_v21, 1  ;;  %v3413_v27 = vld [vmem:[%s3408_s1 + $0x10] sm:$0xff]  ;;  %s2558_s14 = scalar_select %p3434_p11, 0, 1 }
  0xaa   : >> { %v898_v31 = vsel %vm515_vm2, %v895_v26, %v897_v11  ;;  %v901_v32 = vadd.f32 %v896_v23, %v882_v5  ;;  %v913_v18 = vsel %vm910_vm4, %v911_v25, %v912_v22  ;;  %v915_v33 = vsel %vm910_vm4, %v912_v22, %v914_v17  ;;  %v1007_v26 = vld [vmem:[%s3408_s1 + $0x8] sm:$0xff]  ;;  %s4320_s30 = smov (!%p2565_p10, %s1125_s30), 15  ;;  %p1118_p13 = scmp.ge.s32.totalorder %s3393_s13, 0 }
  0xab   : >> { %v902_v12 = vadd.f32 %v898_v31, %v883_v6  ;;  %v930_v34 = vsel %vm481_vm0, %v928_v29, %v929_v30  ;;  %v931_v35 = vrot.slane %v923_v28, 1  ;;  %v938_v36 = vmul.f32 %v937_v20, %v877_v15  ;;  %s1128_s22 = smul.u32 40, %s4320_s30  ;;  %s3473_s15 = scvt.s32.f32 %s2558_s14 }
  0xac   : >> { %v918_v37 = vadd.f32 %v913_v18, %v901_v32  ;;  %v939_v19 = vmul.f32 %v937_v20, %v878_v52  ;;  %v940_v38 = vmul.f32 %v937_v20, %v879_v8  ;;  %v955_v13 = vmul.f32 %v954_v53, %v877_v15  ;;  %p1119_p0 = scmp.lt.s32.totalorder %s3393_s13, 16  ;;  %p2571_p1 = scmp.lt.s32.totalorder %s2931_s0, 15 }
  0xad   : >> { %v919_v39 = vadd.f32 %v915_v33, %v902_v12  ;;  %v932_v40 = vsel %vm481_vm0, %v929_v30, %v931_v35  ;;  %v945_v41 = vrot.slane %v938_v36, 4  ;;  %v956_v42 = vmul.f32 %v954_v53, %v878_v52  ;;  %s3486_s12 = scalar_lea.vmem [#allocation2], %s1128_s22  ;;  %s3555_s14 = sadd.s32 3, %s2931_s0 }
  0xae   : >> { %v935_v47 = vadd.f32 %v930_v34, %v918_v37  ;;  %v946_v49 = vrot.slane %v939_v19, 4  ;;  %v948_v51 = vrot.slane %v940_v38, 4  ;;  %v957_v58 = vmul.f32 %v954_v53, %v879_v8  ;;  %s1248_s29 = scalar_select %p1247_p12, %s2931_s0, 0 }
  0xaf   : >> { %v936_v5 = vadd.f32 %v932_v40, %v919_v39  ;;  %v962_v6 = vrot.slane %v955_v13, 7  ;;  %v963_v50 = vrot.slane %v956_v42, 7  ;;  %v972_v20 = vmul.f32 %v3352_v54, %v878_v52  ;;  %v1006_v52 = vld [vmem:[%s3408_s1] sm:$0xff]  ;;  %p3524_p2 = pnand %p1119_p0, %p1118_p13  ;;  %p1371_p3 = scmp.gt.s32.totalorder %s3555_s14, 0 }
  0xb0   : >> { %v947_v15 = vsel %vm532_vm3, %v945_v41, %v946_v49  ;;  %v949_v7 = vsel %vm532_vm3, %v946_v49, %v948_v51  ;;  %v965_v59 = vrot.slane %v957_v58, 7  ;;  %v973_v9 = vmul.f32 %v3352_v54, %v879_v8  ;;  %s4322_s29 = smov (!%p2571_p1, %s1248_s29), 15  ;;  %p1241_p4 = scmp.ge.s32.totalorder %s2931_s0, 0 }
  0xb1   : >> { %v952_v16 = vadd.f32 %v947_v15, %v935_v47  ;;  %v953_v53 = vadd.f32 %v949_v7, %v936_v5  ;;  %v964_v63 = vsel %vm961_vm5, %v962_v6, %v963_v50  ;;  %v974_v10 = vmul.f32 %v3352_v54, %v880_v14  ;;  %s2564_s13 = scalar_select %p3524_p2, 0, 1 }
  0xb2   : >> { %v966_v8 = vsel %vm961_vm5, %v963_v50, %v965_v59  ;;  %v979_v21 = vrot.slane %v972_v20, 2  ;;  %v980_v11 = vrot.slane %v973_v9, 2  ;;  %v1012_v54 = vmul.f32 %v1011_v55, %v1006_v52  ;;  %s1251_s30 = smul.u32 40, %s4322_s29  ;;  %p1242_p7 = scmp.lt.s32.totalorder %s2931_s0, 16 }
  0xb3   : >> { %v969_v25 = vadd.f32 %v964_v63, %v952_v16  ;;  %v970_v22 = vadd.f32 %v966_v8, %v953_v53  ;;  %v982_v17 = vrot.slane %v974_v10, 2  ;;  %v1013_v23 = vmul.f32 %v1011_v55, %v1007_v26  ;;  %s3546_s16 = scvt.s32.f32 %s2564_s13  ;;  %p2577_p8 = scmp.lt.s32.totalorder %s3555_s14, 15 }
  0xb4   : >> { %v981_v28 = vsel %vm498_vm1, %v979_v21, %v980_v11  ;;  %v1017_v29 = vmul.f32 %v3357_v56, %v1006_v52  ;;  %v1018_v30 = vmul.f32 %v3357_v56, %v1007_v26  ;;  %v1019_v31 = vmul.f32 %v3357_v56, %v3413_v27  ;;  %v1009_v56 = vld [vmem:[%s3408_s1 + $0x18] sm:$0xff]  ;;  %s3567_s22 = scalar_lea.vmem [#allocation2], %s1251_s30  ;;  %p3594_p9 = pnand %p1242_p7, %p1241_p4 }
  0xb5   : >> { %v983_v32 = vsel %vm498_vm1, %v980_v11, %v982_v17  ;;  %v986_v18 = vadd.f32 %v981_v28, %v969_v25  ;;  %v1033_v55 = vmul.f32 %v3360_v46, %v1006_v52  ;;  %v1034_v33 = vmul.f32 %v3360_v46, %v1007_v26  ;;  %s3624_s30 = sadd.s32 6, %s2931_s0  ;;  %p1365_p11 = scmp.ge.s32.totalorder %s3555_s14, 0 }
  0xb6   : >> { %v987_v12 = vadd.f32 %v983_v32, %v970_v22  ;;  %v1023_v34 = vrot.slane %v1017_v29, 3  ;;  %v1024_v35 = vrot.slane %v1018_v30, 3  ;;  %v1026_v36 = vrot.slane %v1019_v31, 3  ;;  %s2570_s29 = scalar_select %p3594_p9, 0, 1 }
  0xb7   : >> { %v1035_v37 = vmul.f32 %v3360_v46, %v3413_v27  ;;  %v1039_v19 = vrot.slane %v1033_v55, 6  ;;  %v1040_v38 = vrot.slane %v1034_v33, 6  ;;  %v1096_v13 = vperm.slane %v3300_v44, 5  ;;  %v1130_v55 = vld [vmem:[%s3486_s12] sm:$0xff]  ;;  %p1495_p10 = scmp.gt.s32.totalorder %s3624_s30, 0  ;;  %p1366_p12 = scmp.lt.s32.totalorder %s3555_s14, 16 }
  0xb8   : >> { %v1025_v39 = vsel %vm515_vm2, %v1023_v34, %v1024_v35  ;;  %v1027_v40 = vsel %vm515_vm2, %v1024_v35, %v1026_v36  ;;  %v1049_v41 = vmul.f32 %v3363_v57, %v1007_v26  ;;  %v1140_v42 = vperm.slane %v3300_v44, 7  ;;  %v3493_v35 = vld [vmem:[%s3486_s12 + $0x10] sm:$0xff]  ;;  %s3618_s13 = scvt.s32.f32 %s2570_s29  ;;  %p2583_p13 = scmp.lt.s32.totalorder %s3624_s30, 15 }
  0xb9   : >> { %v3454_v14 = vmul.f32 %v988_v24, %v986_v18  ;;  %v1030_v47 = vadd.f32 %v1025_v39, %v1012_v54  ;;  %v1031_v46 = vadd.f32 %v1027_v40, %v1013_v23  ;;  %v1041_v49 = vsel %vm910_vm4, %v1039_v19, %v1040_v38  ;;  %v1010_v54 = vld [vmem:[%s3408_s1 + $0x20] sm:$0x3]  ;;  %p3667_p0 = pnand %p1366_p12, %p1365_p11  ;;  %s3694_s29 = sadd.s32 9, %s2931_s0 }
  0xba   : >> { %v3461_v51 = vmul.f32 %v988_v24, %v987_v12  ;;  %v1042_v58 = vrot.slane %v1035_v37, 6  ;;  %v1050_v5 = vmul.f32 %v3363_v57, %v3413_v27  ;;  %v1051_v6 = vmul.f32 %v3363_v57, %v1009_v56  ;;  %p1619_p1 = scmp.gt.s32.totalorder %s3694_s29, 0  ;;  %p1489_p2 = scmp.ge.s32.totalorder %s3624_s30, 0 }
  0xbb   : >> { %v1046_v50 = vadd.f32 %v1041_v49, %v1030_v47  ;;  %v1055_v20 = vrot.slane %v1049_v41, 1  ;;  %v1065_v15 = vmul.f32 %v3372_v60, %v1007_v26  ;;  %v1066_v7 = vmul.f32 %v3372_v60, %v3413_v27  ;;  %p2589_p4 = scmp.lt.s32.totalorder %s3694_s29, 15  ;;  %p1614_p9 = scmp.lt.s32.totalorder %s3694_s29, 16 }
  0xbc   : >> { %v1043_v59 = vsel %vm910_vm4, %v1040_v38, %v1042_v58  ;;  %v1056_v9 = vrot.slane %v1050_v5, 1  ;;  %v1058_v24 = vrot.slane %v1051_v6, 1  ;;  %v1067_v16 = vmul.f32 %v3372_v60, %v1009_v56 }
  0xbd   : >> { %v1047_v53 = vadd.f32 %v1043_v59, %v1031_v46  ;;  %v1071_v63 = vrot.slane %v1065_v15, 4  ;;  %v1072_v10 = vrot.slane %v1066_v7, 4  ;;  %v1081_v57 = vmul.f32 %v3375_v61, %v1007_v26  ;;  %v1133_v59 = vld [vmem:[%s3486_s12 + $0x18] sm:$0xff] }
  0xbe   : >> { %v1057_v52 = vsel %vm481_vm0, %v1055_v20, %v1056_v9  ;;  %v1059_v8 = vsel %vm481_vm0, %v1056_v9, %v1058_v24  ;;  %v1074_v21 = vrot.slane %v1067_v16, 4  ;;  %v1082_v11 = vmul.f32 %v3375_v61, %v3413_v27 }
  0xbf   : >> { %v1062_v25 = vadd.f32 %v1057_v52, %v1046_v50  ;;  %v1063_v22 = vadd.f32 %v1059_v8, %v1047_v53  ;;  %v1073_v60 = vsel %vm532_vm3, %v1071_v63, %v1072_v10  ;;  %v1083_v17 = vmul.f32 %v3375_v61, %v1009_v56 }
  0xc0   : >> { %v1075_v26 = vsel %vm532_vm3, %v1072_v10, %v1074_v21  ;;  %v1087_v23 = vrot.slane %v1081_v57, 7  ;;  %v1088_v28 = vrot.slane %v1082_v11, 7  ;;  %v1097_v29 = vmul.f32 %v1096_v13, %v3413_v27  ;;  %v1131_v27 = vld [vmem:[%s3486_s12 + $0x8] sm:$0xff] }
  0xc1   : >> { %v1078_v30 = vadd.f32 %v1073_v60, %v1062_v25  ;;  %v1079_v31 = vadd.f32 %v1075_v26, %v1063_v22  ;;  %v1090_v32 = vrot.slane %v1083_v17, 7  ;;  %v1098_v18 = vmul.f32 %v1096_v13, %v1009_v56 }
  0xc2   : >> { %v1089_v61 = vsel %vm961_vm5, %v1087_v23, %v1088_v28  ;;  %v1099_v33 = vmul.f32 %v1096_v13, %v1010_v54  ;;  %v1103_v12 = vrot.slane %v1097_v29, 2  ;;  %v1112_v34 = vstv %s3473_s15  ;;  %s1372_s15 = scalar_select %p1371_p3, %s3555_s14, 0 }
  0xc3   : >> { %v1091_v36 = vsel %vm961_vm5, %v1088_v28, %v1090_v32  ;;  %v1094_v56 = vadd.f32 %v1089_v61, %v1078_v30  ;;  %v1104_v37 = vrot.slane %v1098_v18, 2  ;;  %v1136_v19 = vmul.f32 %v1135_v62, %v1130_v55  ;;  %s2576_s14 = scalar_select %p3667_p0, 0, 1 }
  0xc4   : >> { %v1095_v38 = vadd.f32 %v1091_v36, %v1079_v31  ;;  %v1106_v39 = vrot.slane %v1099_v33, 2  ;;  %v1137_v13 = vmul.f32 %v1135_v62, %v1131_v27  ;;  %v1141_v40 = vmul.f32 %v1140_v42, %v1130_v55  ;;  %s4324_s15 = smov (!%p2577_p8, %s1372_s15), 15  ;;  %p1490_p3 = scmp.lt.s32.totalorder %s3624_s30, 16 }
  0xc5   : >> { %v1105_v41 = vsel %vm498_vm1, %v1103_v12, %v1104_v37  ;;  %v1142_v47 = vmul.f32 %v1140_v42, %v1131_v27  ;;  %v1143_v46 = vmul.f32 %v1140_v42, %v3493_v35  ;;  %v1156_v49 = vperm.slane %v3305_v45, 0  ;;  %s1375_s1 = smul.u32 40, %s4324_s15  ;;  %p1613_p8 = scmp.ge.s32.totalorder %s3694_s29, 0 }
  0xc6   : >> { %v1107_v58 = vsel %vm498_vm1, %v1104_v37, %v1106_v39  ;;  %v1110_v5 = vadd.f32 %v1105_v41, %v1094_v56  ;;  %v1147_v6 = vrot.slane %v1141_v40, 3  ;;  %v1172_v62 = vperm.slane %v3305_v45, 1  ;;  %p3741_p7 = pnand %p1490_p3, %p1489_p2 }
  0xc7   : >> { %v1111_v50 = vadd.f32 %v1107_v58, %v1095_v38  ;;  %v1148_v20 = vrot.slane %v1142_v47, 3  ;;  %v1150_v15 = vrot.slane %v1143_v46, 3  ;;  %v1157_v7 = vmul.f32 %v1156_v49, %v1130_v55 }
  0xc8   : >> { %v991_v42 = vadd.f32 %v3454_v14, %v861_v4  ;;  %v1158_v9 = vmul.f32 %v1156_v49, %v1131_v27  ;;  %v1159_v24 = vmul.f32 %v1156_v49, %v3493_v35  ;;  %v1173_v16 = vmul.f32 %v1172_v62, %v1131_v27 }
  0xc9   : >> { %v992_v53 = vadd.f32 %v3461_v51, %v861_v4  ;;  %v1149_v63 = vsel %vm515_vm2, %v1147_v6, %v1148_v20  ;;  %v1151_v14 = vsel %vm515_vm2, %v1148_v20, %v1150_v15  ;;  %v1163_v10 = vrot.slane %v1157_v7, 6 }
  0xca   : >> { %v1113_v57 = vmul.f32 %v1112_v34, %v1110_v5  ;;  %v1154_v52 = vadd.f32 %v1149_v63, %v1136_v19  ;;  %v1155_v8 = vadd.f32 %v1151_v14, %v1137_v13  ;;  %v1164_v21 = vrot.slane %v1158_v9, 6  ;;  %v1134_v19 = vld [vmem:[%s3486_s12 + $0x20] sm:$0x3] }
  0xcb   : >> { %v1114_v11 = vmul.f32 %v1112_v34, %v1111_v50  ;;  %v1166_v54 = vrot.slane %v1159_v24, 6  ;;  %v1174_v4 = vmul.f32 %v1172_v62, %v3493_v35  ;;  %v1175_v51 = vmul.f32 %v1172_v62, %v1133_v59 }
  0xcc   : >> { %v1165_v25 = vsel %vm910_vm4, %v1163_v10, %v1164_v21  ;;  %v1179_v22 = vrot.slane %v1173_v16, 1  ;;  %v1188_v60 = vperm.slane %v3305_v45, 2  ;;  %v1204_v17 = vperm.slane %v3305_v45, 3 }
  0xcd   : >> { %v1167_v26 = vsel %vm910_vm4, %v1164_v21, %v1166_v54  ;;  %v1170_v23 = vadd.f32 %v1165_v25, %v1154_v52  ;;  %v1180_v28 = vrot.slane %v1174_v4, 1  ;;  %v1182_v29 = vrot.slane %v1175_v51, 1 }
  0xce   : >> { %v1171_v30 = vadd.f32 %v1167_v26, %v1155_v8  ;;  %v1189_v31 = vmul.f32 %v1188_v60, %v1131_v27  ;;  %v1190_v32 = vmul.f32 %v1188_v60, %v3493_v35  ;;  %v1191_v18 = vmul.f32 %v1188_v60, %v1133_v59 }
  0xcf   : >> { %v1181_v55 = vsel %vm481_vm0, %v1179_v22, %v1180_v28  ;;  %v1183_v61 = vsel %vm481_vm0, %v1180_v28, %v1182_v29  ;;  %v1205_v33 = vmul.f32 %v1204_v17, %v1131_v27  ;;  %v1206_v12 = vmul.f32 %v1204_v17, %v3493_v35 }
  0xd0   : >> { %v1186_v34 = vadd.f32 %v1181_v55, %v1170_v23  ;;  %v1187_v36 = vadd.f32 %v1183_v61, %v1171_v30  ;;  %v1195_v56 = vrot.slane %v1189_v31, 4  ;;  %v1196_v37 = vrot.slane %v1190_v32, 4  ;;  %v1256_v55 = vld [vmem:[%s3567_s22 + $0x18] sm:$0xff] }
  0xd1   : >> { %v1198_v38 = vrot.slane %v1191_v18, 4  ;;  %v1207_v39 = vmul.f32 %v1204_v17, %v1133_v59  ;;  %v1211_v13 = vrot.slane %v1205_v33, 7  ;;  %v1212_v40 = vrot.slane %v1206_v12, 7 }
  0xd2   : >> { %v3549_v41 = vadd.f32 %v1113_v57, %v991_v42  ;;  %v1197_v27 = vsel %vm532_vm3, %v1195_v56, %v1196_v37  ;;  %v1220_v47 = vperm.slane %v3305_v45, 4  ;;  %v1258_v46 = vperm.slane %v3305_v45, 5 }
  0xd3   : >> { %v1199_v49 = vsel %vm532_vm3, %v1196_v37, %v1198_v38  ;;  %v1202_v58 = vadd.f32 %v1197_v27, %v1186_v34  ;;  %v1213_v5 = vsel %vm961_vm5, %v1211_v13, %v1212_v40  ;;  %v1214_v6 = vrot.slane %v1207_v39, 7 }
  0xd4   : >> { %v1203_v62 = vadd.f32 %v1199_v49, %v1187_v36  ;;  %v1221_v50 = vmul.f32 %v1220_v47, %v3493_v35  ;;  %v1222_v20 = vmul.f32 %v1220_v47, %v1133_v59  ;;  %v1223_v15 = vmul.f32 %v1220_v47, %v1134_v19  ;;  %v1253_v35 = vld [vmem:[%s3567_s22] sm:$0xff]  ;;  %v1254_v59 = vld [vmem:[%s3567_s22 + $0x8] sm:$0xff] }
  0xd5   : >> { %v3560_v7 = vadd.f32 %v1114_v11, %v992_v53  ;;  %v1215_v42 = vsel %vm961_vm5, %v1212_v40, %v1214_v6  ;;  %v1218_v9 = vadd.f32 %v1213_v5, %v1202_v58  ;;  %v1236_v24 = vstv %s3546_s16  ;;  %v3573_v53 = vld [vmem:[%s3567_s22 + $0x10] sm:$0xff]  ;;  %s3633_s16 = scalar_lea.vmem [#allocation2], %s1375_s1  ;;  %s3696_s1 = scvt.s32.f32 %s2576_s14 }
  0xd6   : >> { %v1219_v16 = vadd.f32 %v1215_v42, %v1203_v62  ;;  %v1227_v63 = vrot.slane %v1221_v50, 2  ;;  %v1228_v14 = vrot.slane %v1222_v20, 2  ;;  %v1230_v10 = vrot.slane %v1223_v15, 2 }
  0xd7   : >> { %v1259_v57 = vmul.f32 %v1258_v46, %v1253_v35  ;;  %v1260_v52 = vmul.f32 %v1258_v46, %v1254_v59  ;;  %v1263_v8 = vperm.slane %v3305_v45, 6  ;;  %v1279_v21 = vperm.slane %v3305_v45, 7 }
  0xd8   : >> { %v1229_v11 = vsel %vm498_vm1, %v1227_v63, %v1228_v14  ;;  %v1231_v54 = vsel %vm498_vm1, %v1228_v14, %v1230_v10  ;;  %v1295_v4 = vperm.slane %v3310_v48, 0  ;;  %v1311_v51 = vperm.slane %v3310_v48, 1  ;;  %v1257_v14 = vld [vmem:[%s3567_s22 + $0x20] sm:$0x3]  ;;  %s1496_s22 = scalar_select %p1495_p10, %s3624_s30, 0 }
  0xd9   : >> { %v1234_v25 = vadd.f32 %v1229_v11, %v1218_v9  ;;  %v1235_v22 = vadd.f32 %v1231_v54, %v1219_v16  ;;  %v1264_v60 = vmul.f32 %v1263_v8, %v1253_v35  ;;  %v1265_v17 = vmul.f32 %v1263_v8, %v1254_v59  ;;  %s2582_s30 = scalar_select %p3741_p7, 0, 1 }
  0xda   : >> { %v1266_v26 = vmul.f32 %v1263_v8, %v3573_v53  ;;  %v1280_v23 = vmul.f32 %v1279_v21, %v1253_v35  ;;  %v1281_v28 = vmul.f32 %v1279_v21, %v1254_v59  ;;  %v1282_v29 = vmul.f32 %v1279_v21, %v3573_v53  ;;  %s4326_s22 = smov (!%p2583_p13, %s1496_s22), 15  ;;  %p3806_p10 = pnand %p1614_p9, %p1613_p8 }
  0xdb   : >> { %v1270_v30 = vrot.slane %v1264_v60, 3  ;;  %v1271_v31 = vrot.slane %v1265_v17, 3  ;;  %v1327_v32 = vperm.slane %v3310_v48, 2  ;;  %v1343_v18 = vperm.slane %v3310_v48, 3  ;;  %s1499_s12 = smul.u32 40, %s4326_s22  ;;  %s3771_s14 = scvt.s32.f32 %s2582_s30 }
  0xdc   : >> { %v1273_v61 = vrot.slane %v1266_v26, 3  ;;  %v1286_v33 = vrot.slane %v1280_v23, 6  ;;  %v1287_v12 = vrot.slane %v1281_v28, 6  ;;  %v1289_v34 = vrot.slane %v1282_v29, 6 }
  0xdd   : >> { %v1237_v36 = vmul.f32 %v1236_v24, %v1234_v25  ;;  %v3599_v56 = vmul.f32 %v1236_v24, %v1235_v22  ;;  %v1272_v37 = vsel %vm515_vm2, %v1270_v30, %v1271_v31  ;;  %v1296_v19 = vmul.f32 %v1295_v4, %v1254_v59 }
  0xde   : >> { %v1274_v38 = vsel %vm515_vm2, %v1271_v31, %v1273_v61  ;;  %v1277_v39 = vadd.f32 %v1272_v37, %v1259_v57  ;;  %v1288_v13 = vsel %vm910_vm4, %v1286_v33, %v1287_v12  ;;  %v1290_v40 = vsel %vm910_vm4, %v1287_v12, %v1289_v34 }
  0xdf   : >> { %v1278_v27 = vadd.f32 %v1274_v38, %v1260_v52  ;;  %v1297_v47 = vmul.f32 %v1295_v4, %v3573_v53  ;;  %v1298_v46 = vmul.f32 %v1295_v4, %v1256_v55  ;;  %v1302_v49 = vrot.slane %v1296_v19, 1 }
  0xe0   : >> { %v1293_v58 = vadd.f32 %v1288_v13, %v1277_v39  ;;  %v1312_v5 = vmul.f32 %v1311_v51, %v1254_v59  ;;  %v1313_v6 = vmul.f32 %v1311_v51, %v3573_v53  ;;  %v1314_v62 = vmul.f32 %v1311_v51, %v1256_v55 }
  0xe1   : >> { %v1294_v50 = vadd.f32 %v1290_v40, %v1278_v27  ;;  %v1303_v20 = vrot.slane %v1297_v47, 1  ;;  %v1305_v15 = vrot.slane %v1298_v46, 1  ;;  %v1328_v42 = vmul.f32 %v1327_v32, %v1254_v59 }
  0xe2   : >> { %v1318_v9 = vrot.slane %v1312_v5, 4  ;;  %v1319_v24 = vrot.slane %v1313_v6, 4  ;;  %v1321_v16 = vrot.slane %v1314_v62, 4  ;;  %v1329_v63 = vmul.f32 %v1327_v32, %v3573_v53 }
  0xe3   : >> { %v1304_v10 = vsel %vm481_vm0, %v1302_v49, %v1303_v20  ;;  %v1306_v35 = vsel %vm481_vm0, %v1303_v20, %v1305_v15  ;;  %v1330_v57 = vmul.f32 %v1327_v32, %v1256_v55  ;;  %v1334_v52 = vrot.slane %v1328_v42, 7  ;;  %v1380_v42 = vld [vmem:[%s3633_s16 + $0x18] sm:$0xff] }
  0xe4   : >> { %v1309_v8 = vadd.f32 %v1304_v10, %v1293_v58  ;;  %v1310_v21 = vadd.f32 %v1306_v35, %v1294_v50  ;;  %v1320_v59 = vsel %vm532_vm3, %v1318_v9, %v1319_v24  ;;  %v1322_v11 = vsel %vm532_vm3, %v1319_v24, %v1321_v16 }
  0xe5   : >> { %v1335_v54 = vrot.slane %v1329_v63, 7  ;;  %v1337_v4 = vrot.slane %v1330_v57, 7  ;;  %v1344_v51 = vmul.f32 %v1343_v18, %v3573_v53  ;;  %v1345_v25 = vmul.f32 %v1343_v18, %v1256_v55  ;;  %v1378_v55 = vld [vmem:[%s3633_s16 + $0x8] sm:$0xff] }
  0xe6   : >> { %v3627_v22 = vadd.f32 %v1237_v36, %v3549_v41  ;;  %v1325_v60 = vadd.f32 %v1320_v59, %v1309_v8  ;;  %v1326_v17 = vadd.f32 %v1322_v11, %v1310_v21  ;;  %v1346_v26 = vmul.f32 %v1343_v18, %v1257_v14  ;;  %v1377_v41 = vld [vmem:[%s3633_s16] sm:$0xff]  ;;  %v3638_v18 = vld [vmem:[%s3633_s16 + $0x10] sm:$0xff] }
  0xe7   : >> { %v1336_v23 = vsel %vm961_vm5, %v1334_v52, %v1335_v54  ;;  %v1338_v28 = vsel %vm961_vm5, %v1335_v54, %v1337_v4  ;;  %v1350_v29 = vrot.slane %v1344_v51, 2  ;;  %v1351_v30 = vrot.slane %v1345_v25, 2 }
  0xe8   : >> { %v1341_v31 = vadd.f32 %v1336_v23, %v1325_v60  ;;  %v1342_v53 = vadd.f32 %v1338_v28, %v1326_v17  ;;  %v1353_v32 = vrot.slane %v1346_v26, 2  ;;  %v1382_v61 = vperm.slane %v3310_v48, 4 }
  0xe9   : >> { %v1352_v33 = vsel %vm498_vm1, %v1350_v29, %v1351_v30  ;;  %v1359_v12 = vstv %s3618_s13  ;;  %v1387_v34 = vperm.slane %v3310_v48, 5  ;;  %v1403_v36 = vperm.slane %v3310_v48, 6  ;;  %s3705_s13 = scalar_lea.vmem [#allocation2], %s1499_s12 }
  0xea   : >> { %v1354_v37 = vsel %vm498_vm1, %v1351_v30, %v1353_v32  ;;  %v1357_v19 = vadd.f32 %v1352_v33, %v1341_v31  ;;  %v1383_v38 = vmul.f32 %v1382_v61, %v1377_v41  ;;  %v1419_v39 = vperm.slane %v3310_v48, 7 }
  0xeb   : >> { %v1358_v13 = vadd.f32 %v1354_v37, %v1342_v53  ;;  %v1388_v40 = vmul.f32 %v1387_v34, %v1377_v41  ;;  %v1389_v27 = vmul.f32 %v1387_v34, %v1378_v55  ;;  %v1390_v47 = vmul.f32 %v1387_v34, %v3638_v18  ;;  %v1381_v53 = vld [vmem:[%s3633_s16 + $0x20] sm:$0x3]  ;;  %s1620_s16 = scalar_select %p1619_p1, %s3694_s29, 0 }
  0xec   : >> { %v1384_v46 = vmul.f32 %v1382_v61, %v1378_v55  ;;  %v1404_v49 = vmul.f32 %v1403_v36, %v1377_v41  ;;  %v1405_v58 = vmul.f32 %v1403_v36, %v1378_v55  ;;  %v1406_v5 = vmul.f32 %v1403_v36, %v3638_v18  ;;  %s2588_s29 = scalar_select %p3806_p10, 0, 1 }
  0xed   : >> { %v3658_v6 = vadd.f32 %v3599_v56, %v3560_v7  ;;  %v1394_v62 = vrot.slane %v1388_v40, 3  ;;  %v1395_v50 = vrot.slane %v1389_v27, 3  ;;  %v1397_v20 = vrot.slane %v1390_v47, 3  ;;  %s4328_s16 = smov (!%p2589_p4, %s1620_s16), 15 }
  0xee   : >> { %v1360_v15 = vmul.f32 %v1359_v12, %v1357_v19  ;;  %v1410_v9 = vrot.slane %v1404_v49, 6  ;;  %v1411_v24 = vrot.slane %v1405_v58, 6  ;;  %v1413_v16 = vrot.slane %v1406_v5, 6  ;;  %s1623_s15 = smul.u32 40, %s4328_s16  ;;  %s2594_s16 = sshll.u32 %s2931_s0, 4 }
  0xef   : >> { %v3661_v63 = vmul.f32 %v1359_v12, %v1358_v13  ;;  %v1396_v7 = vsel %vm515_vm2, %v1394_v62, %v1395_v50  ;;  %v1398_v56 = vsel %vm515_vm2, %v1395_v50, %v1397_v20  ;;  %v1420_v14 = vmul.f32 %v1419_v39, %v1378_v55  ;;  %s1737_s22 = scalar_lea.vmem [#allocation3], %s2594_s16  ;;  %s859_s0 = sadd.s32 1, %s2931_s0  }
  0xf0   : >> { %v1401_v10 = vadd.f32 %v1396_v7, %v1383_v38  ;;  %v1402_v35 = vadd.f32 %v1398_v56, %v1384_v46  ;;  %v1412_v57 = vsel %vm910_vm4, %v1410_v9, %v1411_v24  ;;  %v1414_v52 = vsel %vm910_vm4, %v1411_v24, %v1413_v16  ;;  %v3709_v24 = vld [vmem:[%s3705_s13 + $0x8] sm:$0xff]  ;;  %v3712_v16 = vld [vmem:[%s3705_s13 + $0x10] sm:$0xff]  ;;  %s3779_s12 = scalar_lea.vmem [#allocation2], %s1623_s15  ;;  %p856_p11 = scmp.ge.s32.totalorder %s859_s0, 16  }
  0xf1   : >> { %v1421_v8 = vmul.f32 %v1419_v39, %v3638_v18  ;;  %v1422_v21 = vmul.f32 %v1419_v39, %v1380_v42  ;;  %v1426_v59 = vrot.slane %v1420_v14, 1  ;;  %v1435_v11 = vperm.slane %v3315_v0, 0  ;;  %v2748_v43 = vld [vmem:[%s4288_s5 + $0x20] sm:$0xff] (%p856_p11)  ;;  %v2747_v44 = vld [vmem:[%s4288_s5 + $0x18] sm:$0xff] (%p856_p11)  ;;  %v2746_v45 = vld [vmem:[%s4288_s5 + $0x10] sm:$0xff] (%p856_p11)  ;;  %s4308_s0 = sand.u32 (%p856_p11), 1, %s2915_s18  }
  0xf2   : >> { %v1417_v54 = vadd.f32 %v1412_v57, %v1401_v10  ;;  %v1418_v4 = vadd.f32 %v1414_v52, %v1402_v35  ;;  %v1451_v51 = vperm.slane %v3315_v0, 1  ;;  %v1467_v25 = vperm.slane %v3315_v0, 2  ;;  %v2745_v48 = vld [vmem:[%s4288_s5 + $0x8] sm:$0xff] (%p856_p11)  ;;  %s2415_s16 = scalar_lea.sflag (%p856_p11), [#allocation5], %s4308_s0 }
  0xf3   : >> { %v1427_v60 = vrot.slane %v1421_v8, 1  ;;  %v1429_v17 = vrot.slane %v1422_v21, 1  ;;  %v1436_v26 = vmul.f32 %v1435_v11, %v1378_v55  ;;  %v1437_v23 = vmul.f32 %v1435_v11, %v3638_v18 }
  0xf4   : >> { %v1438_v28 = vmul.f32 %v1435_v11, %v1380_v42  ;;  %v1452_v29 = vmul.f32 %v1451_v51, %v1378_v55  ;;  %v1453_v30 = vmul.f32 %v1451_v51, %v3638_v18  ;;  %v1454_v31 = vmul.f32 %v1451_v51, %v1380_v42 }
  0xf5   : >> { %v1428_v32 = vsel %vm481_vm0, %v1426_v59, %v1427_v60  ;;  %v1430_v41 = vsel %vm481_vm0, %v1427_v60, %v1429_v17  ;;  %v1442_v61 = vrot.slane %v1436_v26, 4  ;;  %v1443_v33 = vrot.slane %v1437_v23, 4 }
  0xf6   : >> { %v1433_v12 = vadd.f32 %v1428_v32, %v1417_v54  ;;  %v1434_v34 = vadd.f32 %v1430_v41, %v1418_v4  ;;  %v1445_v36 = vrot.slane %v1438_v28, 4  ;;  %v1458_v37 = vrot.slane %v1452_v29, 7 }
  0xf7   : >> { %v1444_v19 = vsel %vm532_vm3, %v1442_v61, %v1443_v33  ;;  %v1459_v38 = vrot.slane %v1453_v30, 7  ;;  %v1461_v55 = vrot.slane %v1454_v31, 7  ;;  %v1468_v39 = vmul.f32 %v1467_v25, %v3638_v18  ;;  %v1504_v30 = vld [vmem:[%s3705_s13 + $0x18] sm:$0xff] }
  0xf8   : >> { %v1446_v13 = vsel %vm532_vm3, %v1443_v33, %v1445_v36  ;;  %v1449_v40 = vadd.f32 %v1444_v19, %v1433_v12  ;;  %v1469_v27 = vmul.f32 %v1467_v25, %v1380_v42  ;;  %v1470_v47 = vmul.f32 %v1467_v25, %v1381_v53  ;;  %v1501_v42 = vld [vmem:[%s3705_s13] sm:$0xff] }
  0xf9   : >> { %v1450_v46 = vadd.f32 %v1446_v13, %v1434_v34  ;;  %v1460_v49 = vsel %vm961_vm5, %v1458_v37, %v1459_v38  ;;  %v1462_v58 = vsel %vm961_vm5, %v1459_v38, %v1461_v55  ;;  %v1474_v5 = vrot.slane %v1468_v39, 2 }
  0xfa   : >> { %v3702_v62 = vadd.f32 %v1360_v15, %v3627_v22  ;;  %v1465_v18 = vadd.f32 %v1460_v49, %v1449_v40  ;;  %v1475_v50 = vrot.slane %v1469_v27, 2  ;;  %v1477_v20 = vrot.slane %v1470_v47, 2 }
  0xfb   : >> { %v1466_v9 = vadd.f32 %v1462_v58, %v1450_v46  ;;  %v1506_v22 = vperm.slane %v3315_v0, 3  ;;  %v1511_v15 = vperm.slane %v3315_v0, 4  ;;  %v1527_v7 = vperm.slane %v3315_v0, 5 }
  0xfc   : >> { %v3719_v56 = vadd.f32 %v3661_v63, %v3658_v6  ;;  %v1476_v14 = vsel %vm498_vm1, %v1474_v5, %v1475_v50  ;;  %v1478_v10 = vsel %vm498_vm1, %v1475_v50, %v1477_v20  ;;  %v1483_v35 = vstv %s3696_s1 }
  0xfd   : >> { %v1481_v57 = vadd.f32 %v1476_v14, %v1465_v18  ;;  %v1482_v52 = vadd.f32 %v1478_v10, %v1466_v9  ;;  %v1543_v8 = vperm.slane %v3315_v0, 6  ;;  %v1559_v21 = vperm.slane %v3315_v0, 7  ;;  %v2744_v0 = vld [vmem:[%s4288_s5] sm:$0xff] (%p856_p11) }
  0xfe   : >> { %v1512_v59 = vmul.f32 %v1511_v15, %v1501_v42  ;;  %v1513_v6 = vmul.f32 %v1511_v15, %v3709_v24  ;;  %v1514_v63 = vmul.f32 %v1511_v15, %v3712_v16  ;;  %v1528_v11 = vmul.f32 %v1527_v7, %v1501_v42 }
  0xff   : >> { %v1507_v54 = vmul.f32 %v1506_v22, %v1501_v42  ;;  %v1508_v4 = vmul.f32 %v1506_v22, %v3709_v24  ;;  %v1529_v51 = vmul.f32 %v1527_v7, %v3709_v24  ;;  %v1530_v25 = vmul.f32 %v1527_v7, %v3712_v16  ;;  %v1505_v42 = vld [vmem:[%s3705_s13 + $0x20] sm:$0x3]  ;;  %s1618_s13 = scvt.s32.f32 %s2588_s29 }
 0x100   : >> { %v1518_v60 = vrot.slane %v1512_v59, 3  ;;  %v1519_v17 = vrot.slane %v1513_v6, 3  ;;  %v1521_v26 = vrot.slane %v1514_v63, 3  ;;  %v1534_v23 = vrot.slane %v1528_v11, 6 }
 0x101   : >> { %v1484_v28 = vmul.f32 %v1483_v35, %v1481_v57  ;;  %v1485_v29 = vmul.f32 %v1483_v35, %v1482_v52  ;;  %v1535_v31 = vrot.slane %v1529_v51, 6  ;;  %v1537_v53 = vrot.slane %v1530_v25, 6 }
 0x102   : >> { %v1520_v32 = vsel %vm515_vm2, %v1518_v60, %v1519_v17  ;;  %v1522_v41 = vsel %vm515_vm2, %v1519_v17, %v1521_v26  ;;  %v1544_v61 = vmul.f32 %v1543_v8, %v3709_v24  ;;  %v1545_v33 = vmul.f32 %v1543_v8, %v3712_v16  ;;  %v1625_v26 = vld [vmem:[%s3779_s12] sm:$0xff] }
 0x103   : >> { %v1525_v12 = vadd.f32 %v1520_v32, %v1507_v54  ;;  %v1526_v34 = vadd.f32 %v1522_v41, %v1508_v4  ;;  %v1536_v36 = vsel %vm910_vm4, %v1534_v23, %v1535_v31  ;;  %v1538_v37 = vsel %vm910_vm4, %v1535_v31, %v1537_v53  ;;  %v1626_v23 = vld [vmem:[%s3779_s12 + $0x8] sm:$0xff]  ;;  %v3788_v53 = vld [vmem:[%s3779_s12 + $0x10] sm:$0xff] }
 0x104   : >> { %v1546_v19 = vmul.f32 %v1543_v8, %v1504_v30  ;;  %v1550_v38 = vrot.slane %v1544_v61, 1  ;;  %v1551_v55 = vrot.slane %v1545_v33, 1  ;;  %v1560_v39 = vmul.f32 %v1559_v21, %v3709_v24 }
 0x105   : >> { %v1541_v13 = vadd.f32 %v1536_v36, %v1525_v12  ;;  %v1542_v40 = vadd.f32 %v1538_v37, %v1526_v34  ;;  %v1561_v27 = vmul.f32 %v1559_v21, %v3712_v16  ;;  %v1562_v47 = vmul.f32 %v1559_v21, %v1504_v30 }
 0x106   : >> { %v1552_v46 = vsel %vm481_vm0, %v1550_v38, %v1551_v55  ;;  %v1553_v49 = vrot.slane %v1546_v19, 1  ;;  %v1566_v58 = vrot.slane %v1560_v39, 4  ;;  %v1575_v5 = vperm.slane %v3320_v1, 0 }
 0x107   : >> { %v1557_v18 = vadd.f32 %v1552_v46, %v1541_v13  ;;  %v1567_v50 = vrot.slane %v1561_v27, 4  ;;  %v1569_v20 = vrot.slane %v1562_v47, 4  ;;  %v1591_v9 = vperm.slane %v3320_v1, 1  ;;  %v1628_v27 = vld [vmem:[%s3779_s12 + $0x18] sm:$0xff] }
 0x108   : >> { %v1554_v22 = vsel %vm481_vm0, %v1551_v55, %v1553_v49  ;;  %v1576_v15 = vmul.f32 %v1575_v5, %v3709_v24  ;;  %v1577_v7 = vmul.f32 %v1575_v5, %v3712_v16  ;;  %v1578_v14 = vmul.f32 %v1575_v5, %v1504_v30 }
 0x109   : >> { %v1558_v10 = vadd.f32 %v1554_v22, %v1542_v40  ;;  %v1568_v35 = vsel %vm532_vm3, %v1566_v58, %v1567_v50  ;;  %v1570_v57 = vsel %vm532_vm3, %v1567_v50, %v1569_v20  ;;  %v1592_v52 = vmul.f32 %v1591_v9, %v3712_v16 }
 0x10a   : >> { %v1573_v8 = vadd.f32 %v1568_v35, %v1557_v18  ;;  %v1582_v21 = vrot.slane %v1576_v15, 7  ;;  %v1583_v59 = vrot.slane %v1577_v7, 7  ;;  %v1585_v6 = vrot.slane %v1578_v14, 7 }
 0x10b   : >> { %v1574_v63 = vadd.f32 %v1570_v57, %v1558_v10  ;;  %v1593_v11 = vmul.f32 %v1591_v9, %v1504_v30  ;;  %v1594_v24 = vmul.f32 %v1591_v9, %v1505_v42  ;;  %v1598_v54 = vrot.slane %v1592_v52, 2 }
 0x10c   : >> { %v1584_v4 = vsel %vm961_vm5, %v1582_v21, %v1583_v59  ;;  %v1586_v51 = vsel %vm961_vm5, %v1583_v59, %v1585_v6  ;;  %v1630_v25 = vperm.slane %v3320_v1, 2  ;;  %v3777_v60 = vadd.f32 %v1484_v28, %v3702_v62 }
 0x10d   : >> { %v1599_v16 = vrot.slane %v1593_v11, 2  ;;  %v1601_v17 = vrot.slane %v1594_v24, 2  ;;  %v3784_v30 = vadd.f32 %v1485_v29, %v3719_v56  ;;  %v1607_v31 = vstv %s3771_s14  ;;  %s2768_s14 = sshll.u32 (%p856_p11), %s3018_s21, 8 }
 0x10e   : >> { %v1635_v62 = vperm.slane %v3320_v1, 3  ;;  %v1651_v28 = vperm.slane %v3320_v1, 4  ;;  %v1589_v32 = vadd.f32 %v1584_v4, %v1573_v8  ;;  %v1590_v41 = vadd.f32 %v1586_v51, %v1574_v63  ;;  %s2426_s29 = scalar_lea.hbm (%p856_p11), %s4294_s11, %s2768_s14  ;;  %s2873_s14 = scalar_lea.hbm (%p856_p11), %s4294_s11, 512 }
 0x10f   : >> { %v1600_v61 = vsel %vm498_vm1, %v1598_v54, %v1599_v16  ;;  %v1631_v33 = vmul.f32 %v1630_v25, %v1625_v26  ;;  %v1602_v12 = vsel %vm498_vm1, %v1599_v16, %v1601_v17  ;;  %v1667_v56 = vperm.slane %v3320_v1, 5 }
 0x110   : >> { %v1636_v34 = vmul.f32 %v1635_v62, %v1625_v26  ;;  %v1637_v36 = vmul.f32 %v1635_v62, %v1626_v23  ;;  %v1638_v29 = vmul.f32 %v1635_v62, %v3788_v53  ;;  %v1652_v37 = vmul.f32 %v1651_v28, %v1625_v26 }
 0x111   : >> { %v1653_v19 = vmul.f32 %v1651_v28, %v1626_v23  ;;  %v1654_v38 = vmul.f32 %v1651_v28, %v3788_v53  ;;  %v1632_v55 = vmul.f32 %v1630_v25, %v1626_v23  ;;  %v1683_v40 = vperm.slane %v3320_v1, 6  ;;  %v1629_v25 = vld [vmem:[%s3779_s12 + $0x20] sm:$0x3] }
 0x112   : >> { %v1642_v39 = vrot.slane %v1636_v34, 3  ;;  %v1643_v13 = vrot.slane %v1637_v36, 3  ;;  %v1645_v47 = vrot.slane %v1638_v29, 3  ;;  %v1658_v46 = vrot.slane %v1652_v37, 6 }
 0x113   : >> { %v1659_v49 = vrot.slane %v1653_v19, 6  ;;  %v1661_v58 = vrot.slane %v1654_v38, 6  ;;  %v1605_v5 = vadd.f32 %v1600_v61, %v1589_v32  ;;  %v1606_v18 = vadd.f32 %v1602_v12, %v1590_v41 }
 0x114   : >> { %v1644_v50 = vsel %vm515_vm2, %v1642_v39, %v1643_v13  ;;  %v1668_v20 = vmul.f32 %v1667_v56, %v1626_v23  ;;  %v1646_v9 = vsel %vm515_vm2, %v1643_v13, %v1645_v47  ;;  %v1669_v14 = vmul.f32 %v1667_v56, %v3788_v53 }
 0x115   : >> { %v1649_v42 = vadd.f32 %v1644_v50, %v1631_v33  ;;  %v1660_v22 = vsel %vm910_vm4, %v1658_v46, %v1659_v49  ;;  %v1662_v15 = vsel %vm910_vm4, %v1659_v49, %v1661_v58  ;;  %v1650_v7 = vadd.f32 %v1646_v9, %v1632_v55 }
 0x116   : >> { %v1670_v10 = vmul.f32 %v1667_v56, %v1628_v27  ;;  %v1674_v35 = vrot.slane %v1668_v20, 1  ;;  %v1684_v52 = vmul.f32 %v1683_v40, %v1626_v23  ;;  %v1685_v8 = vmul.f32 %v1683_v40, %v3788_v53 }
 0x117   : >> { %v1665_v57 = vadd.f32 %v1660_v22, %v1649_v42  ;;  %v1686_v21 = vmul.f32 %v1683_v40, %v1628_v27  ;;  %v1666_v59 = vadd.f32 %v1662_v15, %v1650_v7  ;;  %v1675_v6 = vrot.slane %v1669_v14, 1  ;;  %v2749_v7 = vld [vmem:[%s4288_s5 + $0x28] sm:$0xff] (%p856_p11) }
 0x118   : >> { %v1677_v63 = vrot.slane %v1670_v10, 1  ;;  %v1699_v11 = vperm.slane %v3320_v1, 7  ;;  %v1690_v24 = vrot.slane %v1684_v52, 4  ;;  %v1691_v54 = vrot.slane %v1685_v8, 4 }
 0x119   : >> { %v1693_v4 = vrot.slane %v1686_v21, 4  ;;  %v1715_v51 = vperm.slane %v3325_v2, 0  ;;  %v1676_v16 = vsel %vm481_vm0, %v1674_v35, %v1675_v6  ;;  %v1609_v13 = vmul.f32 %v1607_v31, %v1606_v18 }
 0x11a   : >> { %v1678_v17 = vsel %vm481_vm0, %v1675_v6, %v1677_v63  ;;  %v1700_v26 = vmul.f32 %v1699_v11, %v1626_v23  ;;  %v1701_v62 = vmul.f32 %v1699_v11, %v3788_v53  ;;  %v1681_v28 = vadd.f32 %v1676_v16, %v1665_v57 }
 0x11b   : >> { %v1682_v32 = vadd.f32 %v1678_v17, %v1666_v59  ;;  %v1692_v41 = vsel %vm532_vm3, %v1690_v24, %v1691_v54  ;;  %v1694_v61 = vsel %vm532_vm3, %v1691_v54, %v1693_v4  ;;  %v1702_v33 = vmul.f32 %v1699_v11, %v1628_v27 }
 0x11c   : >> { %v1706_v12 = vrot.slane %v1700_v26, 7  ;;  %v1707_v34 = vrot.slane %v1701_v62, 7  ;;  %v1716_v36 = vmul.f32 %v1715_v51, %v3788_v53  ;;  %v1697_v56 = vadd.f32 %v1692_v41, %v1681_v28 }
 0x11d   : >> { %v1698_v29 = vadd.f32 %v1694_v61, %v1682_v32  ;;  %v1717_v37 = vmul.f32 %v1715_v51, %v1628_v27  ;;  %v1718_v19 = vmul.f32 %v1715_v51, %v1629_v25  ;;  %v1608_v23 = vmul.f32 %v1607_v31, %v1605_v5 }
 0x11e   : >> { %v1708_v38 = vsel %vm961_vm5, %v1706_v12, %v1707_v34  ;;  %v1709_v55 = vrot.slane %v1702_v33, 7  ;;  %v1722_v39 = vrot.slane %v1716_v36, 2  ;;  %v1731_v50 = vstv %s1618_s13  ;;  %s2429_s13 = sshll.u32 (%p856_p11), %s2426_s29, 4  ;;  %s2430_s13 = int_to_ptr.hbm [resolvable:$true] %s2429_s13 }
 0x11f   : >> { %v1713_v40 = vadd.f32 %v1708_v38, %v1697_v56  ;;  %v1723_v47 = vrot.slane %v1717_v37, 2  ;;  %v1725_v46 = vrot.slane %v1718_v19, 2  ;;  %v1610_v20 = vadd.f32 %v1608_v23, %v3777_v60  ;;  %v2751_v60 = vld [vmem:[%s4288_s5 + $0x38] sm:$0xff] (%p856_p11)  ;;  %s2867_s21 = sshra.s32 (%p856_p11), %s2430_s13, 4  ;;  %s2868_s21 = int_to_ptr.hbm [resolvable:$true] %s2867_s21 }
 0x120   : >> { %v1710_v49 = vsel %vm961_vm5, %v1707_v34, %v1709_v55  ;;  %v1611_v9 = vadd.f32 %v1609_v13, %v3784_v30  ;;  %1889 = vmatpush.bf16.msra.mxu0 (%p856_p11), %v2751_v60  ;;  %v2750_v30 = vld [vmem:[%s4288_s5 + $0x30] sm:$0xff] (%p856_p11)  ;;  %2769 = vmatpush.bf16.msra.mxu2 (%p856_p11), %v2751_v60  ;;  %vm2136_vm7 = vcmask (%p856_p11), 64512   ;;  %p2874_p1 = scmp.lt.s32.totalorder (%p856_p11), %s2868_s21, %s4294_s11 }
 0x121   : >> { %v1714_v53 = vadd.f32 %v1710_v49, %v1698_v29  ;;  %v1724_v58 = vsel %vm498_vm1, %v1722_v39, %v1723_v47  ;;  %v1726_v27 = vsel %vm498_vm1, %v1723_v47, %v1725_v46 }
 0x122   : >> { %v1729_v5 = vadd.f32 %v1724_v58, %v1713_v40 }
 0x123   : >> { %v1730_v42 = vadd.f32 %v1726_v27, %v1714_v53 }
 0x124   : >> { %v1732_v22 = vmul.f32 %v1731_v50, %v1729_v5  ;;  %1890 = vmatpush.bf16.msra.mxu0 (%p856_p11), %v2750_v30  ;;  %2770 = vmatpush.bf16.msra.mxu2 (%p856_p11), %v2750_v30 }
 0x125   : >> { %v1733_v31 = vmul.f32 %v1731_v50, %v1730_v42  ;;  %858 = sbr.rel (!%p856_p11) target bundleno = 154 (0x9a), region = 139 }
 0x126   : >> { %v1734_v18 = vadd.f32 %v1732_v22, %v1610_v20 }
 0x127   : >> { %v1735_v15 = vadd.f32 %v1733_v31, %v1611_v9 }
 0x128   : >> { %1738 = vst [vmem:[%s1737_s22] sm:$0xff] %v1734_v18  ;;  %1891 = vmatpush.bf16.msra.mxu0 (%p856_p11), %v2749_v7  ;;  %2771 = vmatpush.bf16.msra.mxu2 (%p856_p11), %v2749_v7 }
 0x129   : >> { %1739 = vst [vmem:[%s1737_s22 + $0x8] sm:$0xff] %v1735_v15  ;;  %s2869_s22 = scalar_lea.hbm (%p856_p11), %s2868_s21, 256 }
 0x12a   : > { %p2870_p12 = scmp.ne.s32.totalorder %s2868_s21, %s2869_s22  ;;  %p2875_p2 = scmp.lt.s32.totalorder %s2873_s14, %s2869_s22 }
 0x12c   : > { %1892 = vmatpush.bf16.msra.mxu0 %v2748_v43  ;;  %2772 = vmatpush.bf16.msra.mxu2 %v2748_v43  ;;  %p2871_p13 = pnand %p2870_p12, %p3035_p5  ;;  %p2876_p3 = por %p2875_p2, %p2874_p1 }
 0x12e   : > { %p2872_p0 = pneg %p2871_p13 }
 0x130   : > { %1893 = vmatpush.bf16.msra.mxu0 %v2747_v44  ;;  %2773 = vmatpush.bf16.msra.mxu2 %v2747_v44  ;;  %v1773_v1 = vld [vmem:[#allocation3] sm:$0xff]  ;;  %v1774_v2 = vld [vmem:[#allocation3 + $0x8] sm:$0xff]  ;;  %v1791_v14 = vld [vmem:[#allocation3 + $0x90] sm:$0xff]  ;;  %p2877_p4 = pnand %p2876_p3, %p2872_p0 }
 0x131   : > { %v1805_v3 = vpack.c.bf16 %v1774_v2, %v1773_v1  ;;  %v1792_v10 = vld [vmem:[#allocation3 + $0x98] sm:$0xff]  ;;  %v1775_v57 = vld [vmem:[#allocation3 + $0x10] sm:$0xff]  ;;  %v1793_v21 = vld [vmem:[#allocation3 + $0xa0] sm:$0xff] }
 0x132   : > { %v1814_v35 = vpack.c.bf16 %v1792_v10, %v1791_v14  ;;  %v1776_v52 = vld [vmem:[#allocation3 + $0x18] sm:$0xff]  ;;  %v1794_v59 = vld [vmem:[#allocation3 + $0xa8] sm:$0xff]  ;;  %v1777_v63 = vld [vmem:[#allocation3 + $0x20] sm:$0xff] }
 0x133   : > { %v1806_v8 = vpack.c.bf16 %v1776_v52, %v1775_v57  ;;  %v1815_v6 = vpack.c.bf16 %v1794_v59, %v1793_v21  ;;  %v1778_v11 = vld [vmem:[#allocation3 + $0x28] sm:$0xff]  ;;  %v1795_v54 = vld [vmem:[#allocation3 + $0xb0] sm:$0xff]  ;;  %v1796_v4 = vld [vmem:[#allocation3 + $0xb8] sm:$0xff] }
 0x134   : > { %1894 = vmatpush.bf16.msra.mxu0 %v2746_v45  ;;  %2774 = vmatpush.bf16.msra.mxu2 %v2746_v45  ;;  %v1807_v24 = vpack.c.bf16 %v1778_v11, %v1777_v63  ;;  %v1816_v51 = vpack.c.bf16 %v1796_v4, %v1795_v54  ;;  %v1779_v25 = vld [vmem:[#allocation3 + $0x30] sm:$0xff]  ;;  %v1780_v16 = vld [vmem:[#allocation3 + $0x38] sm:$0xff]  ;;  %v1797_v26 = vld [vmem:[#allocation3 + $0xc0] sm:$0xff] }
 0x135   : > { %v1808_v17 = vpack.c.bf16 %v1780_v16, %v1779_v25  ;;  %v1798_v62 = vld [vmem:[#allocation3 + $0xc8] sm:$0xff]  ;;  %v1781_v32 = vld [vmem:[#allocation3 + $0x40] sm:$0xff]  ;;  %v1799_v33 = vld [vmem:[#allocation3 + $0xd0] sm:$0xff] }
 0x136   : > { %v1817_v28 = vpack.c.bf16 %v1798_v62, %v1797_v26  ;;  %v1782_v41 = vld [vmem:[#allocation3 + $0x48] sm:$0xff]  ;;  %v1800_v12 = vld [vmem:[#allocation3 + $0xd8] sm:$0xff]  ;;  %v1783_v36 = vld [vmem:[#allocation3 + $0x50] sm:$0xff] }
 0x137   : > { %v1809_v61 = vpack.c.bf16 %v1782_v41, %v1781_v32  ;;  %v1818_v34 = vpack.c.bf16 %v1800_v12, %v1799_v33  ;;  %v1784_v56 = vld [vmem:[#allocation3 + $0x58] sm:$0xff]  ;;  %v1785_v37 = vld [vmem:[#allocation3 + $0x60] sm:$0xff]  ;;  %v1786_v19 = vld [vmem:[#allocation3 + $0x68] sm:$0xff] }
 0x138   : > { %1895 = vmatpush.bf16.msra.mxu0 %v2745_v48  ;;  %2775 = vmatpush.bf16.msra.mxu2 %v2745_v48  ;;  %v1810_v29 = vpack.c.bf16 %v1784_v56, %v1783_v36  ;;  %v1801_v23 = vld [vmem:[#allocation3 + $0xe0] sm:$0xff]  ;;  %v1802_v38 = vld [vmem:[#allocation3 + $0xe8] sm:$0xff]  ;;  %v1811_v55 = vpack.c.bf16 %v1786_v19, %v1785_v37  ;;  %v1787_v13 = vld [vmem:[#allocation3 + $0x70] sm:$0xff] }
 0x139   : > { %v1819_v39 = vpack.c.bf16 %v1802_v38, %v1801_v23  ;;  %v1788_v40 = vld [vmem:[#allocation3 + $0x78] sm:$0xff]  ;;  %v1803_v47 = vld [vmem:[#allocation3 + $0xf0] sm:$0xff]  ;;  %v1789_v58 = vld [vmem:[#allocation3 + $0x80] sm:$0xff] }
 0x13a   : > { %v1804_v46 = vld [vmem:[#allocation3 + $0xf8] sm:$0xff]  ;;  %v1812_v49 = vpack.c.bf16 %v1788_v40, %v1787_v13  ;;  %v1790_v27 = vld [vmem:[#allocation3 + $0x88] sm:$0xff]  ;;  %v3881_v10 = vld [vmem:[%s4289_s6] ss:$0 sm:$0xff] }
 0x13b   : > { %v1820_v53 = vpack.c.bf16 %v1804_v46, %v1803_v47  ;;  %v1813_v50 = vpack.c.bf16 %v1790_v27, %v1789_v58  ;;  %v2596_v52 = vld [vmem:[%s3086_s24 + $0x3a] sm:$0xff]  ;;  %v2595_v59 = vld [vmem:[%s3086_s24 + $0x32] sm:$0xff]  ;;  %v2599_v16 = vld [vmem:[%s3086_s24 + $0x62] sm:$0xff] }
 0x13c   : > { %1896 = vmatpush.bf16.msra.mxu0 %v2744_v0  ;;  %2776 = vmatpush.bf16.msra.mxu2 %v2744_v0  ;;  %v2598_v54 = vld [vmem:[%s3086_s24 + $0x52] sm:$0xff]  ;;  %v2601_v12 = vld [vmem:[%s3086_s24 + $0x7a] sm:$0xff]  ;;  %v2602_v37 = vld [vmem:[%s3086_s24 + $0x82] sm:$0xff] }
 0x13d   : > { %v2604_v47 = vld [vmem:[%s3086_s24 + $0x9a] sm:$0xff]  ;;  %v2605_v58 = vld [vmem:[%s3086_s24 + $0xaa] sm:$0xff] }
 0x13f   : > { %1897 = vmatmul.bf16.vlgmr.msra.gmra.mxu0 %v1805_v3  ;;  %1942 = vmatmul.bf16.vlgmr.msra.gmra.mxu2 %v1814_v35 }
 0x14f   : > { %1902 = vmatmul.bf16.gmra.mxu0 %v1806_v8  ;;  %1947 = vmatmul.bf16.gmra.mxu2 %v1815_v6  ;;  %v2597_v6 = vld [vmem:[%s3086_s24 + $0x4a] sm:$0xff] }
 0x15f   : > { %1907 = vmatmul.bf16.gmra.mxu0 %v1807_v24  ;;  %1952 = vmatmul.bf16.gmra.mxu2 %v1816_v51 }
 0x16f   : > { %1912 = vmatmul.bf16.gmra.mxu0 %v1808_v17  ;;  %1957 = vmatmul.bf16.gmra.mxu2 %v1817_v28  ;;  %v2600_v28 = vld [vmem:[%s3086_s24 + $0x6a] sm:$0xff] }
 0x17f   : > { %1917 = vmatmul.bf16.gmra.mxu0 %v1809_v61  ;;  %1962 = vmatmul.bf16.gmra.mxu2 %v1818_v34 }
 0x18f   : > { %1922 = vmatmul.bf16.gmra.mxu0 %v1810_v29  ;;  %1967 = vmatmul.bf16.gmra.mxu2 %v1819_v39 }
 0x19f   : > { %1927 = vmatmul.bf16.gmra.mxu0 %v1811_v55  ;;  %1972 = vmatmul.bf16.gmra.mxu2 %v1820_v53  ;;  %v2603_v55 = vld [vmem:[%s3086_s24 + $0x92] sm:$0xff] }
 0x1af   : > { %1932 = vmatmul.bf16.gmra.mxu0 %v1812_v49 }
 0x1bc   : > { %v1898_v20 = vpop.f32.mrf.mxu0 }
 0x1bd   : > { %v1899_v8 = vadd.f32 %v3881_v10, %v1898_v20 }
 0x1bf   : > { %1937 = vmatmul.bf16.gmra.mxu0 %v1813_v50  ;;  %v3895_v4 = vmul.f32 %v2595_v59, %v1899_v8  ;;  %v2609_v59 = vld [vmem:[%s3086_s24 + $0xda] sm:$0xff] }
 0x1c2   : > { %v3864_v22 = vpop.f32.mrf.mxu2 }
 0x1c4   : > { %v1900_v5 = vpop.f32.mrf.mxu0 }
 0x1c5   : > { %v1901_v57 = vadd.f32 %v3881_v10, %v1900_v5 }
 0x1c7   : > { %v3891_v11 = vmul.f32 %v2596_v52, %v1901_v57  ;;  %v2608_v57 = vld [vmem:[%s3086_s24 + $0xca] sm:$0xff] }
 0x1c8   : > { %v2758_v52 = vld [vmem:[%s4290_s7 + $0x30] sm:$0xff] }
 0x1c9   : > { %v2010_v17 = vadd.f32 %v3891_v11, %v3895_v4 }
 0x1ca   : > { %v3866_v15 = vpop.f32.mrf.mxu2 }
 0x1cc   : > { %v1903_v9 = vpop.f32.mrf.mxu0 }
 0x1cd   : > { %v1904_v21 = vadd.f32 %v3881_v10, %v1903_v9 }
 0x1cf   : > { %v3897_v51 = vmul.f32 %v2597_v6, %v1904_v21 }
 0x1d1   : > { %v2011_v41 = vadd.f32 %v2010_v17, %v3897_v51  ;;  %v2757_v17 = vld [vmem:[%s4290_s7 + $0x28] sm:$0xff] }
 0x1d2   : > { %v3868_v30 = vpop.f32.mrf.mxu2 }
 0x1d4   : > { %v1905_v42 = vpop.f32.mrf.mxu0 }
 0x1d5   : > { %v1906_v24 = vadd.f32 %v3881_v10, %v1905_v42  ;;  %v2606_v42 = vld [vmem:[%s3086_s24 + $0xb2] sm:$0xff] }
 0x1d7   : > { %v3903_v26 = vmul.f32 %v2598_v54, %v1906_v24 }
 0x1d9   : > { %v2012_v36 = vadd.f32 %v2011_v41, %v3903_v26 }
 0x1da   : > { %v3870_v43 = vpop.f32.mrf.mxu2 }
 0x1dc   : > { %v1908_v31 = vpop.f32.mrf.mxu0 }
 0x1dd   : > { %v1909_v25 = vadd.f32 %v3881_v10, %v1908_v31  ;;  %v2759_v31 = vld [vmem:[%s4290_s7 + $0x38] sm:$0xff] }
 0x1de   : > { %2120 = vmatpush.bf16.msra.mxu1 %v2759_v31 }
 0x1df   : > { %v3910_v61 = vmul.f32 %v2599_v16, %v1909_v25  ;;  %v2610_v25 = vld [vmem:[%s3086_s24 + $0xe2] sm:$0xff] }
 0x1e1   : > { %v2013_v19 = vadd.f32 %v2012_v36, %v3910_v61  ;;  %v2756_v36 = vld [vmem:[%s4290_s7 + $0x20] sm:$0xff] }
 0x1e2   : > { %v3872_v45 = vpop.f32.mrf.mxu2  ;;  %2121 = vmatpush.bf16.msra.mxu1 %v2758_v52 }
 0x1e3   : > { %v1954_v52 = vadd.f32 %v3881_v10, %v3872_v45 }
 0x1e4   : > { %v1910_v18 = vpop.f32.mrf.mxu0 }
 0x1e5   : > { %v1911_v62 = vadd.f32 %v3881_v10, %v1910_v18 }
 0x1e6   : > { %2122 = vmatpush.bf16.msra.mxu1 %v2757_v17 }
 0x1e7   : > { %v3915_v56 = vmul.f32 %v2600_v28, %v1911_v62 }
 0x1e9   : > { %v2014_v39 = vadd.f32 %v2013_v19, %v3915_v56  ;;  %v2612_v19 = vld [vmem:[%s3086_s24 + $0xfa] sm:$0xff] }
 0x1ea   : > { %v3874_v1 = vpop.f32.mrf.mxu2  ;;  %2123 = vmatpush.bf16.msra.mxu1 %v2756_v36  ;;  %v2620_v36 = vld [vmem:[%s3086_s24 + $0x15a] sm:$0xff] }
 0x1ec   : > { %v1913_v60 = vpop.f32.mrf.mxu0 }
 0x1ed   : > { %v1914_v33 = vadd.f32 %v3881_v10, %v1913_v60 }
 0x1ef   : > { %v3920_v23 = vmul.f32 %v2601_v12, %v1914_v33  ;;  %v2611_v33 = vld [vmem:[%s3086_s24 + $0xf2] sm:$0xff] }
 0x1f1   : > { %v2015_v46 = vadd.f32 %v2014_v39, %v3920_v23 }
 0x1f2   : > { %v3876_v3 = vpop.f32.mrf.mxu2 }
 0x1f3   : > { %v1959_v45 = vadd.f32 %v3881_v10, %v3876_v3 }
 0x1f4   : > { %v1915_v7 = vpop.f32.mrf.mxu0 }
 0x1f5   : > { %v1916_v29 = vadd.f32 %v3881_v10, %v1915_v7 }
 0x1f7   : > { %v3925_v13 = vmul.f32 %v2602_v37, %v1916_v29 }
 0x1f9   : > { %v2016_v20 = vadd.f32 %v2015_v46, %v3925_v13  ;;  %v2755_v46 = vld [vmem:[%s4290_s7 + $0x18] sm:$0xff] }
 0x1fa   : > { %v3883_v35 = vpop.f32.mrf.mxu2  ;;  %2124 = vmatpush.bf16.msra.mxu1 %v2755_v46  ;;  %v2622_v46 = vld [vmem:[%s3086_s24 + $0x172] sm:$0xff] }
 0x1fc   : > { %v1918_v44 = vpop.f32.mrf.mxu0 }
 0x1fd   : > { %v1919_v38 = vadd.f32 %v3881_v10, %v1918_v44  ;;  %v2607_v44 = vld [vmem:[%s3086_s24 + $0xc2] sm:$0xff] }
 0x1ff   : > { %v3930_v49 = vmul.f32 %v2603_v55, %v1919_v38  ;;  %v1944_v55 = vadd.f32 %v3881_v10, %v3864_v22 }
 0x201   : > { %v2017_v18 = vadd.f32 %v2016_v20, %v3930_v49  ;;  %v2614_v20 = vld [vmem:[%s3086_s24 + $0x112] sm:$0xff] }
 0x202   : > { %v3907_v32 = vpop.f32.mrf.mxu2 }
 0x203   : > { %v1964_v3 = vadd.f32 %v3881_v10, %v3907_v32 }
 0x204   : > { %v1920_v48 = vpop.f32.mrf.mxu0 }
 0x205   : > { %v1921_v40 = vadd.f32 %v3881_v10, %v1920_v48 }
 0x207   : > { %v3937_v5 = vmul.f32 %v2604_v47, %v1921_v40  ;;  %v2613_v47 = vld [vmem:[%s3086_s24 + $0x10a] sm:$0xff] }
 0x208   : > { %v4001_v22 = vmul.f32 %v2613_v47, %v1944_v55  ;;  %v2135_v47 = vld [vmem:[%s4291_s8] sm:$0xf] }
 0x209   : > { %v2018_v48 = vadd.f32 %v2017_v18, %v3937_v5  ;;  %v2615_v18 = vld [vmem:[%s3086_s24 + $0x122] sm:$0xff]  ;;  %v2142_v32 = vsel %vm532_vm3, %v2135_v47, 0 }
 0x20a   : > { %v3934_v50 = vpop.f32.mrf.mxu2  ;;  %2151 = vmatpush.bf16.msrb.mxu2 %v2142_v32 }
 0x20c   : > { %v1923_v0 = vpop.f32.mrf.mxu0 }
 0x20d   : > { %v1924_v53 = vadd.f32 %v3881_v10, %v1923_v0 }
 0x20f   : > { %v3945_v60 = vmul.f32 %v2605_v58, %v1924_v53  ;;  %v1946_v53 = vadd.f32 %v3881_v10, %v3866_v15  ;;  %v2754_v15 = vld [vmem:[%s4290_s7 + $0x10] sm:$0xff] }
 0x210   : > { %2125 = vmatpush.bf16.msra.mxu1 %v2754_v15 }
 0x211   : > { %v2019_v8 = vadd.f32 %v2018_v48, %v3945_v60 }
 0x212   : > { %v3967_v16 = vpop.f32.mrf.mxu2 }
 0x214   : > { %v1925_v2 = vpop.f32.mrf.mxu0 }
 0x215   : > { %v1926_v9 = vadd.f32 %v3881_v10, %v1925_v2 }
 0x217   : > { %v3950_v0 = vmul.f32 %v2606_v42, %v1926_v9  ;;  %v1949_v42 = vadd.f32 %v3881_v10, %v3868_v30  ;;  %v2753_v30 = vld [vmem:[%s4290_s7 + $0x8] sm:$0xff] }
 0x218   : > { %2126 = vmatpush.bf16.msra.mxu1 %v2753_v30 }
 0x219   : > { %v2020_v24 = vadd.f32 %v2019_v8, %v3950_v0 }
 0x21a   : > { %v1970_v9 = vpop.f32.mrf.mxu2 }
 0x21c   : > { %v1928_v14 = vpop.f32.mrf.mxu0 }
 0x21d   : > { %v1929_v7 = vadd.f32 %v3881_v10, %v1928_v14 }
 0x21f   : > { %v3958_v21 = vmul.f32 %v2607_v44, %v1929_v7  ;;  %v4010_v7 = vmul.f32 %v2614_v20, %v1946_v53  ;;  %v1951_v44 = vadd.f32 %v3881_v10, %v3870_v43  ;;  %v1956_v43 = vadd.f32 %v3881_v10, %v3874_v1 }
 0x221   : > { %v2021_v62 = vadd.f32 %v2020_v24, %v3958_v21  ;;  %v2618_v24 = vld [vmem:[%s3086_s24 + $0x142] sm:$0xff] }
 0x222   : > { %v4040_v1 = vmul.f32 %v2618_v24, %v1956_v43 }
 0x224   : > { %v1930_v63 = vpop.f32.mrf.mxu0 }
 0x225   : > { %v1931_v2 = vadd.f32 %v3881_v10, %v1930_v63 }
 0x227   : > { %v3963_v54 = vmul.f32 %v2608_v57, %v1931_v2  ;;  %v2616_v2 = vld [vmem:[%s3086_s24 + $0x12a] sm:$0xff]  ;;  %v4019_v57 = vmul.f32 %v2615_v18, %v1949_v42 }
 0x228   : > { %v2624_v18 = vld [vmem:[%s3086_s24 + $0x18a] sm:$0xff] }
 0x229   : > { %v2022_v12 = vadd.f32 %v2021_v62, %v3963_v54  ;;  %v2619_v62 = vld [vmem:[%s3086_s24 + $0x152] sm:$0xff] }
 0x22c   : > { %v1933_v34 = vpop.f32.mrf.mxu0 }
 0x22d   : > { %v1934_v14 = vadd.f32 %v3881_v10, %v1933_v34 }
 0x22f   : > { %v3973_v28 = vmul.f32 %v2609_v59, %v1934_v14  ;;  %v2617_v14 = vld [vmem:[%s3086_s24 + $0x13a] sm:$0xff]  ;;  %v4025_v59 = vmul.f32 %v2616_v2, %v1951_v44 }
 0x231   : > { %v2023_v29 = vadd.f32 %v2022_v12, %v3973_v28 }
 0x234   : > { %v1935_v27 = vpop.f32.mrf.mxu0 }
 0x235   : > { %v1936_v63 = vadd.f32 %v3881_v10, %v1935_v27 }
 0x237   : > { %v3978_v34 = vmul.f32 %v2610_v25, %v1936_v63  ;;  %v2752_v63 = vld [vmem:[%s4290_s7] sm:$0xff]  ;;  %v4034_v25 = vmul.f32 %v2617_v14, %v1954_v52 }
 0x238   : > { %2127 = vmatpush.bf16.msra.mxu1 %v2752_v63  ;;  %v2625_v52 = vld [vmem:[%s3086_s24 + $0x19a] sm:$0xff] }
 0x239   : > { %v2024_v39 = vadd.f32 %v2023_v29, %v3978_v34  ;;  %v4046_v29 = vmul.f32 %v2619_v62, %v1959_v45 }
 0x23c   : > { %v1938_v6 = vpop.f32.mrf.mxu0 }
 0x23d   : > { %v1939_v41 = vadd.f32 %v3881_v10, %v1938_v6 }
 0x23f   : > { %v3984_v37 = vmul.f32 %v2611_v33, %v1939_v41  ;;  %v1973_v41 = vpop.f32.mrf.mxu2  ;;  %v1961_v33 = vadd.f32 %v3881_v10, %v3883_v35 }
 0x241   : > { %v2025_v58 = vadd.f32 %v2024_v39, %v3984_v37  ;;  %v4052_v55 = vmul.f32 %v2620_v36, %v1961_v33  ;;  %v1966_v39 = vadd.f32 %v3881_v10, %v3934_v50  ;;  %v2623_v50 = vld [vmem:[%s3086_s24 + $0x182] sm:$0xff] }
 0x243   : > { %v4068_v42 = vmul.f32 %v2622_v46, %v1966_v39 }
 0x244   : > { %v1940_v38 = vpop.f32.mrf.mxu0 }
 0x245   : > { %v1941_v40 = vadd.f32 %v3881_v10, %v1940_v38  ;;  %v2621_v38 = vld [vmem:[%s3086_s24 + $0x16a] sm:$0xff] }
 0x246   : > { %v4062_v53 = vmul.f32 %v2621_v38, %v1964_v3 }
 0x247   : > { %v3998_v27 = vmul.f32 %v2612_v19, %v1941_v40  ;;  %v2934_v40 = vmov 256.0   ;;  %v1975_v44 = vpop.f32.mrf.mxu2 }
 0x248   : > { %2847 = vrcp.f32 %v2934_v40  ;;  %v1976_v43 = vadd.f32 %v3881_v10, %v1975_v44  ;;  %v2763_v44 = vld [vmem:[%s4292_s9 + $0x18] sm:$0xff] }
 0x249   : > { %v2026_v31 = vadd.f32 %v2025_v58, %v3998_v27  ;;  %v1969_v58 = vadd.f32 %v3881_v10, %v3967_v16  ;;  %v1974_v16 = vadd.f32 %v3881_v10, %v1973_v41 }
 0x24b   : > { %v2027_v48 = vadd.f32 %v2026_v31, %v4001_v22  ;;  %v1971_v31 = vadd.f32 %v3881_v10, %v1970_v9  ;;  %v4073_v2 = vmul.f32 %v2623_v50, %v1969_v58  ;;  %v4084_v63 = vmul.f32 %v2625_v52, %v1974_v16  ;;  %v2767_v50 = vld [vmem:[%s4292_s9 + $0x38] sm:$0xff]  ;;  %v2760_v16 = vld [vmem:[%s4292_s9] sm:$0xff] }
 0x24c   : > { %2293 = vmatpush.bf16.msrb.mxu1 %v2767_v50  ;;  %2777 = vmatpush.bf16.msra.mxu3 %v2767_v50 }
 0x24d   : > { %v2028_v8 = vadd.f32 %v2027_v48, %v4010_v7 }
 0x24e   : > { %v2848_v48 = vpop.eup %2847 }
 0x24f   : > { %v2029_v6 = vadd.f32 %v2028_v8, %v4019_v57  ;;  %v4078_v8 = vmul.f32 %v2624_v18, %v1971_v31  ;;  %v2048_v9 = vmul.f32 256.0, %v2848_v48  ;;  %vm2052_vm6 = vweird.f32 %v2848_v48  ;;  %v2766_v31 = vld [vmem:[%s4292_s9 + $0x30] sm:$0xff]  ;;  %v2764_v18 = vld [vmem:[%s4292_s9 + $0x20] sm:$0xff] }
 0x250   : > { %2294 = vmatpush.bf16.msrb.mxu1 %v2766_v31  ;;  %2778 = vmatpush.bf16.msra.mxu3 %v2766_v31 }
 0x251   : > { %v2030_v17 = vadd.f32 %v2029_v6, %v4025_v59  ;;  %v2626_v6 = vld [vmem:[%s3086_s24 + $0x1a2] sm:$0xff]  ;;  %v2049_v62 = vsub.f32 1.0, %v2048_v9  ;;  %s2427_s24 = sshll.u32 %s3147_s25, 4  ;;  %s2428_s24 = int_to_ptr.vmem [resolvable:$true] %s2427_s24 }
 0x253   : > { %v2031_v12 = vadd.f32 %v2030_v17, %v4034_v25  ;;  %v4087_v17 = vmul.f32 %v2626_v6, %v1976_v43 }
 0x255   : > { %v2032_v19 = vadd.f32 %v2031_v12, %v4040_v1  ;;  %v2050_v12 = vmul.f32 %v2848_v48, %v2049_v62 }
 0x257   : > { %v2033_v35 = vadd.f32 %v2032_v19, %v4046_v29  ;;  %v2051_v19 = vadd.f32 %v2848_v48, %v2050_v12 }
 0x259   : > { %v2034_v20 = vadd.f32 %v2033_v35, %v4052_v55  ;;  %v2053_v39 = vsel %vm2052_vm6, %v2848_v48, %v2051_v19  ;;  %v2762_v48 = vld [vmem:[%s4292_s9 + $0x10] sm:$0xff] }
 0x25b   : > { %v2035_v15 = vadd.f32 %v2034_v20, %v4062_v53 }
 0x25d   : > { %v2036_v30 = vadd.f32 %v2035_v15, %v4068_v42  ;;  %v2765_v15 = vld [vmem:[%s4292_s9 + $0x28] sm:$0xff] }
 0x25e   : > { %2295 = vmatpush.bf16.msrb.mxu1 %v2765_v15  ;;  %2779 = vmatpush.bf16.msra.mxu3 %v2765_v15 }
 0x25f   : > { %v2037_v14 = vadd.f32 %v2036_v30, %v4073_v2  ;;  %v2761_v30 = vld [vmem:[%s4292_s9 + $0x8] sm:$0xff] }
 0x261   : > { %v2038_v24 = vadd.f32 %v2037_v14, %v4078_v8 }
 0x262   : > { %2296 = vmatpush.bf16.msrb.mxu1 %v2764_v18  ;;  %2780 = vmatpush.bf16.msra.mxu3 %v2764_v18 }
 0x263   : > { %v2039_v45 = vadd.f32 %v2038_v24, %v4084_v63 }
 0x265   : > { %v2040_v41 = vadd.f32 %v2039_v45, %v4087_v17 }
 0x266   : > { %2297 = vmatpush.bf16.msrb.mxu1 %v2763_v44  ;;  %2781 = vmatpush.bf16.msra.mxu3 %v2763_v44 }
 0x267   : > { %v2041_v33 = vrot.slane %v2040_v41, 4 }
 0x269   : > { %v2042_v36 = vadd.f32 %v2041_v33, %v2040_v41 }
 0x26a   : > { %2298 = vmatpush.bf16.msrb.mxu1 %v2762_v48  ;;  %2782 = vmatpush.bf16.msra.mxu3 %v2762_v48 }
 0x26b   : > { %v2043_v3 = vrot.slane %v2042_v36, 2 }
 0x26d   : > { %v2044_v38 = vadd.f32 %v2043_v3, %v2042_v36 }
 0x26e   : > { %2299 = vmatpush.bf16.msrb.mxu1 %v2761_v30  ;;  %2783 = vmatpush.bf16.msra.mxu3 %v2761_v30 }
 0x26f   : > { %v2045_v10 = vrot.slane %v2044_v38, 1 }
 0x271   : > { %v2046_v35 = vadd.f32 %v2045_v10, %v2044_v38 }
 0x272   : > { %2300 = vmatpush.bf16.msrb.mxu1 %v2760_v16  ;;  %2784 = vmatpush.bf16.msra.mxu3 %v2760_v16 }
 0x273   : > { %v2054_v40 = vmul.f32 %v2053_v39, %v2046_v35 }
 0x275   : > { %v2055_v47 = vpack.c.bf16 %v2054_v40, %v2054_v40 }
 0x277   : > { %2128 = vmatmul.bf16.vlgmr.msra.gmra.mxu1 %v2055_v47 }
 0x2f4   : > { %v2129_v46 = vpop.f32.mrf.mxu1 }
 0x2f5   : > { %v2133_v32 = vmax.f32 %v2129_v46, 0.0 }
 0x2f7   : > { %v2134_v58 = vpack.c.bf16 %v2133_v32, %v2133_v32 }
 0x2f9   : > { %2691 = vmatmul.msk.bf16.vlgmr.msrb.gmra.mxu2 %vm2136_vm7, %v2134_v58 }
 0x2fc   : > { %v2131_v20 = vpop.f32.mrf.mxu1 }
 0x37c   : > { %v2153_v52 = vpop.f32.mrf.mxu2 }
 0x37d   : > { %v2692_v14 = vmul.f32 -1.442695, %v2153_v52 }
 0x37f   : > { %2849 = vpow2.f32 %v2692_v14 }
 0x384   : > { %v2155_v43 = vpop.f32.mrf.mxu2 }
 0x385   : > { %v2850_v6 = vpop.eup %2849 }
 0x386   : > { %v2160_v9 = vadd.f32 1.0, %v2850_v6 }
 0x388   : > { %2851 = vrcp.f32 %v2160_v9  ;;  %v2172_v41 = vand.u32 2147483648, %v2160_v9  ;;  %v2170_v12 = vand.u32 2147483647, %v2160_v9  ;;  %vm2166_vm9 = vweird.f32 %v2160_v9 }
 0x38a   : > { %v2173_v3 = vor.u32 1.1754944e-38, %v2172_v41  ;;  %vm2171_vm11 = vcmp.eq.f32.partialorder %v2170_v12, 8.507059e+37 }
 0x38e   : > { %v2852_v24 = vpop.eup %2851 }
 0x38f   : > { %v2162_v45 = vmul.f32 %v2852_v24, %v2160_v9  ;;  %vm2167_vm8 = vweird.f32 %v2852_v24 }
 0x390   : > { %vm2168_vm10 = vmor %vm2166_vm9, %vm2167_vm8 }
 0x391   : > { %v2163_v62 = vsub.f32 1.0, %v2162_v45 }
 0x393   : > { %v2164_v33 = vmul.f32 %v2852_v24, %v2163_v62 }
 0x395   : > { %v2165_v36 = vadd.f32 %v2852_v24, %v2164_v33 }
 0x397   : > { %v2169_v19 = vsel %vm2168_vm10, %v2852_v24, %v2165_v36 }
 0x398   : > { %v2174_v38 = vsel %vm2171_vm11, %v2173_v3, %v2169_v19 }
 0x399   : > { %v4114_v10 = vperm.slane %v2174_v38, 0 }
 0x39b   : > { %v2177_v39 = vmul.f32 %v4114_v10, %v3895_v4  ;;  %v2178_v35 = vmul.f32 %v4114_v10, %v3891_v11  ;;  %v2191_v40 = vmul.f32 %v4114_v10, %v3973_v28  ;;  %v2192_v47 = vmul.f32 %v4114_v10, %v3978_v34 }
 0x39c   : > { %v2179_v58 = vmul.f32 %v4114_v10, %v3897_v51  ;;  %v2180_v20 = vmul.f32 %v4114_v10, %v3903_v26  ;;  %v2193_v4 = vmul.f32 %v4114_v10, %v3984_v37  ;;  %v2194_v11 = vmul.f32 %v4114_v10, %v3998_v27 }
 0x39d   : > { %v2209_v46 = vpack.c.bf16 %v2178_v35, %v2177_v39  ;;  %v2216_v32 = vpack.c.bf16 %v2192_v47, %v2191_v40  ;;  %v2181_v34 = vmul.f32 %v4114_v10, %v3910_v61  ;;  %v2182_v31 = vmul.f32 %v4114_v10, %v3915_v56 }
 0x39e   : > { %v2210_v28 = vpack.c.bf16 %v2180_v20, %v2179_v58  ;;  %v2217_v50 = vpack.c.bf16 %v2194_v11, %v2193_v4  ;;  %v2195_v51 = vmul.f32 %v4114_v10, %v4001_v22  ;;  %v2196_v26 = vmul.f32 %v4114_v10, %v4010_v7 }
 0x39f   : > { %2301 = vmatmul.bf16.vlgmr.msrb.gmra.mxu1 %v2209_v46  ;;  %2336 = vmatmul.bf16.vlgmr.msra.gmra.mxu3 %v2216_v32  ;;  %v2211_v37 = vpack.c.bf16 %v2182_v31, %v2181_v34  ;;  %v2183_v27 = vmul.f32 %v4114_v10, %v3920_v23  ;;  %v2184_v18 = vmul.f32 %v4114_v10, %v3925_v13 }
 0x3a0   : > { %v2218_v15 = vpack.c.bf16 %v2196_v26, %v2195_v51  ;;  %v2197_v61 = vmul.f32 %v4114_v10, %v4019_v57  ;;  %v2198_v56 = vmul.f32 %v4114_v10, %v4025_v59  ;;  %v2185_v7 = vmul.f32 %v4114_v10, %v3930_v49 }
 0x3a1   : > { %v2212_v22 = vpack.c.bf16 %v2184_v18, %v2183_v27  ;;  %v2186_v48 = vmul.f32 %v4114_v10, %v3937_v5  ;;  %v2199_v23 = vmul.f32 %v4114_v10, %v4034_v25  ;;  %v2200_v13 = vmul.f32 %v4114_v10, %v4040_v1 }
 0x3a2   : > { %v2219_v44 = vpack.c.bf16 %v2198_v56, %v2197_v61  ;;  %v2187_v59 = vmul.f32 %v4114_v10, %v3945_v60  ;;  %v2188_v16 = vmul.f32 %v4114_v10, %v3950_v0  ;;  %v2201_v49 = vmul.f32 %v4114_v10, %v4046_v29 }
 0x3a3   : > { %v2213_v57 = vpack.c.bf16 %v2186_v48, %v2185_v7  ;;  %v2220_v30 = vpack.c.bf16 %v2200_v13, %v2199_v23  ;;  %v2202_v5 = vmul.f32 %v4114_v10, %v4052_v55  ;;  %v2189_v1 = vmul.f32 %v4114_v10, %v3958_v21 }
 0x3a4   : > { %v2214_v25 = vpack.c.bf16 %v2188_v16, %v2187_v59  ;;  %v2190_v14 = vmul.f32 %v4114_v10, %v3963_v54  ;;  %v2203_v60 = vmul.f32 %v4114_v10, %v4062_v53  ;;  %v2204_v0 = vmul.f32 %v4114_v10, %v4068_v42  ;;  %v4179_v53 = vld [vmem:[%s4293_s10] ss:$0 sm:$0xff] }
 0x3a5   : > { %v2221_v52 = vpack.c.bf16 %v2202_v5, %v2201_v49  ;;  %v2205_v55 = vmul.f32 %v4114_v10, %v4073_v2  ;;  %v2206_v21 = vmul.f32 %v4114_v10, %v4078_v8  ;;  %v2207_v42 = vmul.f32 %v4114_v10, %v4084_v63 }
 0x3a6   : > { %v2215_v29 = vpack.c.bf16 %v2190_v14, %v2189_v1  ;;  %v2222_v43 = vpack.c.bf16 %v2204_v0, %v2203_v60  ;;  %v2208_v6 = vmul.f32 %v4114_v10, %v4087_v17 }
 0x3a7   : > { %v2223_v54 = vpack.c.bf16 %v2206_v21, %v2205_v55 }
 0x3a8   : > { %v2224_v8 = vpack.c.bf16 %v2208_v6, %v2207_v42 }
 0x3af   : > { %2306 = vmatmul.bf16.gmra.mxu1 %v2210_v28  ;;  %2341 = vmatmul.bf16.gmra.mxu3 %v2217_v50 }
 0x3bf   : > { %2311 = vmatmul.bf16.gmra.mxu1 %v2211_v37  ;;  %2346 = vmatmul.bf16.gmra.mxu3 %v2218_v15 }
 0x3cf   : > { %2316 = vmatmul.bf16.gmra.mxu1 %v2212_v22  ;;  %2351 = vmatmul.bf16.gmra.mxu3 %v2219_v44 }
 0x3df   : > { %2321 = vmatmul.bf16.gmra.mxu1 %v2213_v57  ;;  %2356 = vmatmul.bf16.gmra.mxu3 %v2220_v30 }
 0x3ef   : > { %2326 = vmatmul.bf16.gmra.mxu1 %v2214_v25  ;;  %2361 = vmatmul.bf16.gmra.mxu3 %v2221_v52 }
 0x3ff   : > { %2331 = vmatmul.bf16.gmra.mxu1 %v2215_v29  ;;  %2366 = vmatmul.bf16.gmra.mxu3 %v2222_v43 }
 0x40f   : > { %2371 = vmatmul.bf16.gmra.mxu3 %v2223_v54 }
 0x41c   : > { %v2302_v9 = vpop.f32.mrf.mxu1 }
 0x41d   : > { %v2303_v2 = vadd.f32 %v4179_v53, %v2302_v9 }
 0x41f   : > { %2382 = vst [vmem:[%s3147_s25] sm:$0xff] %v2303_v2  ;;  %2376 = vmatmul.bf16.gmra.mxu3 %v2224_v8 }
 0x422   : > { %v2337_v24 = vpop.f32.mrf.mxu3 }
 0x423   : > { %v2338_v45 = vadd.f32 %v4179_v53, %v2337_v24 }
 0x424   : > { %v2304_v62 = vpop.f32.mrf.mxu1 }
 0x425   : > { %2396 = vst [vmem:[%s3147_s25 + $0x70] sm:$0xff] %v2338_v45  ;;  %v2305_v63 = vadd.f32 %v4179_v53, %v2304_v62 }
 0x427   : > { %2383 = vst [vmem:[%s3147_s25 + $0x8] sm:$0xff] %v2305_v63 }
 0x42a   : > { %v2339_v41 = vpop.f32.mrf.mxu3 }
 0x42b   : > { %v2340_v17 = vadd.f32 %v4179_v53, %v2339_v41 }
 0x42c   : > { %v2307_v33 = vpop.f32.mrf.mxu1 }
 0x42d   : > { %2397 = vst [vmem:[%s3147_s25 + $0x78] sm:$0xff] %v2340_v17  ;;  %v2308_v12 = vadd.f32 %v4179_v53, %v2307_v33 }
 0x42f   : > { %2384 = vst [vmem:[%s3147_s25 + $0x10] sm:$0xff] %v2308_v12 }
 0x432   : > { %v2342_v36 = vpop.f32.mrf.mxu3 }
 0x433   : > { %v2343_v3 = vadd.f32 %v4179_v53, %v2342_v36 }
 0x434   : > { %v2309_v19 = vpop.f32.mrf.mxu1 }
 0x435   : > { %2398 = vst [vmem:[%s3147_s25 + $0x80] sm:$0xff] %v2343_v3  ;;  %v2310_v38 = vadd.f32 %v4179_v53, %v2309_v19 }
 0x437   : > { %2385 = vst [vmem:[%s3147_s25 + $0x18] sm:$0xff] %v2310_v38 }
 0x43a   : > { %v2344_v10 = vpop.f32.mrf.mxu3 }
 0x43b   : > { %v2345_v39 = vadd.f32 %v4179_v53, %v2344_v10 }
 0x43c   : > { %v2312_v35 = vpop.f32.mrf.mxu1 }
 0x43d   : > { %2399 = vst [vmem:[%s3147_s25 + $0x88] sm:$0xff] %v2345_v39  ;;  %v2313_v40 = vadd.f32 %v4179_v53, %v2312_v35 }
 0x43f   : > { %2386 = vst [vmem:[%s3147_s25 + $0x20] sm:$0xff] %v2313_v40 }
 0x442   : > { %v2347_v47 = vpop.f32.mrf.mxu3 }
 0x443   : > { %v2348_v46 = vadd.f32 %v4179_v53, %v2347_v47 }
 0x444   : > { %v2314_v32 = vpop.f32.mrf.mxu1 }
 0x445   : > { %2400 = vst [vmem:[%s3147_s25 + $0x90] sm:$0xff] %v2348_v46  ;;  %v2315_v58 = vadd.f32 %v4179_v53, %v2314_v32 }
 0x447   : > { %2387 = vst [vmem:[%s3147_s25 + $0x28] sm:$0xff] %v2315_v58 }
 0x44a   : > { %v2349_v20 = vpop.f32.mrf.mxu3 }
 0x44b   : > { %v2350_v4 = vadd.f32 %v4179_v53, %v2349_v20 }
 0x44c   : > { %v2317_v11 = vpop.f32.mrf.mxu1 }
 0x44d   : > { %2401 = vst [vmem:[%s3147_s25 + $0x98] sm:$0xff] %v2350_v4  ;;  %v2318_v28 = vadd.f32 %v4179_v53, %v2317_v11 }
 0x44f   : > { %2388 = vst [vmem:[%s3147_s25 + $0x30] sm:$0xff] %v2318_v28 }
 0x452   : > { %v2352_v50 = vpop.f32.mrf.mxu3 }
 0x453   : > { %v2353_v34 = vadd.f32 %v4179_v53, %v2352_v50 }
 0x454   : > { %v2319_v31 = vpop.f32.mrf.mxu1 }
 0x455   : > { %2402 = vst [vmem:[%s3147_s25 + $0xa0] sm:$0xff] %v2353_v34  ;;  %v2320_v51 = vadd.f32 %v4179_v53, %v2319_v31 }
 0x457   : > { %2389 = vst [vmem:[%s3147_s25 + $0x38] sm:$0xff] %v2320_v51 }
 0x45a   : > { %v2354_v26 = vpop.f32.mrf.mxu3 }
 0x45b   : > { %v2355_v37 = vadd.f32 %v4179_v53, %v2354_v26 }
 0x45c   : > { %v2322_v15 = vpop.f32.mrf.mxu1 }
 0x45d   : > { %2403 = vst [vmem:[%s3147_s25 + $0xa8] sm:$0xff] %v2355_v37  ;;  %v2323_v27 = vadd.f32 %v4179_v53, %v2322_v15 }
 0x45f   : > { %2390 = vst [vmem:[%s3147_s25 + $0x40] sm:$0xff] %v2323_v27 }
 0x462   : > { %v2357_v18 = vpop.f32.mrf.mxu3 }
 0x463   : > { %v2358_v61 = vadd.f32 %v4179_v53, %v2357_v18 }
 0x464   : > { %v2324_v56 = vpop.f32.mrf.mxu1 }
 0x465   : > { %2404 = vst [vmem:[%s3147_s25 + $0xb0] sm:$0xff] %v2358_v61  ;;  %v2325_v22 = vadd.f32 %v4179_v53, %v2324_v56 }
 0x467   : > { %2391 = vst [vmem:[%s3147_s25 + $0x48] sm:$0xff] %v2325_v22 }
 0x46a   : > { %v2359_v44 = vpop.f32.mrf.mxu3 }
 0x46b   : > { %v2360_v7 = vadd.f32 %v4179_v53, %v2359_v44 }
 0x46c   : > { %v2327_v48 = vpop.f32.mrf.mxu1 }
 0x46d   : > { %2405 = vst [vmem:[%s3147_s25 + $0xb8] sm:$0xff] %v2360_v7  ;;  %v2328_v23 = vadd.f32 %v4179_v53, %v2327_v48 }
 0x46f   : > { %2392 = vst [vmem:[%s3147_s25 + $0x50] sm:$0xff] %v2328_v23 }
 0x472   : > { %v2362_v13 = vpop.f32.mrf.mxu3 }
 0x473   : > { %v2363_v57 = vadd.f32 %v4179_v53, %v2362_v13 }
 0x474   : > { %v2329_v30 = vpop.f32.mrf.mxu1 }
 0x475   : > { %2406 = vst [vmem:[%s3147_s25 + $0xc0] sm:$0xff] %v2363_v57  ;;  %v2330_v59 = vadd.f32 %v4179_v53, %v2329_v30 }
 0x477   : > { %2393 = vst [vmem:[%s3147_s25 + $0x58] sm:$0xff] %v2330_v59 }
 0x47a   : > { %v2364_v16 = vpop.f32.mrf.mxu3 }
 0x47b   : > { %v2365_v49 = vadd.f32 %v4179_v53, %v2364_v16 }
 0x47c   : > { %v2332_v5 = vpop.f32.mrf.mxu1 }
 0x47d   : > { %2407 = vst [vmem:[%s3147_s25 + $0xc8] sm:$0xff] %v2365_v49  ;;  %v2333_v25 = vadd.f32 %v4179_v53, %v2332_v5 }
 0x47f   : > { %2394 = vst [vmem:[%s3147_s25 + $0x60] sm:$0xff] %v2333_v25 }
 0x482   : > { %v2367_v52 = vpop.f32.mrf.mxu3 }
 0x483   : > { %v2368_v1 = vadd.f32 %v4179_v53, %v2367_v52 }
 0x484   : > { %v2334_v14 = vpop.f32.mrf.mxu1 }
 0x485   : > { %2408 = vst [vmem:[%s3147_s25 + $0xd0] sm:$0xff] %v2368_v1  ;;  %v2335_v60 = vadd.f32 %v4179_v53, %v2334_v14 }
 0x487   : > { %2395 = vst [vmem:[%s3147_s25 + $0x68] sm:$0xff] %v2335_v60 }
 0x48a   : > { %v2369_v0 = vpop.f32.mrf.mxu3 }
 0x48b   : > { %v2370_v29 = vadd.f32 %v4179_v53, %v2369_v0 }
 0x48d   : > { %2409 = vst [vmem:[%s3147_s25 + $0xd8] sm:$0xff] %v2370_v29 }
 0x492   : > { %v2372_v43 = vpop.f32.mrf.mxu3 }
 0x493   : > { %v2373_v55 = vadd.f32 %v4179_v53, %v2372_v43 }
 0x495   : > { %2410 = vst [vmem:[%s3147_s25 + $0xe0] sm:$0xff] %v2373_v55 }
 0x49a   : > { %v2374_v21 = vpop.f32.mrf.mxu3 }
 0x49b   : > { %v2375_v54 = vadd.f32 %v4179_v53, %v2374_v21 }
 0x49d   : > { %2411 = vst [vmem:[%s3147_s25 + $0xe8] sm:$0xff] %v2375_v54 }
 0x4a2   : > { %v2377_v42 = vpop.f32.mrf.mxu3 }
 0x4a3   : > { %v2378_v6 = vadd.f32 %v4179_v53, %v2377_v42 }
 0x4a5   : > { %2412 = vst [vmem:[%s3147_s25 + $0xf0] sm:$0xff] %v2378_v6 }
 0x4aa   : > { %v2379_v9 = vpop.f32.mrf.mxu3 }
 0x4ab   : > { %v2380_v2 = vadd.f32 %v4179_v53, %v2379_v9 }
 0x4ad   : > { %2413 = vst [vmem:[%s3147_s25 + $0xf8] sm:$0xff] %v2380_v2 }
 0x4ae   : > { %2880 = shalt.err (!%p2877_p4)
}
 0x4af   : > { %s2935_s25 = smov 128   ;;  %s2936_s29 = smov 8  }
 0x4b0   : > { %2786 = dma.vmem_to_hbm [thread:$0]  (%p3035_p5), %s2428_s24, 4096, %s2430_s13, %s2415_s16, %s2935_s25, %s2935_s25, %s2936_s29  }
 0x4b1 PF: > { %p2792_p7 = scmp.ge.s32.totalorder %s2923_s20, 2  ;;  %s2444_s0 = sand.u32 1, %s2911_s17  }
 0x4b2   : > { %s2445_s30 = scalar_lea.sflag [#allocation5], %s2444_s0 }
 0x4b3   : > { %p2789_p8 = pnand %p2792_p7, %p3039_p6 }
 0x4b5   : > { %p2790_p9 = pneg %p2789_p8 }
 0x4b7   : > { %2906 = dma.done.wait (%p2790_p9), %s2445_s30, 4096  }
 0x4b8   : > { %2908 = vsyncadd (%p2790_p9), %s2445_s30, 4294963200  ;;  %p21_p10 = scmp.ge.s32.totalorder %s3022_s23, 4   ;;  %s4309_s17 = smov %s2915_s18 }
 0x4b9   : > { %s4310_s18 = smov %s2919_s19  ;;  %s4311_s19 = smov %s3033_s26 }
 0x4ba   : > { %s4312_s20 = smov %s3022_s23  ;;  %23 = sbr.rel (!%p21_p10) target bundleno = 6 (0x6), region = 150 }
 0x4bf   :  { %2451 = vsyncpa [#allocation5], 1 }
 0x4c0   :  { %2453 = vsyncpa [#allocation5 + $0x1], 1 }

</bundles_post_ra>
